<compile_context>
chip_gen: v7x
topology: tpu7x:2x2x1
jax: 0.10.0
libtpu: 0.0.40
codegen_flags: <defaults>
</compile_context>

<pallas_src>
import jax
import jax.numpy as jnp
from jax.experimental import pallas as pl
from jax.experimental.pallas import tpu as pltpu

EPS = 1e-5


# ----------------------------------------------------------------------------
# Fused kernel: concatenated fc1 -> relu -> (BN2-folded) output heads ->
# lane-dense broadcast-add -> per-k2 softmax.  Single grid step, all operands
# resident in VMEM (total footprint ~3 MiB).
# ----------------------------------------------------------------------------
def _fcnn_fused_kernel(x_ref, w1_ref, b1_ref, wo1_ref, bo1_ref, wo2_ref, bo2_ref,
                       rep_ref, mask_ref, tile_ref, seg_ref, out_ref):
    hidden = wo1_ref.shape[0]

    # Both fc1 layers as one matmul (BN1 already folded into w1/b1); ReLU.
    # Eval-mode dropout is the identity.
    h = jnp.dot(x_ref[...], w1_ref[...], preferred_element_type=jnp.float32) + b1_ref[...]
    h = jnp.maximum(h, 0.0)                                       # (B, 2H)

    # Output heads (BN2 already folded into wo1/bo1 and wo2/bo2).
    o1 = jnp.dot(h[:, :hidden], wo1_ref[...],
                 preferred_element_type=jnp.float32) + bo1_ref[...]   # (B, K*K)
    o2 = jnp.dot(h[:, hidden:], wo2_ref[...],
                 preferred_element_type=jnp.float32) + bo2_ref[...]   # (B, R*K)

    # Replicate each batch row R times so rows enumerate (b, r).
    o1r = jnp.dot(rep_ref[...], o1, preferred_element_type=jnp.float32)  # (B*R, K*K)
    o2r = jnp.dot(rep_ref[...], o2, preferred_element_type=jnp.float32)  # (B*R, R*K)

    # o2t[(b,r), k1*K + k2] = o2[b, r*K + k2]:
    #   mask selects the r-th length-K segment of each row, tile spreads it K
    #   times along the lane axis.  Exactly one nonzero term per output element.
    o2t = jnp.dot(o2r * mask_ref[...], tile_ref[...],
                  preferred_element_type=jnp.float32)                  # (B*R, K*K)

    # Broadcast-add of the heads, then softmax over each contiguous K-segment
    # (== softmax over k2).  The per-row max is an exact stabilizer (it cancels).
    s = o1r + o2t
    m = jnp.max(s, axis=-1, keepdims=True)
    e = jnp.exp(s - m)
    den = jnp.dot(e, seg_ref[...], preferred_element_type=jnp.float32)  # segment sums
    out_ref[...] = e * pl.reciprocal(den)


# ----------------------------------------------------------------------------
# One-time parameter preparation: fold BN into the linear layers, concatenate
# the fc1 weights, and build the constant 0/1 helper matrices.
# ----------------------------------------------------------------------------
def prepare_params(p, K, R, B):
    s1 = jax.lax.rsqrt(p["bn1_var"] + EPS)          # (1, F)
    s2 = jax.lax.rsqrt(p["bn2_var"] + EPS)          # (1, H)

    def fold_in(w, b, scale, mean):
        # layer(bn(x)) = x @ (scale^T * w) + (b - (mean*scale) @ w)
        return w * scale.T, b - (mean * scale) @ w

    w1a, b1a = fold_in(p["w_fc1_1"], p["b_fc1_1"], s1, p["bn1_mean"])
    w1b, b1b = fold_in(p["w_fc1_2"], p["b_fc1_2"], s1, p["bn1_mean"])
    wo1, bo1 = fold_in(p["w_out1"], p["b_out1"], s2, p["bn2_mean"])
    wo2, bo2 = fold_in(p["w_out2"], p["b_out2"], s2, p["bn2_mean"])

    f32 = jnp.float32
    eye_k = jnp.eye(K, dtype=f32)
    return {
        "w1": jnp.concatenate([w1a, w1b], axis=1),    # (F, 2H)
        "b1": jnp.concatenate([b1a, b1b], axis=1),    # (1, 2H)
        "wo1": wo1, "bo1": bo1,                       # (H, K*K), (1, K*K)
        "wo2": wo2, "bo2": bo2,                       # (H, R*K), (1, R*K)
        # rep[b*R + r, b'] = [b == b']   : replicate batch rows R times.
        "rep": jnp.repeat(jnp.eye(B, dtype=f32), R, axis=0),                 # (B*R, B)
        # mask[b*R + r, c] = [c // K == r] : pick the r-th K-segment of o2.
        "mask": jnp.tile(jnp.kron(jnp.eye(R, dtype=f32), jnp.ones((1, K), f32)),
                         (B, 1)),                                            # (B*R, R*K)
        # tile[c, k1*K + k2] = [c % K == k2] : tile a K-segment K times on lanes.
        "tile": jnp.tile(eye_k, (R, K)),                                     # (R*K, K*K)
        # seg[j, l] = [j // K == l // K]   : per-K-segment sum, broadcast back.
        "seg": jnp.kron(eye_k, jnp.ones((K, K), f32)),                       # (K*K, K*K)
    }


def fcnn_batchnorm_t_forward(x, prep, K, R):
    B = x.shape[0]
    vmem = pl.BlockSpec(memory_space=pltpu.MemorySpace.VMEM)
    out2d = pl.pallas_call(
        _fcnn_fused_kernel,
        out_shape=jax.ShapeDtypeStruct((B * R, K * K), jnp.float32),
        in_specs=[vmem] * 11,
        out_specs=vmem,
    )(x, prep["w1"], prep["b1"], prep["wo1"], prep["bo1"],
      prep["wo2"], prep["bo2"], prep["rep"], prep["mask"], prep["tile"], prep["seg"])
    # Row-major (B*R, K*K) -> (B, R, K, K) is a free metadata reshape.
    return out2d.reshape(B, R, K, K)


# ----------------------------------------------------------------------------
# Deterministic parameter construction (synthetic; no checkpoint loading).
# ----------------------------------------------------------------------------
def init_params(key, input_dim, K, R, hidden=128):
    ks = jax.random.split(key, 12)

    def lin_w(k, fan_in, fan_out):
        bound = 1.0 / jnp.sqrt(jnp.float32(fan_in))
        return jax.random.uniform(k, (fan_in, fan_out), jnp.float32, -bound, bound)

    def lin_b(k, fan_in, fan_out):
        bound = 1.0 / jnp.sqrt(jnp.float32(fan_in))
        return jax.random.uniform(k, (1, fan_out), jnp.float32, -bound, bound)

    return {
        # BatchNorm running stats (non-trivial values exercise the full BN fold).
        "bn1_mean": 0.1 * jax.random.normal(ks[0], (1, input_dim), jnp.float32),
        "bn1_var": 1.0 + 0.2 * jax.random.uniform(ks[1], (1, input_dim), jnp.float32),
        "bn2_mean": 0.1 * jax.random.normal(ks[2], (1, hidden), jnp.float32),
        "bn2_var": 1.0 + 0.2 * jax.random.uniform(ks[3], (1, hidden), jnp.float32),
        # Linear layers, stored (in, out).
        "w_fc1_1": lin_w(ks[4], input_dim, hidden),
        "b_fc1_1": lin_b(ks[5], input_dim, hidden),
        "w_fc1_2": lin_w(ks[6], input_dim, hidden),
        "b_fc1_2": lin_b(ks[7], input_dim, hidden),
        "w_out1": lin_w(ks[8], hidden, K * K),
        "b_out1": lin_b(ks[9], hidden, K * K),
        "w_out2": lin_w(ks[10], hidden, R * K),
        "b_out2": lin_b(ks[11], hidden, R * K),
    }


def ref_forward(x, p, K, R):
    """Pure-JAX reference mirroring the PyTorch eval-mode forward."""
    h = (x - p["bn1_mean"]) / jnp.sqrt(p["bn1_var"] + EPS)
    a1 = jnp.maximum(h @ p["w_fc1_1"] + p["b_fc1_1"], 0.0)
    a1 = (a1 - p["bn2_mean"]) / jnp.sqrt(p["bn2_var"] + EPS)
    o1 = (a1 @ p["w_out1"] + p["b_out1"]).reshape(-1, K, K)
    a2 = jnp.maximum(h @ p["w_fc1_2"] + p["b_fc1_2"], 0.0)
    a2 = (a2 - p["bn2_mean"]) / jnp.sqrt(p["bn2_var"] + EPS)
    o2 = (a2 @ p["w_out2"] + p["b_out2"]).reshape(-1, R, K)
    out = o1[:, None, :, :] + o2[:, :, None, :]
    return jax.nn.softmax(out, axis=3)


if __name__ == "__main__":
    B, INPUT_DIM, K, R = 8, 124, 10, 44

    key = jax.random.PRNGKey(0)
    kx, kp = jax.random.split(key)
    x = jax.random.normal(kx, (B, INPUT_DIM), jnp.float32)
    params = init_params(kp, INPUT_DIM, K, R)

    # One-time prep (BN folding + constant matrices), outside the hot path.
    prep = prepare_params(params, K, R, B)

    fwd = jax.jit(fcnn_batchnorm_t_forward, static_argnums=(2, 3))
    prob = jax.block_until_ready(fwd(x, prep, K, R))

    # Sanity check against the pure-JAX reference (original, unfolded params).
    ref = ref_forward(x, params, K, R)
    assert prob.shape == (B, R, K, K), prob.shape
    assert jnp.allclose(prob, ref, atol=1e-5, rtol=1e-5), \
        float(jnp.max(jnp.abs(prob - ref)))

    print("KERNEL_OK")
</pallas_src>

<mosaic_0001>
module attributes {stable_mosaic.version = 11 : i64} {
  func.func @_fcnn_fused_kernel(%arg0: memref<8x124xf32, #tpu.memory_space<vmem>>, %arg1: memref<124x256xf32, #tpu.memory_space<vmem>>, %arg2: memref<1x256xf32, #tpu.memory_space<vmem>>, %arg3: memref<128x100xf32, #tpu.memory_space<vmem>>, %arg4: memref<1x100xf32, #tpu.memory_space<vmem>>, %arg5: memref<128x440xf32, #tpu.memory_space<vmem>>, %arg6: memref<1x440xf32, #tpu.memory_space<vmem>>, %arg7: memref<352x8xf32, #tpu.memory_space<vmem>>, %arg8: memref<352x440xf32, #tpu.memory_space<vmem>>, %arg9: memref<440x100xf32, #tpu.memory_space<vmem>>, %arg10: memref<100x100xf32, #tpu.memory_space<vmem>>, %arg11: memref<352x100xf32, #tpu.memory_space<vmem>>) attributes {dimension_semantics = [], scalar_prefetch = 0 : i64, scratch_operands = 0 : i64, tpu.core_type = #tpu.core_type<tc>} {
    %c0 = arith.constant 0 : index
    %c0_0 = arith.constant 0 : index
    %0 = vector.load %arg0[%c0, %c0_0] : memref<8x124xf32, #tpu.memory_space<vmem>>, vector<8x124xf32>
    %c0_1 = arith.constant 0 : index
    %c0_2 = arith.constant 0 : index
    %1 = vector.load %arg1[%c0_1, %c0_2] : memref<124x256xf32, #tpu.memory_space<vmem>>, vector<124x256xf32>
    %cst = arith.constant dense<0.000000e+00> : vector<8x256xf32>
    %2 = tpu.matmul %0, %1, %cst {dimension_numbers = #tpu.dot_dimension_numbers<[1], [0], [0], [1], [0, 0, 1, 1], [], []>} : vector<8x124xf32>, vector<124x256xf32>, vector<8x256xf32> -> vector<8x256xf32>
    %c0_3 = arith.constant 0 : index
    %c0_4 = arith.constant 0 : index
    %3 = vector.load %arg2[%c0_3, %c0_4] : memref<1x256xf32, #tpu.memory_space<vmem>>, vector<1x256xf32>
    %4 = vector.broadcast %3 : vector<1x256xf32> to vector<8x256xf32>
    %5 = arith.addf %2, %4 : vector<8x256xf32>
    %cst_5 = arith.constant 0.000000e+00 : f32
    %6 = vector.broadcast %cst_5 : f32 to vector<8x256xf32>
    %7 = arith.maximumf %5, %6 : vector<8x256xf32>
    %8 = vector.extract_strided_slice %7 {offsets = [0, 0], sizes = [8, 128], strides = [1, 1]} : vector<8x256xf32> to vector<8x128xf32>
    %c0_6 = arith.constant 0 : index
    %c0_7 = arith.constant 0 : index
    %9 = vector.load %arg3[%c0_6, %c0_7] : memref<128x100xf32, #tpu.memory_space<vmem>>, vector<128x100xf32>
    %cst_8 = arith.constant dense<0.000000e+00> : vector<8x100xf32>
    %10 = tpu.matmul %8, %9, %cst_8 {dimension_numbers = #tpu.dot_dimension_numbers<[1], [0], [0], [1], [0, 0, 1, 1], [], []>} : vector<8x128xf32>, vector<128x100xf32>, vector<8x100xf32> -> vector<8x100xf32>
    %c0_9 = arith.constant 0 : index
    %c0_10 = arith.constant 0 : index
    %11 = vector.load %arg4[%c0_9, %c0_10] : memref<1x100xf32, #tpu.memory_space<vmem>>, vector<1x100xf32>
    %12 = vector.broadcast %11 : vector<1x100xf32> to vector<8x100xf32>
    %13 = arith.addf %10, %12 : vector<8x100xf32>
    %14 = vector.extract_strided_slice %7 {offsets = [0, 128], sizes = [8, 128], strides = [1, 1]} : vector<8x256xf32> to vector<8x128xf32>
    %c0_11 = arith.constant 0 : index
    %c0_12 = arith.constant 0 : index
    %15 = vector.load %arg5[%c0_11, %c0_12] : memref<128x440xf32, #tpu.memory_space<vmem>>, vector<128x440xf32>
    %cst_13 = arith.constant dense<0.000000e+00> : vector<8x440xf32>
    %16 = tpu.matmul %14, %15, %cst_13 {dimension_numbers = #tpu.dot_dimension_numbers<[1], [0], [0], [1], [0, 0, 1, 1], [], []>} : vector<8x128xf32>, vector<128x440xf32>, vector<8x440xf32> -> vector<8x440xf32>
    %c0_14 = arith.constant 0 : index
    %c0_15 = arith.constant 0 : index
    %17 = vector.load %arg6[%c0_14, %c0_15] : memref<1x440xf32, #tpu.memory_space<vmem>>, vector<1x440xf32>
    %18 = vector.broadcast %17 : vector<1x440xf32> to vector<8x440xf32>
    %19 = arith.addf %16, %18 : vector<8x440xf32>
    %c0_16 = arith.constant 0 : index
    %c0_17 = arith.constant 0 : index
    %20 = vector.load %arg7[%c0_16, %c0_17] : memref<352x8xf32, #tpu.memory_space<vmem>>, vector<352x8xf32>
    %cst_18 = arith.constant dense<0.000000e+00> : vector<352x100xf32>
    %21 = tpu.matmul %20, %13, %cst_18 {dimension_numbers = #tpu.dot_dimension_numbers<[1], [0], [0], [1], [0, 0, 1, 1], [], []>} : vector<352x8xf32>, vector<8x100xf32>, vector<352x100xf32> -> vector<352x100xf32>
    %c0_19 = arith.constant 0 : index
    %c0_20 = arith.constant 0 : index
    %22 = vector.load %arg7[%c0_19, %c0_20] : memref<352x8xf32, #tpu.memory_space<vmem>>, vector<352x8xf32>
    %cst_21 = arith.constant dense<0.000000e+00> : vector<352x440xf32>
    %23 = tpu.matmul %22, %19, %cst_21 {dimension_numbers = #tpu.dot_dimension_numbers<[1], [0], [0], [1], [0, 0, 1, 1], [], []>} : vector<352x8xf32>, vector<8x440xf32>, vector<352x440xf32> -> vector<352x440xf32>
    %c0_22 = arith.constant 0 : index
    %c0_23 = arith.constant 0 : index
    %24 = vector.load %arg8[%c0_22, %c0_23] : memref<352x440xf32, #tpu.memory_space<vmem>>, vector<352x440xf32>
    %25 = arith.mulf %23, %24 : vector<352x440xf32>
    %c0_24 = arith.constant 0 : index
    %c0_25 = arith.constant 0 : index
    %26 = vector.load %arg9[%c0_24, %c0_25] : memref<440x100xf32, #tpu.memory_space<vmem>>, vector<440x100xf32>
    %cst_26 = arith.constant dense<0.000000e+00> : vector<352x100xf32>
    %27 = tpu.matmul %25, %26, %cst_26 {dimension_numbers = #tpu.dot_dimension_numbers<[1], [0], [0], [1], [0, 0, 1, 1], [], []>} : vector<352x440xf32>, vector<440x100xf32>, vector<352x100xf32> -> vector<352x100xf32>
    %28 = arith.addf %21, %27 : vector<352x100xf32>
    %cst_27 = arith.constant dense<0xFF800000> : vector<352xf32>
    %29 = vector.multi_reduction <maximumf>, %28, %cst_27 [1] : vector<352x100xf32> to vector<352xf32>
    %30 = vector.shape_cast %29 : vector<352xf32> to vector<352x1xf32>
    %31 = vector.broadcast %30 : vector<352x1xf32> to vector<352x100xf32>
    %32 = arith.subf %28, %31 : vector<352x100xf32>
    %33 = math.exp %32 : vector<352x100xf32>
    %c0_28 = arith.constant 0 : index
    %c0_29 = arith.constant 0 : index
    %34 = vector.load %arg10[%c0_28, %c0_29] : memref<100x100xf32, #tpu.memory_space<vmem>>, vector<100x100xf32>
    %cst_30 = arith.constant dense<0.000000e+00> : vector<352x100xf32>
    %35 = tpu.matmul %33, %34, %cst_30 {dimension_numbers = #tpu.dot_dimension_numbers<[1], [0], [0], [1], [0, 0, 1, 1], [], []>} : vector<352x100xf32>, vector<100x100xf32>, vector<352x100xf32> -> vector<352x100xf32>
    %36 = tpu.reciprocal %35 : vector<352x100xf32> -> vector<352x100xf32>
    %37 = arith.mulf %33, %36 : vector<352x100xf32>
    %c0_31 = arith.constant 0 : index
    %c0_32 = arith.constant 0 : index
    %38 = vector.load %arg11[%c0_31, %c0_32] : memref<352x100xf32, #tpu.memory_space<vmem>>, vector<352x100xf32>
    tpu.vector_store %arg11[%c0_31, %c0_32], %37 {strides = array<i32>} : memref<352x100xf32, #tpu.memory_space<vmem>>, vector<352x100xf32>,
    return
  }
}

</mosaic_0001>

<bundles_post_ra>
// kernel: fcnn_batchnorm_t_forward.1
= control target key start
LH: loop header
LB: loop body
LE: loop exit
PB: predicated region body
PF: predicated region fallthrough
CT: control target
= control target key end

     0   :  { %v4610_v3 = vmov 0.0   ;;  %v4611_v8 = vmov 0.0|0.0   ;;  %vm87_vm0 = vcmask 1043456   ;;  %vm4612_vm1 = vmmov 1   ;;  %s7639_s1 = inlined_call_operand.vmem [shape: f32[124,256], index: 1, kind: input, shape index: {}]   ;;  %s7640_s3 = inlined_call_operand.vmem [shape: f32[128,100], index: 3, kind: input, shape index: {}]   ;;  %s7641_s5 = inlined_call_operand.vmem [shape: f32[128,440], index: 5, kind: input, shape index: {}]   ;;  %s7642_s0 = inlined_call_operand.vmem [shape: f32[8,124], index: 0, kind: input, shape index: {}]   ;;  %s7643_s2 = inlined_call_operand.vmem [shape: f32[1,256], index: 2, kind: input, shape index: {}]   ;;  %s7644_s6 = inlined_call_operand.vmem [shape: f32[1,440], index: 6, kind: input, shape index: {}]   ;;  %s7645_s9 = inlined_call_operand.vmem [shape: f32[440,100], index: 9, kind: input, shape index: {}]   ;;  %s7646_s7 = inlined_call_operand.vmem [shape: f32[352,8], index: 7, kind: input, shape index: {}]   ;;  %s7647_s4 = inlined_call_operand.vmem [shape: f32[1,100], index: 4, kind: input, shape index: {}]   ;;  %s7648_s8 = inlined_call_operand.vmem [shape: f32[352,440], index: 8, kind: input, shape index: {}]   ;;  %s7649_s10 = inlined_call_operand.vmem [shape: f32[100,100], index: 10, kind: input, shape index: {}]   ;;  %s7650_s11 = inlined_call_operand.vmem [shape: f32[352,100], index: 11, kind: output, shape index: {}]  }
   0x1   :  { %v40_v0 = vld [vmem:[%s7639_s1 + $0x8] sm:$0xff]  ;;  %v42_v1 = vld [vmem:[%s7639_s1 + $0x18] sm:$0xff]  ;;  %v39_v2 = vld [vmem:[%s7639_s1] sm:$0xff]  ;;  %158 = vmatprep.mubr.f32.mxu0 %v4610_v3  ;;  %4125 = vmatprep.subr.bf16.mxu1 %v4611_v8  ;;  %vm83_vm3 = vcmask 1014784   ;;  %vm4613_vm4 = vmmov 0   ;;  %vm532_vm5 = vcmask 64512  }
   0x2   :  { %v4091_v4 = vpack.c.bf16 %v42_v1, %v40_v0  ;;  %v41_v5 = vld [vmem:[%s7639_s1 + $0x10] sm:$0xff]  ;;  %v44_v6 = vld [vmem:[%s7639_s1 + $0x28] sm:$0xff]  ;;  %v46_v7 = vld [vmem:[%s7639_s1 + $0x38] sm:$0xff]  ;;  %3928 = vmatprep.mubr.msk.f32.mxu1 %vm4613_vm4, %v4610_v3  ;;  %vm1730_vm6 = vcmask 457728   ;;  %vm2718_vm7 = vcmask 818176  }
   0x3   :  { %v4093_v9 = vpack.c.bf16 %v41_v5, %v39_v2  ;;  %v4095_v10 = vpack.c.bf16 %v46_v7, %v44_v6  ;;  %v43_v11 = vld [vmem:[%s7639_s1 + $0x20] sm:$0xff]  ;;  %v45_v12 = vld [vmem:[%s7639_s1 + $0x30] sm:$0xff]  ;;  %v48_v13 = vld [vmem:[%s7639_s1 + $0x48] sm:$0xff] }
   0x4   :  { %4092 = vmatprep.subr.bf16.mxu0 %v4091_v4  ;;  %v50_v14 = vld [vmem:[%s7639_s1 + $0x58] sm:$0xff]  ;;  %v4097_v15 = vpack.c.bf16 %v45_v12, %v43_v11  ;;  %v47_v17 = vld [vmem:[%s7639_s1 + $0x40] sm:$0xff]  ;;  %v49_v18 = vld [vmem:[%s7639_s1 + $0x50] sm:$0xff] }
   0x5   :  { %4094 = vmatpush1.bf16.msra.mxu0 %v4093_v9  ;;  %v4099_v16 = vpack.c.bf16 %v50_v14, %v48_v13  ;;  %v52_v19 = vld [vmem:[%s7639_s1 + $0x68] sm:$0xff]  ;;  %v54_v20 = vld [vmem:[%s7639_s1 + $0x78] sm:$0xff]  ;;  %v4101_v21 = vpack.c.bf16 %v49_v18, %v47_v17  ;;  %v51_v23 = vld [vmem:[%s7639_s1 + $0x60] sm:$0xff] }
   0x6   :  { %4096 = vmatprep.subr.bf16.mxu0 %v4095_v10  ;;  %v4103_v22 = vpack.c.bf16 %v54_v20, %v52_v19  ;;  %v53_v24 = vld [vmem:[%s7639_s1 + $0x70] sm:$0xff]  ;;  %v56_v25 = vld [vmem:[%s7639_s1 + $0x88] sm:$0xff]  ;;  %v58_v26 = vld [vmem:[%s7639_s1 + $0x98] sm:$0xff] }
   0x7   :  { %v167_v27 = vld [vmem:[%s7640_s3] sm:$0xff]  ;;  %v168_v28 = vld [vmem:[%s7640_s3 + $0x8] sm:$0xff]  ;;  %v4105_v29 = vpack.c.bf16 %v53_v24, %v51_v23  ;;  %v4107_v32 = vpack.c.bf16 %v58_v26, %v56_v25  ;;  %v57_v33 = vld [vmem:[%s7639_s1 + $0x90] sm:$0xff] }
   0x8   :  { %v55_v30 = vld [vmem:[%s7639_s1 + $0x80] sm:$0xff]  ;;  %v4126_v31 = vpack.c.bf16 %v168_v28, %v167_v27  ;;  %v169_v34 = vld [vmem:[%s7640_s3 + $0x10] sm:$0xff]  ;;  %v170_v35 = vld [vmem:[%s7640_s3 + $0x18] sm:$0xff] }
   0x9   :  { %4098 = vmatpush1.bf16.msra.mxu0 %v4097_v15  ;;  %v60_v36 = vld [vmem:[%s7639_s1 + $0xa8] sm:$0xff]  ;;  %v62_v37 = vld [vmem:[%s7639_s1 + $0xb8] sm:$0xff]  ;;  %v4129_v38 = vpack.c.bf16 %v170_v35, %v169_v34  ;;  %v171_v39 = vld [vmem:[%s7640_s3 + $0x20] sm:$0xff]  ;;  %v4109_v41 = vpack.c.bf16 %v57_v33, %v55_v30 }
   0xa   :  { %4100 = vmatprep.subr.bf16.mxu0 %v4099_v16  ;;  %4127 = vmatpush3.bf16.msra.mxu1 %v4126_v31  ;;  %v172_v40 = vld [vmem:[%s7640_s3 + $0x28] sm:$0xff]  ;;  %v4111_v42 = vpack.c.bf16 %v62_v37, %v60_v36  ;;  %v59_v43 = vld [vmem:[%s7639_s1 + $0xa0] sm:$0xff]  ;;  %v61_v44 = vld [vmem:[%s7639_s1 + $0xb0] sm:$0xff] }
   0xb   :  { %4128 = vmatprep.subr.bf16.mxu1 %v4611_v8  ;;  %v64_v45 = vld [vmem:[%s7639_s1 + $0xc8] sm:$0xff]  ;;  %v66_v46 = vld [vmem:[%s7639_s1 + $0xd8] sm:$0xff]  ;;  %v4132_v47 = vpack.c.bf16 %v172_v40, %v171_v39  ;;  %v173_v48 = vld [vmem:[%s7640_s3 + $0x30] sm:$0xff]  ;;  %v4113_v50 = vpack.c.bf16 %v61_v44, %v59_v43 }
   0xc   :  { %v174_v49 = vld [vmem:[%s7640_s3 + $0x38] sm:$0xff]  ;;  %v4115_v51 = vpack.c.bf16 %v66_v46, %v64_v45  ;;  %v63_v52 = vld [vmem:[%s7639_s1 + $0xc0] sm:$0xff]  ;;  %v65_v53 = vld [vmem:[%s7639_s1 + $0xd0] sm:$0xff] }
   0xd   :  { %4102 = vmatpush1.bf16.msra.mxu0 %v4101_v21  ;;  %v68_v54 = vld [vmem:[%s7639_s1 + $0xe8] sm:$0xff]  ;;  %v70_v55 = vld [vmem:[%s7639_s1 + $0xf8] sm:$0xf]  ;;  %v4135_v56 = vpack.c.bf16 %v174_v49, %v173_v48  ;;  %v175_v57 = vld [vmem:[%s7640_s3 + $0x40] sm:$0xff]  ;;  %v4117_v59 = vpack.c.bf16 %v65_v53, %v63_v52 }
   0xe   :  { %4104 = vmatprep.subr.bf16.mxu0 %v4103_v22  ;;  %4130 = vmatpush3.bf16.msra.mxu1 %v4129_v38  ;;  %v176_v58 = vld [vmem:[%s7640_s3 + $0x48] sm:$0xff]  ;;  %v4119_v60 = vpack.c.bf16 %v70_v55, %v68_v54  ;;  %v67_v61 = vld [vmem:[%s7639_s1 + $0xe0] sm:$0xff]  ;;  %v69_v62 = vld [vmem:[%s7639_s1 + $0xf0] sm:$0xf] }
   0xf   :  { %4131 = vmatprep.subr.bf16.mxu1 %v4611_v8  ;;  %vm4806_vm2 = vmpackc.low %vm87_vm0, %vm4612_vm1  ;;  %v261_v0 = vld [vmem:[%s7641_s5 + $0x8] sm:$0xff]  ;;  %v4138_v2 = vpack.c.bf16 %v176_v58, %v175_v57  ;;  %v177_v4 = vld [vmem:[%s7640_s3 + $0x50] sm:$0xff]  ;;  %v4122_v6 = vpack.c.bf16 %v69_v62, %v67_v61 }
  0x10   :  { %v265_v1 = vld [vmem:[%s7641_s5 + $0x28] sm:$0xff]  ;;  %v178_v5 = vld [vmem:[%s7640_s3 + $0x58] sm:$0xff]  ;;  %v260_v9 = vld [vmem:[%s7641_s5] sm:$0xff] }
  0x11   :  { %4106 = vmatpush1.bf16.msra.mxu0 %v4105_v29  ;;  %v4149_v7 = vpack.c.bf16 %v265_v1, %v261_v0  ;;  %v264_v10 = vld [vmem:[%s7641_s5 + $0x20] sm:$0xff]  ;;  %v269_v11 = vld [vmem:[%s7641_s5 + $0x48] sm:$0xff]  ;;  %v4141_v13 = vpack.c.bf16 %v178_v5, %v177_v4  ;;  %v181_v53 = vld [vmem:[%s7640_s3 + $0x70] sm:$0xff]  ;;  %v73_v1 = vlaneseq }
  0x12   :  { %4108 = vmatprep.subr.bf16.mxu0 %v4107_v32  ;;  %4133 = vmatpush3.bf16.msra.mxu1 %v4132_v47  ;;  %v273_v12 = vld [vmem:[%s7641_s5 + $0x68] sm:$0xff]  ;;  %v179_v14 = vld [vmem:[%s7640_s3 + $0x60] sm:$0xff]  ;;  %v4151_v17 = vpack.c.bf16 %v264_v10, %v260_v9  ;;  %v182_v54 = vld [vmem:[%s7640_s3 + $0x78] sm:$0xff] }
  0x13   :  { %4134 = vmatprep.subr.bf16.mxu1 %v4611_v8  ;;  %v180_v15 = vld [vmem:[%s7640_s3 + $0x68] sm:$0xff]  ;;  %v38_v16 = vld [vmem:[%s7642_s0] sm:$0xff]  ;;  %v4153_v18 = vpack.c.bf16 %v273_v12, %v269_v11  ;;  %v4147_v55 = vpack.c.bf16 %v182_v54, %v181_v53  ;;  %v263_v62 = vld [vmem:[%s7641_s5 + $0x18] sm:$0xff] }
  0x14   :  { %v268_v19 = vld [vmem:[%s7641_s5 + $0x40] sm:$0xff]  ;;  %v277_v21 = vld [vmem:[%s7641_s5 + $0x88] sm:$0xff]  ;;  %v4144_v23 = vpack.c.bf16 %v180_v15, %v179_v14  ;;  %v267_v63 = vld [vmem:[%s7641_s5 + $0x38] sm:$0xff] }
  0x15   :  { %4110 = vmatpush1.bf16.msra.mxu0 %v4109_v41  ;;  %v272_v20 = vld [vmem:[%s7641_s5 + $0x60] sm:$0xff]  ;;  %v281_v22 = vld [vmem:[%s7641_s5 + $0xa8] sm:$0xff]  ;;  %v4181_v0 = vpack.c.bf16 %v267_v63, %v263_v62  ;;  %v262_v10 = vld [vmem:[%s7641_s5 + $0x10] sm:$0xff] }
  0x16   :  { %4112 = vmatprep.subr.bf16.mxu0 %v4111_v42  ;;  %4136 = vmatpush3.bf16.msra.mxu1 %v4135_v56  ;;  %v4155_v24 = vpack.c.bf16 %v272_v20, %v268_v19  ;;  %v4157_v25 = vpack.c.bf16 %v281_v22, %v277_v21  ;;  %v276_v26 = vld [vmem:[%s7641_s5 + $0x80] sm:$0xff]  ;;  %v285_v28 = vld [vmem:[%s7641_s5 + $0xc8] sm:$0xff]  ;;  %v266_v11 = vld [vmem:[%s7641_s5 + $0x30] sm:$0xff] }
  0x17   :  { %4137 = vmatprep.subr.bf16.mxu1 %v4611_v8  ;;  %v280_v27 = vld [vmem:[%s7641_s5 + $0xa0] sm:$0xff]  ;;  %v289_v29 = vld [vmem:[%s7641_s5 + $0xe8] sm:$0xff]  ;;  %v275_v14 = vld [vmem:[%s7641_s5 + $0x78] sm:$0xff] }
  0x18   :  { %v4159_v30 = vpack.c.bf16 %v280_v27, %v276_v26  ;;  %v4161_v31 = vpack.c.bf16 %v289_v29, %v285_v28  ;;  %v284_v32 = vld [vmem:[%s7641_s5 + $0xc0] sm:$0xff]  ;;  %v293_v34 = vld [vmem:[%s7641_s5 + $0x108] sm:$0xff]  ;;  %v270_v21 = vld [vmem:[%s7641_s5 + $0x50] sm:$0xff] }
  0x19   :  { %4114 = vmatpush1.bf16.msra.mxu0 %v4113_v50  ;;  %v288_v33 = vld [vmem:[%s7641_s5 + $0xe0] sm:$0xff]  ;;  %v297_v35 = vld [vmem:[%s7641_s5 + $0x128] sm:$0xff]  ;;  %v274_v22 = vld [vmem:[%s7641_s5 + $0x70] sm:$0xff] }
  0x1a   :  { %4116 = vmatprep.subr.bf16.mxu0 %v4115_v51  ;;  %4139 = vmatpush3.bf16.msra.mxu1 %v4138_v2  ;;  %v4163_v36 = vpack.c.bf16 %v288_v33, %v284_v32  ;;  %v4165_v37 = vpack.c.bf16 %v297_v35, %v293_v34  ;;  %v292_v38 = vld [vmem:[%s7641_s5 + $0x100] sm:$0xff]  ;;  %v301_v40 = vld [vmem:[%s7641_s5 + $0x148] sm:$0xff]  ;;  %v4943_v2 = vshrl.u32 %v73_v1, 7  ;;  %v4187_v26 = vpack.c.bf16 %v274_v22, %v270_v21  ;;  %v278_v28 = vld [vmem:[%s7641_s5 + $0x90] sm:$0xff] }
  0x1b   :  { %4140 = vmatprep.subr.bf16.mxu1 %v4611_v8  ;;  %v296_v39 = vld [vmem:[%s7641_s5 + $0x120] sm:$0xff]  ;;  %v305_v41 = vld [vmem:[%s7641_s5 + $0x168] sm:$0xff]  ;;  %v282_v29 = vld [vmem:[%s7641_s5 + $0xb0] sm:$0xff] }
  0x1c   :  { %v4167_v42 = vpack.c.bf16 %v296_v39, %v292_v38  ;;  %v4169_v43 = vpack.c.bf16 %v305_v41, %v301_v40  ;;  %v300_v44 = vld [vmem:[%s7641_s5 + $0x140] sm:$0xff]  ;;  %v309_v46 = vld [vmem:[%s7641_s5 + $0x188] sm:$0xff]  ;;  %v75_v4 = vsub.s32 0, %v4943_v2  ;;  %v4191_v32 = vpack.c.bf16 %v282_v29, %v278_v28  ;;  %v286_v34 = vld [vmem:[%s7641_s5 + $0xd0] sm:$0xff] }
  0x1d   :  { %4118 = vmatpush1.bf16.msra.mxu0 %v4117_v59  ;;  %v304_v45 = vld [vmem:[%s7641_s5 + $0x160] sm:$0xff]  ;;  %v313_v47 = vld [vmem:[%s7641_s5 + $0x1a8] sm:$0xff]  ;;  %v290_v35 = vld [vmem:[%s7641_s5 + $0xf0] sm:$0xff] }
  0x1e   :  { %4121 = vmatprep.subr.msk.bf16.mxu0 %vm4806_vm2, %v4119_v60  ;;  %4142 = vmatpush3.bf16.msra.mxu1 %v4141_v13  ;;  %v4171_v48 = vpack.c.bf16 %v304_v45, %v300_v44  ;;  %v4173_v49 = vpack.c.bf16 %v313_v47, %v309_v46  ;;  %v308_v50 = vld [vmem:[%s7641_s5 + $0x180] sm:$0xff]  ;;  %v317_v56 = vld [vmem:[%s7641_s5 + $0x1c8] sm:$0xff]  ;;  %v271_v13 = vld [vmem:[%s7641_s5 + $0x58] sm:$0xff]  ;;  %v4195_v38 = vpack.c.bf16 %v290_v35, %v286_v34 }
  0x1f   :  { %4143 = vmatprep.subr.bf16.mxu1 %v4611_v8  ;;  %v312_v51 = vld [vmem:[%s7641_s5 + $0x1a0] sm:$0xff]  ;;  %v321_v57 = vld [vmem:[%s7641_s5 + $0x1e8] sm:$0xff]  ;;  %v4185_v20 = vpack.c.bf16 %v275_v14, %v271_v13  ;;  %v294_v40 = vld [vmem:[%s7641_s5 + $0x110] sm:$0xff] }
  0x20   :  { %v4175_v52 = vpack.c.bf16 %v312_v51, %v308_v50  ;;  %v4177_v58 = vpack.c.bf16 %v321_v57, %v317_v56  ;;  %v316_v59 = vld [vmem:[%s7641_s5 + $0x1c0] sm:$0xff]  ;;  %v298_v41 = vld [vmem:[%s7641_s5 + $0x130] sm:$0xff]  ;;  %v319_v54 = vld [vmem:[%s7641_s5 + $0x1d8] sm:$0xff] }
  0x21   :  { %4124 = vmatpush1.bf16.msk.msra.mxu0 %vm4806_vm2, %v4122_v6  ;;  %v320_v60 = vld [vmem:[%s7641_s5 + $0x1e0] sm:$0xff]  ;;  %v79_v6 = vsub.s32 1, %v4943_v2  ;;  %v4199_v44 = vpack.c.bf16 %v298_v41, %v294_v40  ;;  %v302_v46 = vld [vmem:[%s7641_s5 + $0x150] sm:$0xff]  ;;  %v1686_v35 = vld [vmem:[%s7645_s9 + $0x58] sm:$0xff]  ;;  %v336_v40 = vsub.s32 2, %v4943_v2 }
  0x22   :  { %4150 = vmatprep.subr.bf16.mxu0 %v4149_v7  ;;  %4145 = vmatpush3.bf16.msra.mxu1 %v4144_v23  ;;  %v4179_v61 = vpack.c.bf16 %v320_v60, %v316_v59  ;;  %v71_v5 = vld [vmem:[%s7643_s2] sm:$0x3]  ;;  %v306_v47 = vld [vmem:[%s7641_s5 + $0x170] sm:$0xff] }
  0x23   :  { %4146 = vmatprep.subr.bf16.mxu1 %v4611_v8  ;;  %v76_v7 = vrot.slane %v71_v5, %v75_v4  ;;  %v80_v9 = vrot.slane %v71_v5, %v79_v6  ;;  %v4203_v50 = vpack.c.bf16 %v306_v47, %v302_v46  ;;  %v314_v53 = vld [vmem:[%s7641_s5 + $0x1b0] sm:$0xff]  ;;  %v5122_v22 = vld [vmem:[%s7646_s7 + $0xc0] sm:$0xff] }
  0x24   :  { %3554 = vmatmul.mubr.msk.f32.vlgmr.msra.gmra.mrb[0].mxu0 %vm83_vm3, %v38_v16  ;;  %v322_v59 = vld [vmem:[%s7641_s5 + $0x1f0] sm:$0xff]  ;;  %v1683_v29 = vld [vmem:[%s7645_s9 + $0x40] sm:$0xff] }
  0x25   :  { %4152 = vmatpush1.bf16.msra.mxu0 %v4151_v17  ;;  %410 = vmatprep.mubr.f32.mxu0 %v4610_v3  ;;  %v1677_v14 = vld [vmem:[%s7645_s9 + $0x10] sm:$0xff]  ;;  %v1687_v41 = vld [vmem:[%s7645_s9 + $0x60] sm:$0xff] }
  0x26   :  { %4154 = vmatprep.subr.bf16.mxu0 %v4153_v18  ;;  %4148 = vmatpush3.bf16.msra.mxu1 %v4147_v55  ;;  %v4183_v18 = vpack.c.bf16 %v266_v11, %v262_v10  ;;  %v323_v55 = vld [vmem:[%s7641_s5 + $0x1f8] sm:$0xff]  ;;  %v1675_v10 = vld [vmem:[%s7645_s9] sm:$0xff]  ;;  %v1676_v11 = vld [vmem:[%s7645_s9 + $0x8] sm:$0xff] }
  0x27   :  { %4182 = vmatprep.subr.bf16.mxu1 %v4181_v0  ;;  %v4209_v57 = vpack.c.bf16 %v323_v55, %v319_v54  ;;  %v4214_v13 = vpack.c.bf16 %v1676_v11, %v1675_v10  ;;  %v5117_v21 = vld [vmem:[%s7646_s7 + $0x10] sm:$0xff]  ;;  %v1690_v54 = vld [vmem:[%s7645_s9 + $0x78] sm:$0xff]  ;;  %v1695_v11 = vld [vmem:[%s7645_s9 + $0xa0] sm:$0xff] }
  0x28   :  { %v1685_v34 = vld [vmem:[%s7645_s9 + $0x50] sm:$0xff] }
  0x29   :  { %4156 = vmatpush1.bf16.msra.mxu0 %v4155_v24  ;;  %v279_v24 = vld [vmem:[%s7641_s5 + $0x98] sm:$0xff] }
  0x2a   :  { %4158 = vmatprep.subr.bf16.mxu0 %v4157_v25  ;;  %v283_v25 = vld [vmem:[%s7641_s5 + $0xb8] sm:$0xff] }
  0x2b   :  { %v4189_v27 = vpack.c.bf16 %v283_v25, %v279_v24  ;;  %v1681_v24 = vld [vmem:[%s7645_s9 + $0x30] sm:$0xff]  ;;  %v1682_v25 = vld [vmem:[%s7645_s9 + $0x38] sm:$0xff] }
  0x2c   :  { %v4223_v28 = vpack.c.bf16 %v1682_v25, %v1681_v24  ;;  %v1699_v25 = vld [vmem:[%s7645_s9 + $0xc0] sm:$0xff] }
  0x2d   :  { %4160 = vmatpush1.bf16.msra.mxu0 %v4159_v30  ;;  %v287_v30 = vld [vmem:[%s7641_s5 + $0xd8] sm:$0xff] }
  0x2e   :  { %4162 = vmatprep.subr.bf16.mxu0 %v4161_v31  ;;  %v291_v31 = vld [vmem:[%s7641_s5 + $0xf8] sm:$0xff] }
  0x2f   :  { %v4193_v33 = vpack.c.bf16 %v291_v31, %v287_v30  ;;  %v1684_v30 = vld [vmem:[%s7645_s9 + $0x48] sm:$0xff]  ;;  %v5163_v31 = vld [vmem:[%s7646_s7 + $0x20] sm:$0xff] }
  0x31   :  { %4164 = vmatpush1.bf16.msra.mxu0 %v4163_v36  ;;  %v295_v36 = vld [vmem:[%s7641_s5 + $0x118] sm:$0xff] }
  0x32   :  { %4166 = vmatprep.subr.bf16.mxu0 %v4165_v37  ;;  %v299_v37 = vld [vmem:[%s7641_s5 + $0x138] sm:$0xff] }
  0x33   :  { %v4197_v39 = vpack.c.bf16 %v299_v37, %v295_v36  ;;  %v5186_v36 = vld [vmem:[%s7646_s7 + $0x28] sm:$0xff]  ;;  %v5191_v37 = vld [vmem:[%s7646_s7 + $0xd8] sm:$0xff] }
  0x35   :  { %4168 = vmatpush1.bf16.msra.mxu0 %v4167_v42  ;;  %v303_v42 = vld [vmem:[%s7641_s5 + $0x158] sm:$0xff] }
  0x36   :  { %4170 = vmatprep.subr.bf16.mxu0 %v4169_v43  ;;  %v307_v43 = vld [vmem:[%s7641_s5 + $0x178] sm:$0xff] }
  0x37   :  { %v4201_v45 = vpack.c.bf16 %v307_v43, %v303_v42  ;;  %v1688_v42 = vld [vmem:[%s7645_s9 + $0x68] sm:$0xff]  ;;  %v5211_v43 = vld [vmem:[%s7646_s7 + $0x30] sm:$0xff] }
  0x39   :  { %4172 = vmatpush1.bf16.msra.mxu0 %v4171_v48  ;;  %v311_v48 = vld [vmem:[%s7641_s5 + $0x198] sm:$0xff] }
  0x3a   :  { %4174 = vmatprep.subr.bf16.mxu0 %v4173_v49  ;;  %v315_v49 = vld [vmem:[%s7641_s5 + $0x1b8] sm:$0xff] }
  0x3b   :  { %v4205_v51 = vpack.c.bf16 %v315_v49, %v311_v48  ;;  %v5230_v48 = vld [vmem:[%s7646_s7 + $0x38] sm:$0xff]  ;;  %v5235_v49 = vld [vmem:[%s7646_s7 + $0xe8] sm:$0xff] }
  0x3d   :  { %4176 = vmatpush1.bf16.msra.mxu0 %v4175_v52  ;;  %v310_v52 = vld [vmem:[%s7641_s5 + $0x190] sm:$0xff] }
  0x3e   :  { %4178 = vmatprep.subr.bf16.mxu0 %v4177_v58  ;;  %v4207_v56 = vpack.c.bf16 %v314_v53, %v310_v52  ;;  %v318_v58 = vld [vmem:[%s7641_s5 + $0x1d0] sm:$0xff] }
  0x3f   :  { %v4211_v60 = vpack.c.bf16 %v322_v59, %v318_v58  ;;  %v1689_v53 = vld [vmem:[%s7645_s9 + $0x70] sm:$0xff] }
  0x40   :  { %v5263_v58 = vld [vmem:[%s7646_s7 + $0xf0] sm:$0xff]  ;;  %v4235_v59 = vpack.c.bf16 %v1690_v54, %v1689_v53  ;;  %v5476_v54 = vld [vmem:[%s7646_s7 + $0x140] sm:$0xff] }
  0x41   :  { %4180 = vmatpush1.bf16.msra.mxu0 %v4179_v61  ;;  %v5053_v61 = vld [vmem:[%s7644_s6] sm:$0xf]  ;;  %v5471_v53 = vld [vmem:[%s7646_s7 + $0x90] sm:$0xff] }
  0x42   :  { %v333_v62 = vrot.slane %v5053_v61, %v79_v6  ;;  %v329_v0 = vrot.slane %v5053_v61, %v75_v4  ;;  %v5072_v6 = vld [vmem:[%s7646_s7] sm:$0xff]  ;;  %v5077_v4 = vld [vmem:[%s7646_s7 + $0xb0] sm:$0xff]  ;;  %v337_v46 = vrot.slane %v5053_v61, %v336_v40 }
  0xf7   :  { %v160_v12 = vpop.f32.mrb[0].mxu0 }
  0xf8   :  { %v161_v15 = vadd.f32 %v160_v12, %v76_v7  ;;  %v162_v16 = vpop.f32.mrb[1].mxu0 }
  0xf9   :  { %v4966_v17 = vadd.f32 %v162_v16, %v80_v9  ;;  %v5094_v16 = vld [vmem:[%s7646_s7 + $0x8] sm:$0xff] }
  0xfa   :  { %v165_v19 = vmax.f32 %v161_v15, 0.0  ;;  %v1678_v15 = vld [vmem:[%s7645_s9 + $0x18] sm:$0xff] }
  0xfb   :  { %v166_v23 = vmax.f32 %v4966_v17, 0.0  ;;  %v5099_v17 = vld [vmem:[%s7646_s7 + $0xb8] sm:$0xff] }
  0xfc   :  { %3929 = vmatmul.mubr.f32.vlgmr.msra.gmra.mrb[0].mxu1 %v165_v19  ;;  %v1679_v19 = vld [vmem:[%s7645_s9 + $0x20] sm:$0xff] }
  0xfd   :  { %4184 = vmatpush1.bf16.msra.mxu1 %v4183_v18  ;;  %411 = vmatmul.mubr.f32.vlgmr.msra.gmra.mrb[2].mxu0 %v166_v23  ;;  %v4217_v18 = vpack.c.bf16 %v1678_v15, %v1677_v14  ;;  %v5334_v14 = vld [vmem:[%s7646_s7 + $0x108] sm:$0xff] }
  0xfe   :  { %4186 = vmatprep.subr.bf16.mxu1 %v4185_v20  ;;  %481 = vmatprep.mubr.f32.mxu1 %v4610_v3  ;;  %v1680_v20 = vld [vmem:[%s7645_s9 + $0x28] sm:$0xff] }
  0xff   :  { %729 = vmatprep.mubr.f32.mxu0 %v4610_v3 }
 0x101   :  { %4188 = vmatpush1.bf16.msra.mxu1 %v4187_v26  ;;  %v5140_v26 = vld [vmem:[%s7646_s7 + $0x18] sm:$0xff] }
 0x102   :  { %4190 = vmatprep.subr.bf16.mxu1 %v4189_v27  ;;  %v5145_v27 = vld [vmem:[%s7646_s7 + $0xc8] sm:$0xff] }
 0x105   :  { %4192 = vmatpush1.bf16.msra.mxu1 %v4191_v32  ;;  %v5168_v32 = vld [vmem:[%s7646_s7 + $0xd0] sm:$0xff] }
 0x106   :  { %4194 = vmatprep.subr.bf16.mxu1 %v4193_v33  ;;  %v4226_v33 = vpack.c.bf16 %v1684_v30, %v1683_v29  ;;  %v5375_v29 = vld [vmem:[%s7646_s7 + $0x68] sm:$0xff]  ;;  %v5380_v30 = vld [vmem:[%s7646_s7 + $0x118] sm:$0xff] }
 0x109   :  { %4196 = vmatpush1.bf16.msra.mxu1 %v4195_v38  ;;  %v340_v38 = vsub.s32 3, %v4943_v2  ;;  %v5216_v2 = vld [vmem:[%s7646_s7 + $0xe0] sm:$0xff] }
 0x10a   :  { %4198 = vmatprep.subr.bf16.mxu1 %v4197_v39  ;;  %v4229_v39 = vpack.c.bf16 %v1686_v35, %v1685_v34  ;;  %v1701_v34 = vld [vmem:[%s7645_s9 + $0xd0] sm:$0xff]  ;;  %v1702_v35 = vld [vmem:[%s7645_s9 + $0xd8] sm:$0xff] }
 0x10b   :  { %v4253_v40 = vpack.c.bf16 %v1702_v35, %v1701_v34 }
 0x10d   :  { %4200 = vmatpush1.bf16.msra.mxu1 %v4199_v44  ;;  %v341_v44 = vrot.slane %v5053_v61, %v340_v38  ;;  %v1692_v61 = vld [vmem:[%s7645_s9 + $0x88] sm:$0xff]  ;;  %v5398_v38 = vld [vmem:[%s7646_s7 + $0x70] sm:$0xff] }
 0x10e   :  { %4202 = vmatprep.subr.bf16.mxu1 %v4201_v45  ;;  %v4232_v45 = vpack.c.bf16 %v1688_v42, %v1687_v41  ;;  %v1703_v41 = vld [vmem:[%s7645_s9 + $0xe0] sm:$0xff]  ;;  %v1704_v42 = vld [vmem:[%s7645_s9 + $0xe8] sm:$0xff] }
 0x111   :  { %4204 = vmatpush1.bf16.msra.mxu1 %v4203_v50  ;;  %v3555_v50 = vld [vmem:[%s7647_s4] ss:$0 sm:$0xff] }
 0x112   :  { %4206 = vmatprep.subr.bf16.mxu1 %v4205_v51 }
 0x115   :  { %4208 = vmatpush1.bf16.msra.mxu1 %v4207_v56 }
 0x116   :  { %4210 = vmatprep.subr.bf16.mxu1 %v4209_v57  ;;  %v5258_v57 = vld [vmem:[%s7646_s7 + $0x40] sm:$0xff] }
 0x119   :  { %4212 = vmatpush1.bf16.msra.mxu1 %v4211_v60  ;;  %v1691_v60 = vld [vmem:[%s7645_s9 + $0x80] sm:$0xff] }
 0x11c   :  { %482 = vmatmul.mubr.f32.vlgmr.msra.gmra.mrb[2].mxu1 %v166_v23  ;;  %v4220_v23 = vpack.c.bf16 %v1680_v20, %v1679_v19  ;;  %v1698_v19 = vld [vmem:[%s7645_s9 + $0xb8] sm:$0xff]  ;;  %v5352_v20 = vld [vmem:[%s7646_s7 + $0x60] sm:$0xff] }
 0x11d   :  { %861 = vmatprep.mubr.f32.mxu1 %v4610_v3 }
 0x1cf   :  { %v5058_v63 = vpop.f32.mrb[0].mxu1 }
 0x1d0   :  { %v3930_v1 = vpop.f32.mrb[1].mxu1  ;;  %v412_v5 = vpop.f32.mrb[2].mxu0  ;;  %v5252_v56 = vadd.f32 %v3555_v50, %v5058_v63  ;;  %v5288_v63 = vld [vmem:[%s7646_s7 + $0xf8] sm:$0xff]  ;;  %v5443_v50 = vld [vmem:[%s7646_s7 + $0x130] sm:$0xff] }
 0x1d1   :  { %v414_v7 = vpop.f32.mrb[3].mxu0  ;;  %v413_v12 = vadd.f32 %v412_v5, %v329_v0  ;;  %v4238_v0 = vpack.c.bf16 %v1692_v61, %v1691_v60  ;;  %v1693_v1 = vld [vmem:[%s7645_s9 + $0x90] sm:$0xff]  ;;  %v1694_v5 = vld [vmem:[%s7645_s9 + $0x98] sm:$0xff]  ;;  %v5503_v60 = vld [vmem:[%s7646_s7 + $0xa0] sm:$0xff] }
 0x1d2   :  { %v415_v9 = vadd.f32 %v414_v7, %v333_v62  ;;  %v5283_v62 = vld [vmem:[%s7646_s7 + $0x48] sm:$0xff]  ;;  %v5306_v7 = vld [vmem:[%s7646_s7 + $0x50] sm:$0xff]  ;;  %v4241_v10 = vpack.c.bf16 %v1694_v5, %v1693_v1  ;;  %v5524_v1 = vld [vmem:[%s7646_s7 + $0x158] sm:$0xff] }
 0x1d3   :  { %v5508_v61 = vld [vmem:[%s7646_s7 + $0x150] sm:$0xff] }
 0x1d4   :  { %665 = vmatprep.subr.mxu0 %v415_v9  ;;  %4318 = vmatprep.subr.mxu1 %v415_v9  ;;  %v5311_v9 = vld [vmem:[%s7646_s7 + $0x100] sm:$0xff]  ;;  %v1705_v5 = vld [vmem:[%s7645_s9 + $0xf0] sm:$0xff] }
 0x1d5   :  { %666 = vmatpush1.msra.mxu0 %v413_v12  ;;  %4319 = vmatpush1.msra.mxu1 %v413_v12  ;;  %v1696_v12 = vld [vmem:[%s7645_s9 + $0xa8] sm:$0xff] }
 0x1d6   :  { %3556 = vmatmul.mubr.msk.f32.vlgmr.msra.gmra.mrb[4].mxu0 %vm532_vm5, %v5072_v6  ;;  %3578 = vmatmul.mubr.msk.f32.vlgmr.msra.gmra.mrb[4].mxu1 %vm532_vm5, %v5077_v4  ;;  %v4244_v15 = vpack.c.bf16 %v1696_v12, %v1695_v11 }
 0x1d7   :  { %735 = vmatprep.mubr.f32.mxu0 %v4610_v3  ;;  %867 = vmatprep.mubr.f32.mxu1 %v4610_v3 }
 0x1d8   :  { %4213 = vmatprep.subr.bf16.mxu0 %v4611_v8 }
 0x1d9   :  { %4215 = vmatpush1.bf16.msra.mxu0 %v4214_v13  ;;  %v5329_v13 = vld [vmem:[%s7646_s7 + $0x58] sm:$0xff] }
 0x1da   :  { %3557 = vmatmul.mubr.msk.f32.gmra.mrb[6].mxu0 %vm532_vm5, %v5094_v16  ;;  %3579 = vmatmul.mubr.msk.f32.gmra.mrb[6].mxu1 %vm532_vm5, %v5099_v17 }
 0x1db   :  { %741 = vmatprep.mubr.f32.mxu0 %v4610_v3  ;;  %873 = vmatprep.mubr.f32.mxu1 %v4610_v3 }
 0x1dc   :  { %4216 = vmatprep.subr.bf16.mxu0 %v4611_v8 }
 0x1dd   :  { %4218 = vmatpush1.bf16.msra.mxu0 %v4217_v18  ;;  %v1697_v18 = vld [vmem:[%s7645_s9 + $0xb0] sm:$0xff] }
 0x1de   :  { %3558 = vmatmul.mubr.msk.f32.gmra.mrb[8].mxu0 %vm532_vm5, %v5117_v21  ;;  %3580 = vmatmul.mubr.msk.f32.gmra.mrb[8].mxu1 %vm532_vm5, %v5122_v22  ;;  %v4247_v24 = vpack.c.bf16 %v1698_v19, %v1697_v18  ;;  %v1709_v18 = vld [vmem:[%s7645_s9 + $0x110] sm:$0xff]  ;;  %v1710_v19 = vld [vmem:[%s7645_s9 + $0x118] sm:$0xff] }
 0x1df   :  { %747 = vmatprep.mubr.f32.mxu0 %v4610_v3  ;;  %879 = vmatprep.mubr.f32.mxu1 %v4610_v3  ;;  %v4265_v35 = vpack.c.bf16 %v1710_v19, %v1709_v18 }
 0x1e0   :  { %4219 = vmatprep.subr.bf16.mxu0 %v4611_v8 }
 0x1e1   :  { %4221 = vmatpush1.bf16.msra.mxu0 %v4220_v23  ;;  %v5357_v23 = vld [vmem:[%s7646_s7 + $0x110] sm:$0xff] }
 0x1e2   :  { %3559 = vmatmul.mubr.msk.f32.gmra.mrb[10].mxu0 %vm532_vm5, %v5140_v26  ;;  %3581 = vmatmul.mubr.msk.f32.gmra.mrb[10].mxu1 %vm532_vm5, %v5145_v27 }
 0x1e3   :  { %753 = vmatprep.mubr.f32.mxu0 %v4610_v3  ;;  %885 = vmatprep.mubr.f32.mxu1 %v4610_v3 }
 0x1e4   :  { %4222 = vmatprep.subr.bf16.mxu0 %v4611_v8 }
 0x1e5   :  { %4224 = vmatpush1.bf16.msra.mxu0 %v4223_v28  ;;  %v1700_v28 = vld [vmem:[%s7645_s9 + $0xc8] sm:$0xff] }
 0x1e6   :  { %3560 = vmatmul.mubr.msk.f32.gmra.mrb[12].mxu0 %vm532_vm5, %v5163_v31  ;;  %3582 = vmatmul.mubr.msk.f32.gmra.mrb[12].mxu1 %vm532_vm5, %v5168_v32 }
 0x1e7   :  { %759 = vmatprep.mubr.f32.mxu0 %v4610_v3  ;;  %891 = vmatprep.mubr.f32.mxu1 %v4610_v3 }
 0x1e8   :  { %4225 = vmatprep.subr.bf16.mxu0 %v4611_v8 }
 0x1e9   :  { %4227 = vmatpush1.bf16.msra.mxu0 %v4226_v33  ;;  %v4250_v33 = vpack.c.bf16 %v1700_v28, %v1699_v25 }
 0x1ea   :  { %3561 = vmatmul.mubr.msk.f32.gmra.mrb[14].mxu0 %vm532_vm5, %v5186_v36  ;;  %3583 = vmatmul.mubr.msk.f32.gmra.mrb[14].mxu1 %vm532_vm5, %v5191_v37 }
 0x1eb   :  { %765 = vmatprep.mubr.f32.mxu0 %v4610_v3  ;;  %897 = vmatprep.mubr.f32.mxu1 %v4610_v3 }
 0x1ec   :  { %4228 = vmatprep.subr.bf16.mxu0 %v4611_v8 }
 0x1ed   :  { %4230 = vmatpush1.bf16.msra.mxu0 %v4229_v39  ;;  %v5403_v39 = vld [vmem:[%s7646_s7 + $0x120] sm:$0xff] }
 0x1ee   :  { %3562 = vmatmul.mubr.msk.f32.gmra.mrb[16].mxu0 %vm532_vm5, %v5211_v43  ;;  %3584 = vmatmul.mubr.msk.f32.gmra.mrb[16].mxu1 %vm532_vm5, %v5216_v2 }
 0x1ef   :  { %v483_v47 = vpop.f32.mrb[2].mxu1  ;;  %771 = vmatprep.mubr.f32.mxu0 %v4610_v3  ;;  %903 = vmatprep.mubr.f32.mxu1 %v4610_v3 }
 0x1f0   :  { %v485_v51 = vpop.f32.mrb[3].mxu1  ;;  %4231 = vmatprep.subr.bf16.mxu0 %v4611_v8  ;;  %v484_v55 = vadd.f32 %v483_v47, %v337_v46  ;;  %v4256_v46 = vpack.c.bf16 %v1704_v42, %v1703_v41  ;;  %v5438_v47 = vld [vmem:[%s7646_s7 + $0x80] sm:$0xff]  ;;  %v1332_v41 = vld [vmem:[%s7648_s8 + $0x48] sm:$0xff] }
 0x1f1   :  { %v486_v52 = vadd.f32 %v485_v51, %v341_v44  ;;  %4233 = vmatpush1.bf16.msra.mxu0 %v4232_v45  ;;  %v5421_v44 = vld [vmem:[%s7646_s7 + $0x78] sm:$0xff]  ;;  %v5426_v45 = vld [vmem:[%s7646_s7 + $0x128] sm:$0xff]  ;;  %v1711_v42 = vld [vmem:[%s7645_s9 + $0x120] sm:$0xff] }
 0x1f2   :  { %3563 = vmatmul.mubr.msk.f32.gmra.mrb[18].mxu0 %vm532_vm5, %v5230_v48  ;;  %3585 = vmatmul.mubr.msk.f32.gmra.mrb[18].mxu1 %vm532_vm5, %v5235_v49  ;;  %v5455_v51 = vld [vmem:[%s7646_s7 + $0x88] sm:$0xff] }
 0x1f3   :  { %994 = vmatprep.subr.mxu1 %v486_v52  ;;  %777 = vmatprep.mubr.f32.mxu0 %v4610_v3  ;;  %v5460_v52 = vld [vmem:[%s7646_s7 + $0x138] sm:$0xff] }
 0x1f4   :  { %995 = vmatpush1.msra.mxu1 %v484_v55  ;;  %909 = vmatprep.mubr.f32.mxu1 %v4610_v3  ;;  %v5487_v55 = vld [vmem:[%s7646_s7 + $0x98] sm:$0xff] }
 0x1f5   :  { %3931 = vmatprep.subr.mxu1 %v5252_v56  ;;  %4234 = vmatprep.subr.bf16.mxu0 %v4611_v8 }
 0x1f6   :  { %3564 = vmatmul.mubr.msk.f32.gmra.mrb[20].mxu0 %vm532_vm5, %v5258_v57  ;;  %3586 = vmatmul.mubr.msk.f32.gmra.mrb[20].mxu1 %vm532_vm5, %v5263_v58 }
 0x1f7   :  { %783 = vmatprep.mubr.f32.mxu0 %v4610_v3  ;;  %915 = vmatprep.mubr.f32.mxu1 %v4610_v3 }
 0x1f8   :  { %4236 = vmatpush1.bf16.msra.mxu0 %v4235_v59  ;;  %v5492_v59 = vld [vmem:[%s7646_s7 + $0x148] sm:$0xff] }
 0x1f9   :  { %4237 = vmatprep.subr.bf16.mxu0 %v4611_v8 }
 0x1fa   :  { %3565 = vmatmul.mubr.msk.f32.gmra.mrb[22].mxu0 %vm532_vm5, %v5283_v62  ;;  %3587 = vmatmul.mubr.msk.f32.gmra.mrb[22].mxu1 %vm532_vm5, %v5288_v63 }
 0x1fb   :  { %789 = vmatprep.mubr.f32.mxu0 %v4610_v3  ;;  %921 = vmatprep.mubr.f32.mxu1 %v4610_v3 }
 0x1fc   :  { %4239 = vmatpush1.bf16.msra.mxu0 %v4238_v0  ;;  %v5519_v0 = vld [vmem:[%s7646_s7 + $0xa8] sm:$0xff] }
 0x1fd   :  { %4240 = vmatprep.subr.bf16.mxu0 %v4611_v8 }
 0x1fe   :  { %3566 = vmatmul.mubr.msk.f32.gmra.mrb[24].mxu0 %vm532_vm5, %v5306_v7  ;;  %3588 = vmatmul.mubr.msk.f32.gmra.mrb[24].mxu1 %vm532_vm5, %v5311_v9 }
 0x1ff   :  { %795 = vmatprep.mubr.f32.mxu0 %v4610_v3  ;;  %927 = vmatprep.mubr.f32.mxu1 %v4610_v3 }
 0x200   :  { %4242 = vmatpush1.bf16.msra.mxu0 %v4241_v10  ;;  %v1706_v10 = vld [vmem:[%s7645_s9 + $0xf8] sm:$0xff] }
 0x201   :  { %4243 = vmatprep.subr.bf16.mxu0 %v4611_v8  ;;  %v4259_v11 = vpack.c.bf16 %v1706_v10, %v1705_v5  ;;  %v1331_v5 = vld [vmem:[%s7648_s8 + $0x40] sm:$0xff] }
 0x202   :  { %3567 = vmatmul.mubr.msk.f32.gmra.mrb[26].mxu0 %vm532_vm5, %v5329_v13  ;;  %3589 = vmatmul.mubr.msk.f32.gmra.mrb[26].mxu1 %vm532_vm5, %v5334_v14 }
 0x203   :  { %801 = vmatprep.mubr.f32.mxu0 %v4610_v3  ;;  %933 = vmatprep.mubr.f32.mxu1 %v4610_v3 }
 0x204   :  { %4245 = vmatpush1.bf16.msra.mxu0 %v4244_v15  ;;  %v1328_v15 = vld [vmem:[%s7648_s8 + $0x28] sm:$0xff] }
 0x205   :  { %4246 = vmatprep.subr.bf16.mxu0 %v4611_v8 }
 0x206   :  { %3568 = vmatmul.mubr.msk.f32.gmra.mrb[28].mxu0 %vm532_vm5, %v5352_v20  ;;  %3590 = vmatmul.mubr.msk.f32.gmra.mrb[28].mxu1 %vm532_vm5, %v5357_v23 }
 0x207   :  { %807 = vmatprep.mubr.f32.mxu0 %v4610_v3  ;;  %939 = vmatprep.mubr.f32.mxu1 %v4610_v3 }
 0x208   :  { %4248 = vmatpush1.bf16.msra.mxu0 %v4247_v24 }
 0x209   :  { %4249 = vmatprep.subr.bf16.mxu0 %v4611_v8 }
 0x20a   :  { %3569 = vmatmul.mubr.msk.f32.gmra.mrb[30].mxu0 %vm532_vm5, %v5375_v29  ;;  %3591 = vmatmul.mubr.msk.f32.gmra.mrb[30].mxu1 %vm532_vm5, %v5380_v30 }
 0x20b   :  { %813 = vmatprep.mubr.f32.mxu0 %v4610_v3  ;;  %945 = vmatprep.mubr.f32.mxu1 %v4610_v3 }
 0x20c   :  { %4251 = vmatpush1.bf16.msra.mxu0 %v4250_v33 }
 0x20d   :  { %4252 = vmatprep.subr.bf16.mxu0 %v4611_v8 }
 0x20e   :  { %3570 = vmatmul.mubr.msk.f32.gmra.mrb[32].mxu0 %vm532_vm5, %v5398_v38  ;;  %3592 = vmatmul.mubr.msk.f32.gmra.mrb[32].mxu1 %vm532_vm5, %v5403_v39 }
 0x20f   :  { %819 = vmatprep.mubr.f32.mxu0 %v4610_v3  ;;  %951 = vmatprep.mubr.f32.mxu1 %v4610_v3 }
 0x210   :  { %4254 = vmatpush1.bf16.msra.mxu0 %v4253_v40 }
 0x211   :  { %4255 = vmatprep.subr.bf16.mxu0 %v4611_v8 }
 0x212   :  { %3571 = vmatmul.mubr.msk.f32.gmra.mrb[34].mxu0 %vm532_vm5, %v5421_v44  ;;  %3593 = vmatmul.mubr.msk.f32.gmra.mrb[34].mxu1 %vm532_vm5, %v5426_v45 }
 0x213   :  { %825 = vmatprep.mubr.f32.mxu0 %v4610_v3  ;;  %957 = vmatprep.mubr.f32.mxu1 %v4610_v3 }
 0x214   :  { %4257 = vmatpush1.bf16.msra.mxu0 %v4256_v46 }
 0x215   :  { %4258 = vmatprep.subr.bf16.mxu0 %v4611_v8 }
 0x216   :  { %3572 = vmatmul.mubr.msk.f32.gmra.mrb[36].mxu0 %vm532_vm5, %v5438_v47  ;;  %3594 = vmatmul.mubr.msk.f32.gmra.mrb[36].mxu1 %vm532_vm5, %v5443_v50 }
 0x217   :  { %831 = vmatprep.mubr.f32.mxu0 %v4610_v3  ;;  %963 = vmatprep.mubr.f32.mxu1 %v4610_v3 }
 0x218   :  { %4260 = vmatpush1.bf16.msra.mxu0 %v4259_v11 }
 0x219   :  { %4261 = vmatprep.subr.bf16.mxu0 %v4611_v8 }
 0x21a   :  { %3573 = vmatmul.mubr.msk.f32.gmra.mrb[38].mxu0 %vm532_vm5, %v5455_v51  ;;  %3595 = vmatmul.mubr.msk.f32.gmra.mrb[38].mxu1 %vm532_vm5, %v5460_v52 }
 0x21b   :  { %837 = vmatprep.mubr.f32.mxu0 %v4610_v3  ;;  %969 = vmatprep.mubr.f32.mxu1 %v4610_v3 }
 0x21e   :  { %3574 = vmatmul.mubr.msk.f32.gmra.mrb[40].mxu0 %vm532_vm5, %v5471_v53  ;;  %3596 = vmatmul.mubr.msk.f32.gmra.mrb[40].mxu1 %vm532_vm5, %v5476_v54 }
 0x21f   :  { %843 = vmatprep.mubr.f32.mxu0 %v4610_v3  ;;  %975 = vmatprep.mubr.f32.mxu1 %v4610_v3 }
 0x222   :  { %3575 = vmatmul.mubr.msk.f32.gmra.mrb[42].mxu0 %vm532_vm5, %v5487_v55  ;;  %3597 = vmatmul.mubr.msk.f32.gmra.mrb[42].mxu1 %vm532_vm5, %v5492_v59 }
 0x223   :  { %849 = vmatprep.mubr.f32.mxu0 %v4610_v3  ;;  %981 = vmatprep.mubr.f32.mxu1 %v4610_v3 }
 0x226   :  { %3576 = vmatmul.mubr.msk.f32.gmra.mrb[44].mxu0 %vm532_vm5, %v5503_v60  ;;  %3598 = vmatmul.mubr.msk.f32.gmra.mrb[44].mxu1 %vm532_vm5, %v5508_v61 }
 0x227   :  { %855 = vmatprep.mubr.f32.mxu0 %v4610_v3  ;;  %987 = vmatprep.mubr.f32.mxu1 %v4610_v3 }
 0x22a   :  { %3577 = vmatmul.mubr.msk.f32.gmra.mrb[46].mxu0 %vm532_vm5, %v5519_v0  ;;  %3599 = vmatmul.mubr.msk.f32.gmra.mrb[46].mxu1 %vm532_vm5, %v5524_v1 }
 0x22b   :  { %1058 = vmatprep.mubr.f32.mxu1 %v4610_v3 }
 0x22e   :  { %3600 = vmatmul.mubr.msk.f32.vlgmr.msra.gmra.mrb[48].mxu1 %vm532_vm5, %v5072_v6 }
 0x22f   :  { %3932 = vmatpush3.msra.mxu1 %v5252_v56  ;;  %1064 = vmatprep.mubr.f32.mxu1 %v4610_v3 }
 0x232   :  { %3601 = vmatmul.mubr.msk.f32.gmra.mrb[50].mxu1 %vm532_vm5, %v5094_v16 }
 0x233   :  { %1070 = vmatprep.mubr.f32.mxu1 %v4610_v3 }
 0x236   :  { %3602 = vmatmul.mubr.msk.f32.gmra.mrb[52].mxu1 %vm532_vm5, %v5117_v21 }
 0x237   :  { %1076 = vmatprep.mubr.f32.mxu1 %v4610_v3 }
 0x23a   :  { %3603 = vmatmul.mubr.msk.f32.gmra.mrb[54].mxu1 %vm532_vm5, %v5140_v26 }
 0x23b   :  { %1082 = vmatprep.mubr.f32.mxu1 %v4610_v3 }
 0x23e   :  { %3604 = vmatmul.mubr.msk.f32.gmra.mrb[56].mxu1 %vm532_vm5, %v5163_v31 }
 0x23f   :  { %1088 = vmatprep.mubr.f32.mxu1 %v4610_v3 }
 0x242   :  { %3605 = vmatmul.mubr.msk.f32.gmra.mrb[58].mxu1 %vm532_vm5, %v5186_v36 }
 0x243   :  { %1094 = vmatprep.mubr.f32.mxu1 %v4610_v3 }
 0x246   :  { %3606 = vmatmul.mubr.msk.f32.gmra.mrb[60].mxu1 %vm532_vm5, %v5211_v43 }
 0x247   :  { %1100 = vmatprep.mubr.f32.mxu1 %v4610_v3 }
 0x24a   :  { %3607 = vmatmul.mubr.msk.f32.gmra.mrb[62].mxu1 %vm532_vm5, %v5230_v48 }
 0x24b   :  { %1106 = vmatprep.mubr.f32.mxu1 %v4610_v3 }
 0x24e   :  { %3608 = vmatmul.mubr.msk.f32.gmra.mrb[64].mxu1 %vm532_vm5, %v5258_v57 }
 0x24f   :  { %1112 = vmatprep.mubr.f32.mxu1 %v4610_v3 }
 0x252   :  { %3609 = vmatmul.mubr.msk.f32.gmra.mrb[66].mxu1 %vm532_vm5, %v5283_v62 }
 0x253   :  { %1118 = vmatprep.mubr.f32.mxu1 %v4610_v3 }
 0x256   :  { %3610 = vmatmul.mubr.msk.f32.gmra.mrb[68].mxu1 %vm532_vm5, %v5306_v7 }
 0x257   :  { %1124 = vmatprep.mubr.f32.mxu1 %v4610_v3 }
 0x25a   :  { %3611 = vmatmul.mubr.msk.f32.gmra.mrb[70].mxu1 %vm532_vm5, %v5329_v13 }
 0x25b   :  { %1130 = vmatprep.mubr.f32.mxu1 %v4610_v3 }
 0x25e   :  { %3612 = vmatmul.mubr.msk.f32.gmra.mrb[72].mxu1 %vm532_vm5, %v5352_v20 }
 0x25f   :  { %1136 = vmatprep.mubr.f32.mxu1 %v4610_v3 }
 0x262   :  { %3613 = vmatmul.mubr.msk.f32.gmra.mrb[74].mxu1 %vm532_vm5, %v5375_v29 }
 0x263   :  { %1142 = vmatprep.mubr.f32.mxu1 %v4610_v3 }
 0x266   :  { %3614 = vmatmul.mubr.msk.f32.gmra.mrb[76].mxu1 %vm532_vm5, %v5398_v38 }
 0x267   :  { %1148 = vmatprep.mubr.f32.mxu1 %v4610_v3 }
 0x26a   :  { %3615 = vmatmul.mubr.msk.f32.gmra.mrb[78].mxu1 %vm532_vm5, %v5421_v44 }
 0x26b   :  { %1154 = vmatprep.mubr.f32.mxu1 %v4610_v3 }
 0x26e   :  { %3616 = vmatmul.mubr.msk.f32.gmra.mrb[80].mxu1 %vm532_vm5, %v5438_v47 }
 0x26f   :  { %1160 = vmatprep.mubr.f32.mxu1 %v4610_v3 }
 0x272   :  { %3617 = vmatmul.mubr.msk.f32.gmra.mrb[82].mxu1 %vm532_vm5, %v5455_v51 }
 0x273   :  { %1166 = vmatprep.mubr.f32.mxu1 %v4610_v3 }
 0x276   :  { %3618 = vmatmul.mubr.msk.f32.gmra.mrb[84].mxu1 %vm532_vm5, %v5471_v53 }
 0x277   :  { %1172 = vmatprep.mubr.f32.mxu1 %v4610_v3 }
 0x27a   :  { %3619 = vmatmul.mubr.msk.f32.gmra.mrb[86].mxu1 %vm532_vm5, %v5487_v55 }
 0x27b   :  { %1178 = vmatprep.mubr.f32.mxu1 %v4610_v3 }
 0x27e   :  { %3620 = vmatmul.mubr.msk.f32.gmra.mrb[88].mxu1 %vm532_vm5, %v5503_v60 }
 0x27f   :  { %1184 = vmatprep.mubr.f32.mxu1 %v4610_v3 }
 0x282   :  { %3621 = vmatmul.mubr.msk.f32.gmra.mrb[90].mxu1 %vm532_vm5, %v5519_v0 }
 0x283   :  { %1190 = vmatprep.mubr.f32.mxu1 %v4610_v3 }
 0x286   :  { %3622 = vmatmul.mubr.msk.f32.gmra.mrb[92].mxu1 %vm532_vm5, %v5077_v4  ;;  %v1324_v4 = vld [vmem:[%s7648_s8 + $0x8] sm:$0xff] }
 0x287   :  { %1196 = vmatprep.mubr.f32.mxu1 %v4610_v3 }
 0x28a   :  { %3623 = vmatmul.mubr.msk.f32.gmra.mrb[94].mxu1 %vm532_vm5, %v5099_v17  ;;  %v1707_v17 = vld [vmem:[%s7645_s9 + $0x100] sm:$0xff] }
 0x28b   :  { %1202 = vmatprep.mubr.f32.mxu1 %v4610_v3 }
 0x28e   :  { %3624 = vmatmul.mubr.msk.f32.gmra.mrb[96].mxu1 %vm532_vm5, %v5122_v22  ;;  %v1708_v22 = vld [vmem:[%s7645_s9 + $0x108] sm:$0xff] }
 0x28f   :  { %1208 = vmatprep.mubr.f32.mxu1 %v4610_v3 }
 0x292   :  { %3625 = vmatmul.mubr.msk.f32.gmra.mrb[98].mxu1 %vm532_vm5, %v5145_v27 }
 0x293   :  { %1214 = vmatprep.mubr.f32.mxu1 %v4610_v3 }
 0x296   :  { %3626 = vmatmul.mubr.msk.f32.gmra.mrb[100].mxu1 %vm532_vm5, %v5168_v32  ;;  %v1323_v32 = vld [vmem:[%s7648_s8] sm:$0xff] }
 0x297   :  { %1220 = vmatprep.mubr.f32.mxu1 %v4610_v3 }
 0x29a   :  { %3627 = vmatmul.mubr.msk.f32.gmra.mrb[102].mxu1 %vm532_vm5, %v5191_v37 }
 0x29b   :  { %1226 = vmatprep.mubr.f32.mxu1 %v4610_v3 }
 0x29e   :  { %3628 = vmatmul.mubr.msk.f32.gmra.mrb[104].mxu1 %vm532_vm5, %v5216_v2 }
 0x29f   :  { %1232 = vmatprep.mubr.f32.mxu1 %v4610_v3 }
 0x2a2   :  { %3629 = vmatmul.mubr.msk.f32.gmra.mrb[106].mxu1 %vm532_vm5, %v5235_v49 }
 0x2a3   :  { %1238 = vmatprep.mubr.f32.mxu1 %v4610_v3 }
 0x2a6   :  { %3630 = vmatmul.mubr.msk.f32.gmra.mrb[108].mxu1 %vm532_vm5, %v5263_v58  ;;  %v4262_v58 = vpack.c.bf16 %v1708_v22, %v1707_v17 }
 0x2a7   :  { %1244 = vmatprep.mubr.f32.mxu1 %v4610_v3 }
 0x2a9   :  { %v731_v27 = vpop.f32.mrb[4].mxu0  ;;  %v5644_v37 = vpop.f32.mrb[4].mxu1 }
 0x2aa   :  { %v733_v2 = vpop.f32.mrb[5].mxu0  ;;  %v5646_v49 = vpop.f32.mrb[5].mxu1  ;;  %3631 = vmatmul.mubr.msk.f32.gmra.mrb[110].mxu1 %vm532_vm5, %v5288_v63  ;;  %v1499_v12 = vmul.f32 %v1323_v32, %v731_v27  ;;  %v1327_v63 = vld [vmem:[%s7648_s8 + $0x20] sm:$0xff]  ;;  %v1336_v32 = vld [vmem:[%s7648_s8 + $0x68] sm:$0xff] }
 0x2ab   :  { %v1500_v56 = vmul.f32 %v1324_v4, %v733_v2  ;;  %1250 = vmatprep.mubr.f32.mxu1 %v4610_v3  ;;  %v1713_v2 = vld [vmem:[%s7645_s9 + $0x130] sm:$0xff] }
 0x2ad   :  { %v737_v24 = vpop.f32.mrb[6].mxu0  ;;  %1927 = vmatprep.mubr.f32.mxu0 %v1500_v56  ;;  %v5663_v25 = vpop.f32.mrb[6].mxu1 }
 0x2ae   :  { %v739_v28 = vpop.f32.mrb[7].mxu0  ;;  %1928 = vmatmul.mubr.f32.vlgmr.msra.gmra.mrb[48].mxu0 %v1499_v12  ;;  %v5665_v33 = vpop.f32.mrb[7].mxu1  ;;  %3632 = vmatmul.mubr.msk.f32.gmra.mrb[112].mxu1 %vm532_vm5, %v5311_v9  ;;  %v1503_v40 = vmul.f32 %v1327_v63, %v737_v24  ;;  %v1712_v9 = vld [vmem:[%s7645_s9 + $0x128] sm:$0xff] }
 0x2af   :  { %v1504_v34 = vmul.f32 %v1328_v15, %v739_v28  ;;  %4263 = vmatpush1.bf16.msra.mxu0 %v4262_v58  ;;  %1256 = vmatprep.mubr.f32.mxu1 %v4610_v3  ;;  %v4268_v22 = vpack.c.bf16 %v1712_v9, %v1711_v42  ;;  %v1335_v58 = vld [vmem:[%s7648_s8 + $0x60] sm:$0xff]  ;;  %v1340_v28 = vld [vmem:[%s7648_s8 + $0x88] sm:$0xff] }
 0x2b0   :  { %4264 = vmatprep.subr.bf16.mxu0 %v4611_v8 }
 0x2b1   :  { %v743_v46 = vpop.f32.mrb[8].mxu0  ;;  %1932 = vmatprep.mubr.f32.mxu0 %v1504_v34  ;;  %v5683_v10 = vpop.f32.mrb[8].mxu1  ;;  %v1715_v34 = vld [vmem:[%s7645_s9 + $0x140] sm:$0xff] }
 0x2b2   :  { %v745_v11 = vpop.f32.mrb[9].mxu0  ;;  %1933 = vmatmul.mubr.f32.gmra.mrb[50].mxu0 %v1503_v40  ;;  %v5685_v4 = vpop.f32.mrb[9].mxu1  ;;  %3633 = vmatmul.mubr.msk.f32.gmra.mrb[114].mxu1 %vm532_vm5, %v5334_v14  ;;  %v1507_v27 = vmul.f32 %v1331_v5, %v743_v46  ;;  %v1714_v14 = vld [vmem:[%s7645_s9 + $0x138] sm:$0xff]  ;;  %v1339_v40 = vld [vmem:[%s7648_s8 + $0x80] sm:$0xff] }
 0x2b3   :  { %v1508_v17 = vmul.f32 %v1332_v41, %v745_v11  ;;  %4266 = vmatpush1.bf16.msra.mxu0 %v4265_v35  ;;  %1262 = vmatprep.mubr.f32.mxu1 %v4610_v3  ;;  %v4271_v24 = vpack.c.bf16 %v1714_v14, %v1713_v2 }
 0x2b4   :  { %4267 = vmatprep.subr.bf16.mxu0 %v4611_v8 }
 0x2b5   :  { %v749_v56 = vpop.f32.mrb[10].mxu0  ;;  %1937 = vmatprep.mubr.f32.mxu0 %v1508_v17  ;;  %v5703_v12 = vpop.f32.mrb[10].mxu1  ;;  %v1344_v17 = vld [vmem:[%s7648_s8 + $0xa8] sm:$0xff] }
 0x2b6   :  { %v751_v15 = vpop.f32.mrb[11].mxu0  ;;  %1938 = vmatmul.mubr.f32.gmra.mrb[52].mxu0 %v1507_v27  ;;  %v5705_v18 = vpop.f32.mrb[11].mxu1  ;;  %3634 = vmatmul.mubr.msk.f32.gmra.mrb[116].mxu1 %vm532_vm5, %v5357_v23  ;;  %v1511_v63 = vmul.f32 %v1335_v58, %v749_v56  ;;  %v1716_v23 = vld [vmem:[%s7645_s9 + $0x148] sm:$0xff] }
 0x2b7   :  { %v1512_v19 = vmul.f32 %v1336_v32, %v751_v15  ;;  %4269 = vmatpush1.bf16.msra.mxu0 %v4268_v22  ;;  %1268 = vmatprep.mubr.f32.mxu1 %v4610_v3  ;;  %v4274_v5 = vpack.c.bf16 %v1716_v23, %v1715_v34  ;;  %v1717_v22 = vld [vmem:[%s7645_s9 + $0x150] sm:$0xff]  ;;  %v1343_v32 = vld [vmem:[%s7648_s8 + $0xa0] sm:$0xff] }
 0x2b8   :  { %4270 = vmatprep.subr.bf16.mxu0 %v4611_v8  ;;  %v1347_v34 = vld [vmem:[%s7648_s8 + $0xc0] sm:$0xff] }
 0x2b9   :  { %v755_v35 = vpop.f32.mrb[12].mxu0  ;;  %1942 = vmatprep.mubr.f32.mxu0 %v1512_v19  ;;  %v5723_v41 = vpop.f32.mrb[12].mxu1 }
 0x2ba   :  { %v757_v42 = vpop.f32.mrb[13].mxu0  ;;  %1943 = vmatmul.mubr.f32.gmra.mrb[54].mxu0 %v1511_v63  ;;  %v5725_v9 = vpop.f32.mrb[13].mxu1  ;;  %3635 = vmatmul.mubr.msk.f32.gmra.mrb[118].mxu1 %vm532_vm5, %v5380_v30  ;;  %v1515_v11 = vmul.f32 %v1339_v40, %v755_v35  ;;  %v1718_v30 = vld [vmem:[%s7645_s9 + $0x158] sm:$0xff]  ;;  %v1719_v63 = vld [vmem:[%s7645_s9 + $0x160] sm:$0xff] }
 0x2bb   :  { %v1516_v46 = vmul.f32 %v1340_v28, %v757_v42  ;;  %4272 = vmatpush1.bf16.msra.mxu0 %v4271_v24  ;;  %1274 = vmatprep.mubr.f32.mxu1 %v4610_v3  ;;  %v4277_v15 = vpack.c.bf16 %v1718_v30, %v1717_v22  ;;  %v1348_v24 = vld [vmem:[%s7648_s8 + $0xc8] sm:$0xff]  ;;  %v1351_v30 = vld [vmem:[%s7648_s8 + $0xe0] sm:$0xff] }
 0x2bc   :  { %4273 = vmatprep.subr.bf16.mxu0 %v4611_v8 }
 0x2bd   :  { %v761_v27 = vpop.f32.mrb[14].mxu0  ;;  %1947 = vmatprep.mubr.f32.mxu0 %v1516_v46  ;;  %v5743_v2 = vpop.f32.mrb[14].mxu1 }
 0x2be   :  { %v763_v14 = vpop.f32.mrb[15].mxu0  ;;  %1948 = vmatmul.mubr.f32.gmra.mrb[56].mxu0 %v1515_v11  ;;  %v5745_v56 = vpop.f32.mrb[15].mxu1  ;;  %3636 = vmatmul.mubr.msk.f32.gmra.mrb[120].mxu1 %vm532_vm5, %v5403_v39  ;;  %v1519_v19 = vmul.f32 %v1343_v32, %v761_v27  ;;  %v1720_v39 = vld [vmem:[%s7645_s9 + $0x168] sm:$0xff] }
 0x2bf   :  { %v1520_v58 = vmul.f32 %v1344_v17, %v763_v14  ;;  %4275 = vmatpush1.bf16.msra.mxu0 %v4274_v5  ;;  %1280 = vmatprep.mubr.f32.mxu1 %v4610_v3  ;;  %v4280_v46 = vpack.c.bf16 %v1720_v39, %v1719_v63  ;;  %v1352_v11 = vld [vmem:[%s7648_s8 + $0xe8] sm:$0xff]  ;;  %v1721_v17 = vld [vmem:[%s7645_s9 + $0x170] sm:$0xff]  ;;  %v1723_v63 = vld [vmem:[%s7645_s9 + $0x180] sm:$0xff] }
 0x2c0   :  { %4276 = vmatprep.subr.bf16.mxu0 %v4611_v8 }
 0x2c1   :  { %v767_v28 = vpop.f32.mrb[16].mxu0  ;;  %1952 = vmatprep.mubr.f32.mxu0 %v1520_v58  ;;  %v5763_v23 = vpop.f32.mrb[16].mxu1 }
 0x2c2   :  { %v769_v35 = vpop.f32.mrb[17].mxu0  ;;  %1953 = vmatmul.mubr.f32.gmra.mrb[58].mxu0 %v1519_v19  ;;  %v5765_v40 = vpop.f32.mrb[17].mxu1  ;;  %3637 = vmatmul.mubr.msk.f32.gmra.mrb[122].mxu1 %vm532_vm5, %v5426_v45  ;;  %v1523_v5 = vmul.f32 %v1347_v34, %v767_v28  ;;  %v1722_v45 = vld [vmem:[%s7645_s9 + $0x178] sm:$0xff]  ;;  %v1355_v28 = vld [vmem:[%s7648_s8 + $0x100] sm:$0xff] }
 0x2c3   :  { %v1524_v42 = vmul.f32 %v1348_v24, %v769_v35  ;;  %4278 = vmatpush1.bf16.msra.mxu0 %v4277_v15  ;;  %1286 = vmatprep.mubr.f32.mxu1 %v4610_v3  ;;  %v4283_v15 = vpack.c.bf16 %v1722_v45, %v1721_v17  ;;  %v1356_v24 = vld [vmem:[%s7648_s8 + $0x108] sm:$0xff]  ;;  %v1725_v45 = vld [vmem:[%s7645_s9 + $0x190] sm:$0xff] }
 0x2c4   :  { %4279 = vmatprep.subr.bf16.mxu0 %v4611_v8  ;;  %v1360_v17 = vld [vmem:[%s7648_s8 + $0x128] sm:$0xff] }
 0x2c5   :  { %v773_v22 = vpop.f32.mrb[18].mxu0  ;;  %1957 = vmatprep.mubr.f32.mxu0 %v1524_v42  ;;  %v5783_v27 = vpop.f32.mrb[18].mxu1 }
 0x2c6   :  { %v775_v32 = vpop.f32.mrb[19].mxu0  ;;  %1958 = vmatmul.mubr.f32.gmra.mrb[60].mxu0 %v1523_v5  ;;  %v5785_v14 = vpop.f32.mrb[19].mxu1  ;;  %3638 = vmatmul.mubr.msk.f32.gmra.mrb[124].mxu1 %vm532_vm5, %v5443_v50  ;;  %v1527_v19 = vmul.f32 %v1351_v30, %v773_v22  ;;  %v1724_v50 = vld [vmem:[%s7645_s9 + $0x188] sm:$0xff]  ;;  %v1359_v30 = vld [vmem:[%s7648_s8 + $0x120] sm:$0xff] }
 0x2c7   :  { %v1528_v58 = vmul.f32 %v1352_v11, %v775_v32  ;;  %4281 = vmatpush1.bf16.msra.mxu0 %v4280_v46  ;;  %1292 = vmatprep.mubr.f32.mxu1 %v4610_v3  ;;  %v4286_v5 = vpack.c.bf16 %v1724_v50, %v1723_v63  ;;  %v1364_v50 = vld [vmem:[%s7648_s8 + $0x148] sm:$0xff] }
 0x2c8   :  { %4282 = vmatprep.subr.bf16.mxu0 %v4611_v8 }
 0x2c9   :  { %v779_v39 = vpop.f32.mrb[20].mxu0  ;;  %1962 = vmatprep.mubr.f32.mxu0 %v1528_v58  ;;  %v5803_v34 = vpop.f32.mrb[20].mxu1 }
 0x2ca   :  { %v781_v35 = vpop.f32.mrb[21].mxu0  ;;  %1963 = vmatmul.mubr.f32.gmra.mrb[62].mxu0 %v1527_v19  ;;  %v5805_v42 = vpop.f32.mrb[21].mxu1  ;;  %3639 = vmatmul.mubr.msk.f32.gmra.mrb[126].mxu1 %vm532_vm5, %v5460_v52  ;;  %v1531_v11 = vmul.f32 %v1355_v28, %v779_v39  ;;  %v1726_v52 = vld [vmem:[%s7645_s9 + $0x198] sm:$0xff]  ;;  %v1727_v39 = vld [vmem:[%s7645_s9 + $0x1a0] sm:$0xff] }
 0x2cb   :  { %v1532_v46 = vmul.f32 %v1356_v24, %v781_v35  ;;  %4284 = vmatpush1.bf16.msra.mxu0 %v4283_v15  ;;  %1298 = vmatprep.mubr.f32.mxu1 %v4610_v3  ;;  %v4289_v24 = vpack.c.bf16 %v1726_v52, %v1725_v45  ;;  %v1363_v35 = vld [vmem:[%s7648_s8 + $0x140] sm:$0xff] }
 0x2cc   :  { %4285 = vmatprep.subr.bf16.mxu0 %v4611_v8 }
 0x2cd   :  { %v785_v22 = vpop.f32.mrb[22].mxu0  ;;  %1967 = vmatprep.mubr.f32.mxu0 %v1532_v46  ;;  %v5823_v32 = vpop.f32.mrb[22].mxu1 }
 0x2ce   :  { %v787_v58 = vpop.f32.mrb[23].mxu0  ;;  %1968 = vmatmul.mubr.f32.gmra.mrb[64].mxu0 %v1531_v11  ;;  %v5825_v15 = vpop.f32.mrb[23].mxu1  ;;  %3640 = vmatmul.mubr.msk.f32.gmra.mrb[128].mxu1 %vm532_vm5, %v5476_v54  ;;  %v1535_v63 = vmul.f32 %v1359_v30, %v785_v22  ;;  %v1728_v54 = vld [vmem:[%s7645_s9 + $0x1a8] sm:$0xff] }
 0x2cf   :  { %v1536_v19 = vmul.f32 %v1360_v17, %v787_v58  ;;  %4287 = vmatpush1.bf16.msra.mxu0 %v4286_v5  ;;  %1304 = vmatprep.mubr.f32.mxu1 %v4610_v3  ;;  %v4292_v45 = vpack.c.bf16 %v1728_v54, %v1727_v39  ;;  %v1368_v22 = vld [vmem:[%s7648_s8 + $0x168] sm:$0xff]  ;;  %v1367_v58 = vld [vmem:[%s7648_s8 + $0x160] sm:$0xff]  ;;  %v1729_v39 = vld [vmem:[%s7645_s9 + $0x1b0] sm:$0xff] }
 0x2d0   :  { %4288 = vmatprep.subr.bf16.mxu0 %v4611_v8 }
 0x2d1   :  { %v791_v28 = vpop.f32.mrb[24].mxu0  ;;  %1972 = vmatprep.mubr.f32.mxu0 %v1536_v19  ;;  %v5843_v46 = vpop.f32.mrb[24].mxu1 }
 0x2d2   :  { %v793_v5 = vpop.f32.mrb[25].mxu0  ;;  %1973 = vmatmul.mubr.f32.gmra.mrb[66].mxu0 %v1535_v63  ;;  %v5845_v11 = vpop.f32.mrb[25].mxu1  ;;  %3641 = vmatmul.mubr.msk.f32.gmra.mrb[130].mxu1 %vm532_vm5, %v5492_v59  ;;  %v1539_v52 = vmul.f32 %v1363_v35, %v791_v28 }
 0x2d3   :  { %v1540_v17 = vmul.f32 %v1364_v50, %v793_v5  ;;  %1310 = vmatprep.mubr.f32.mxu1 %v4610_v3  ;;  %4290 = vmatpush1.bf16.msra.mxu0 %v4289_v24  ;;  %v1372_v50 = vld [vmem:[%s7648_s8 + $0x188] sm:$0xff] }
 0x2d4   :  { %4291 = vmatprep.subr.bf16.mxu0 %v4611_v8 }
 0x2d5   :  { %v797_v30 = vpop.f32.mrb[26].mxu0  ;;  %1977 = vmatprep.mubr.f32.mxu0 %v1540_v17  ;;  %v5857_v19 = vpop.f32.mrb[26].mxu1 }
 0x2d6   :  { %v799_v59 = vpop.f32.mrb[27].mxu0  ;;  %1978 = vmatmul.mubr.f32.gmra.mrb[68].mxu0 %v1539_v52  ;;  %v5859_v63 = vpop.f32.mrb[27].mxu1  ;;  %3642 = vmatmul.mubr.msk.f32.gmra.mrb[132].mxu1 %vm532_vm5, %v5508_v61  ;;  %v1543_v8 = vmul.f32 %v1367_v58, %v797_v30  ;;  %v1371_v61 = vld [vmem:[%s7648_s8 + $0x180] sm:$0xff] }
 0x2d7   :  { %v1544_v24 = vmul.f32 %v1368_v22, %v799_v59  ;;  %1316 = vmatprep.mubr.f32.mxu1 %v4610_v3  ;;  %4293 = vmatpush1.bf16.msra.mxu0 %v4292_v45  ;;  %v1376_v45 = vld [vmem:[%s7648_s8 + $0x1a8] sm:$0xff]  ;;  %v1375_v22 = vld [vmem:[%s7648_s8 + $0x1a0] sm:$0xff] }
 0x2d8   :  { %2192 = vmatprep.subr.mxu0 %v4610_v3 }
 0x2d9   :  { %v803_v54 = vpop.f32.mrb[28].mxu0  ;;  %1982 = vmatprep.mubr.f32.mxu0 %v1544_v24  ;;  %v5874_v28 = vpop.f32.mrb[28].mxu1  ;;  %v1380_v24 = vld [vmem:[%s7648_s8 + $0x1c8] sm:$0xff] }
 0x2da   :  { %v805_v35 = vpop.f32.mrb[29].mxu0  ;;  %1983 = vmatmul.mubr.f32.gmra.mrb[70].mxu0 %v1543_v8  ;;  %v5876_v5 = vpop.f32.mrb[29].mxu1  ;;  %3643 = vmatmul.mubr.msk.f32.gmra.mrb[134].mxu1 %vm532_vm5, %v5524_v1  ;;  %v1547_v17 = vmul.f32 %v1371_v61, %v803_v54 }
 0x2db   :  { %v1548_v3 = vmul.f32 %v1372_v50, %v805_v35  ;;  %2193 = vmatpush1.msra.mxu0 %v1729_v39  ;;  %3933 = vmatprep.mubr.msk.f32.mxu1 %vm532_vm5, %v5072_v6  ;;  %v1379_v50 = vld [vmem:[%s7648_s8 + $0x1c0] sm:$0xff]  ;;  %v1384_v35 = vld [vmem:[%s7648_s8 + $0x1e8] sm:$0xff] }
 0x2dd   :  { %v809_v52 = vpop.f32.mrb[30].mxu0  ;;  %1987 = vmatprep.mubr.f32.mxu0 %v1548_v3  ;;  %v5888_v30 = vpop.f32.mrb[30].mxu1 }
 0x2de   :  { %v811_v58 = vpop.f32.mrb[31].mxu0  ;;  %1988 = vmatmul.mubr.f32.gmra.mrb[72].mxu0 %v1547_v17  ;;  %v5890_v1 = vpop.f32.mrb[31].mxu1  ;;  %3934 = vmatmul.mubr.msk.f32.vlgmr.msra.gmra.mrb[136].mxu1 %vm532_vm5, %v5094_v16  ;;  %v1551_v59 = vmul.f32 %v1375_v22, %v809_v52  ;;  %v1383_v17 = vld [vmem:[%s7648_s8 + $0x1e0] sm:$0xff] }
 0x2df   :  { %v1552_v6 = vmul.f32 %v1376_v45, %v811_v58  ;;  %3936 = vmatprep.mubr.msk.f32.mxu1 %vm532_vm5, %v5117_v21  ;;  %v1388_v58 = vld [vmem:[%s7648_s8 + $0x208] sm:$0xff] }
 0x2e1   :  { %v815_v8 = vpop.f32.mrb[32].mxu0  ;;  %1992 = vmatprep.mubr.f32.mxu0 %v1552_v6  ;;  %v5902_v39 = vpop.f32.mrb[32].mxu1 }
 0x2e2   :  { %v817_v54 = vpop.f32.mrb[33].mxu0  ;;  %1993 = vmatmul.mubr.f32.gmra.mrb[74].mxu0 %v1551_v59  ;;  %v5904_v16 = vpop.f32.mrb[33].mxu1  ;;  %3937 = vmatmul.mubr.msk.f32.gmra.mrb[138].mxu1 %vm532_vm5, %v5140_v26  ;;  %v1555_v61 = vmul.f32 %v1379_v50, %v815_v8  ;;  %v1387_v59 = vld [vmem:[%s7648_s8 + $0x200] sm:$0xff] }
 0x2e3   :  { %v1556_v21 = vmul.f32 %v1380_v24, %v817_v54  ;;  %3939 = vmatprep.mubr.msk.f32.mxu1 %vm532_vm5, %v5163_v31  ;;  %v1392_v54 = vld [vmem:[%s7648_s8 + $0x228] sm:$0xff] }
 0x2e5   :  { %v821_v3 = vpop.f32.mrb[34].mxu0  ;;  %1997 = vmatprep.mubr.f32.mxu0 %v1556_v21  ;;  %v5916_v45 = vpop.f32.mrb[34].mxu1 }
 0x2e6   :  { %v823_v52 = vpop.f32.mrb[35].mxu0  ;;  %1998 = vmatmul.mubr.f32.gmra.mrb[76].mxu0 %v1555_v61  ;;  %v5918_v26 = vpop.f32.mrb[35].mxu1  ;;  %3940 = vmatmul.mubr.msk.f32.gmra.mrb[140].mxu1 %vm532_vm5, %v5186_v36  ;;  %v1559_v22 = vmul.f32 %v1383_v17, %v821_v3  ;;  %v1391_v61 = vld [vmem:[%s7648_s8 + $0x220] sm:$0xff] }
 0x2e7   :  { %v1560_v31 = vmul.f32 %v1384_v35, %v823_v52  ;;  %3942 = vmatprep.mubr.msk.f32.mxu1 %vm532_vm5, %v5211_v43  ;;  %v1396_v52 = vld [vmem:[%s7648_s8 + $0x248] sm:$0xff] }
 0x2e9   :  { %v827_v6 = vpop.f32.mrb[36].mxu0  ;;  %2002 = vmatprep.mubr.f32.mxu0 %v1560_v31  ;;  %v5930_v24 = vpop.f32.mrb[36].mxu1 }
 0x2ea   :  { %v829_v8 = vpop.f32.mrb[37].mxu0  ;;  %2003 = vmatmul.mubr.f32.gmra.mrb[78].mxu0 %v1559_v22  ;;  %v5932_v36 = vpop.f32.mrb[37].mxu1  ;;  %3943 = vmatmul.mubr.msk.f32.gmra.mrb[142].mxu1 %vm532_vm5, %v5230_v48  ;;  %v1563_v50 = vmul.f32 %v1387_v59, %v827_v6  ;;  %v1395_v22 = vld [vmem:[%s7648_s8 + $0x240] sm:$0xff] }
 0x2eb   :  { %v1564_v43 = vmul.f32 %v1388_v58, %v829_v8  ;;  %3945 = vmatprep.mubr.msk.f32.mxu1 %vm532_vm5, %v5258_v57  ;;  %v1400_v8 = vld [vmem:[%s7648_s8 + $0x268] sm:$0xff] }
 0x2ed   :  { %v833_v21 = vpop.f32.mrb[38].mxu0  ;;  %2007 = vmatprep.mubr.f32.mxu0 %v1564_v43  ;;  %v5944_v35 = vpop.f32.mrb[38].mxu1 }
 0x2ee   :  { %v835_v3 = vpop.f32.mrb[39].mxu0  ;;  %2008 = vmatmul.mubr.f32.gmra.mrb[80].mxu0 %v1563_v50  ;;  %v5946_v48 = vpop.f32.mrb[39].mxu1  ;;  %3946 = vmatmul.mubr.msk.f32.gmra.mrb[144].mxu1 %vm532_vm5, %v5283_v62  ;;  %v1567_v17 = vmul.f32 %v1391_v61, %v833_v21  ;;  %v1399_v50 = vld [vmem:[%s7648_s8 + $0x260] sm:$0xff] }
 0x2ef   :  { %v1568_v57 = vmul.f32 %v1392_v54, %v835_v3  ;;  %3948 = vmatprep.mubr.msk.f32.mxu1 %vm532_vm5, %v5306_v7  ;;  %v1404_v3 = vld [vmem:[%s7648_s8 + $0x288] sm:$0xff] }
 0x2f1   :  { %v839_v31 = vpop.f32.mrb[40].mxu0  ;;  %2012 = vmatprep.mubr.f32.mxu0 %v1568_v57  ;;  %v5958_v58 = vpop.f32.mrb[40].mxu1 }
 0x2f2   :  { %v841_v6 = vpop.f32.mrb[41].mxu0  ;;  %2013 = vmatmul.mubr.f32.gmra.mrb[82].mxu0 %v1567_v17  ;;  %v5960_v62 = vpop.f32.mrb[41].mxu1  ;;  %3949 = vmatmul.mubr.msk.f32.gmra.mrb[146].mxu1 %vm532_vm5, %v5329_v13  ;;  %v1571_v59 = vmul.f32 %v1395_v22, %v839_v31  ;;  %v1403_v17 = vld [vmem:[%s7648_s8 + $0x280] sm:$0xff] }
 0x2f3   :  { %v1572_v7 = vmul.f32 %v1396_v52, %v841_v6  ;;  %3951 = vmatprep.mubr.msk.f32.mxu1 %vm532_vm5, %v5352_v20  ;;  %v1408_v6 = vld [vmem:[%s7648_s8 + $0x2a8] sm:$0xff] }
 0x2f5   :  { %v845_v43 = vpop.f32.mrb[42].mxu0  ;;  %2017 = vmatprep.mubr.f32.mxu0 %v1572_v7  ;;  %v5972_v54 = vpop.f32.mrb[42].mxu1  ;;  %v1412_v7 = vld [vmem:[%s7648_s8 + $0x2c8] sm:$0xff] }
 0x2f6   :  { %v847_v21 = vpop.f32.mrb[43].mxu0  ;;  %2018 = vmatmul.mubr.f32.gmra.mrb[84].mxu0 %v1571_v59  ;;  %v5974_v13 = vpop.f32.mrb[43].mxu1  ;;  %3952 = vmatmul.mubr.msk.f32.gmra.mrb[148].mxu1 %vm532_vm5, %v5375_v29  ;;  %v1575_v61 = vmul.f32 %v1399_v50, %v845_v43 }
 0x2f7   :  { %v1576_v20 = vmul.f32 %v1400_v8, %v847_v21  ;;  %3954 = vmatprep.mubr.msk.f32.mxu1 %vm532_vm5, %v5398_v38  ;;  %v1407_v8 = vld [vmem:[%s7648_s8 + $0x2a0] sm:$0xff]  ;;  %v1588_v21 = vmul.f32 %v1412_v7, %v5646_v49  ;;  %v4589_v7 = vld [vmem:[%s7646_s7 + $0xb8] sm:$0xff] }
 0x2f9   :  { %v851_v57 = vpop.f32.mrb[44].mxu0  ;;  %2022 = vmatprep.mubr.f32.mxu0 %v1576_v20  ;;  %v5986_v52 = vpop.f32.mrb[44].mxu1 }
 0x2fa   :  { %v853_v31 = vpop.f32.mrb[45].mxu0  ;;  %2023 = vmatmul.mubr.f32.gmra.mrb[86].mxu0 %v1575_v61  ;;  %v5988_v29 = vpop.f32.mrb[45].mxu1  ;;  %3955 = vmatmul.mubr.msk.f32.gmra.mrb[150].mxu1 %vm532_vm5, %v5421_v44  ;;  %v1579_v22 = vmul.f32 %v1403_v17, %v851_v57  ;;  %v1416_v61 = vld [vmem:[%s7648_s8 + $0x2e8] sm:$0xff] }
 0x2fb   :  { %v1580_v38 = vmul.f32 %v1404_v3, %v853_v31  ;;  %3957 = vmatprep.mubr.msk.f32.mxu1 %vm532_vm5, %v5438_v47  ;;  %v1411_v3 = vld [vmem:[%s7648_s8 + $0x2c0] sm:$0xff]  ;;  %v1420_v17 = vld [vmem:[%s7648_s8 + $0x308] sm:$0xff] }
 0x2fc   :  { %v1587_v49 = vmul.f32 %v1411_v3, %v5644_v37  ;;  %v1415_v31 = vld [vmem:[%s7648_s8 + $0x2e0] sm:$0xff]  ;;  %v4588_v37 = vld [vmem:[%s7646_s7 + $0xb0] sm:$0xff] }
 0x2fd   :  { %v857_v59 = vpop.f32.mrb[46].mxu0  ;;  %2027 = vmatprep.mubr.f32.mxu0 %v1580_v38  ;;  %v6003_v44 = vpop.f32.mrb[46].mxu1 }
 0x2fe   :  { %v859_v43 = vpop.f32.mrb[47].mxu0  ;;  %2028 = vmatmul.mubr.f32.gmra.mrb[88].mxu0 %v1579_v22  ;;  %v6005_v47 = vpop.f32.mrb[47].mxu1  ;;  %3958 = vmatmul.mubr.msk.f32.gmra.mrb[152].mxu1 %vm532_vm5, %v5455_v51  ;;  %v1583_v20 = vmul.f32 %v1407_v8, %v857_v59  ;;  %v1424_v22 = vld [vmem:[%s7648_s8 + $0x328] sm:$0xff]  ;;  %v4590_v59 = vld [vmem:[%s7646_s7 + $0xc0] sm:$0xff] }
 0x2ff   :  { %v1584_v50 = vmul.f32 %v1408_v6, %v859_v43  ;;  %3960 = vmatprep.mubr.msk.f32.mxu1 %vm532_vm5, %v5471_v53  ;;  %v1592_v53 = vmul.f32 %v1416_v61, %v5665_v33  ;;  %v1591_v33 = vmul.f32 %v1415_v31, %v5663_v25  ;;  %v1419_v6 = vld [vmem:[%s7648_s8 + $0x300] sm:$0xff]  ;;  %v1600_v25 = vmul.f32 %v1424_v22, %v5705_v18  ;;  %v1428_v43 = vld [vmem:[%s7648_s8 + $0x348] sm:$0xff]  ;;  %v4592_v61 = vld [vmem:[%s7646_s7 + $0xd0] sm:$0xff] }
 0x300   :  { %v1595_v8 = vmul.f32 %v1419_v6, %v5683_v10  ;;  %v1604_v10 = vmul.f32 %v1428_v43, %v5725_v9  ;;  %v4593_v31 = vld [vmem:[%s7646_s7 + $0xd8] sm:$0xff]  ;;  %v1431_v22 = vld [vmem:[%s7648_s8 + $0x360] sm:$0xff] }
 0x301   :  { %2032 = vmatprep.mubr.f32.mxu0 %v1584_v50  ;;  %v6018_v57 = vpop.f32.mrb[48].mxu1  ;;  %v1423_v50 = vld [vmem:[%s7648_s8 + $0x320] sm:$0xff] }
 0x302   :  { %2033 = vmatmul.mubr.f32.gmra.mrb[90].mxu0 %v1583_v20  ;;  %v6020_v51 = vpop.f32.mrb[49].mxu1  ;;  %3961 = vmatmul.mubr.msk.f32.gmra.mrb[154].mxu1 %vm532_vm5, %v5487_v55  ;;  %v4591_v20 = vld [vmem:[%s7646_s7 + $0xc8] sm:$0xff]  ;;  %v1599_v3 = vmul.f32 %v1423_v50, %v5703_v12  ;;  %v1435_v43 = vld [vmem:[%s7648_s8 + $0x380] sm:$0xff] }
 0x303   :  { %2037 = vmatprep.mubr.f32.mxu0 %v1588_v21  ;;  %3963 = vmatprep.mubr.msk.f32.mxu1 %vm532_vm5, %v5503_v60  ;;  %v1596_v60 = vmul.f32 %v1420_v17, %v5685_v4 }
 0x305   :  { %v6034_v38 = vpop.f32.mrb[50].mxu1 }
 0x306   :  { %2038 = vmatmul.mubr.f32.gmra.mrb[92].mxu0 %v1587_v49  ;;  %v6036_v55 = vpop.f32.mrb[51].mxu1  ;;  %3964 = vmatmul.mubr.msk.f32.gmra.mrb[156].mxu1 %vm532_vm5, %v5519_v0  ;;  %v1427_v49 = vld [vmem:[%s7648_s8 + $0x340] sm:$0xff] }
 0x307   :  { %2042 = vmatprep.mubr.f32.mxu0 %v1592_v53  ;;  %3966 = vmatprep.mubr.msk.f32.mxu1 %vm532_vm5, %v4588_v37  ;;  %v1432_v53 = vld [vmem:[%s7648_s8 + $0x368] sm:$0xff]  ;;  %v1603_v37 = vmul.f32 %v1427_v49, %v5723_v41 }
 0x308   :  { %v1608_v12 = vmul.f32 %v1432_v53, %v5745_v56  ;;  %v1439_v53 = vld [vmem:[%s7648_s8 + $0x3a0] sm:$0xff] }
 0x309   :  { %v6052_v0 = vpop.f32.mrb[52].mxu1 }
 0x30a   :  { %2043 = vmatmul.mubr.f32.gmra.mrb[94].mxu0 %v1591_v33  ;;  %v6054_v4 = vpop.f32.mrb[53].mxu1  ;;  %3967 = vmatmul.mubr.msk.f32.gmra.mrb[158].mxu1 %vm532_vm5, %v4589_v7  ;;  %v1436_v33 = vld [vmem:[%s7648_s8 + $0x388] sm:$0xff] }
 0x30b   :  { %2047 = vmatprep.mubr.f32.mxu0 %v1596_v60  ;;  %3969 = vmatprep.mubr.msk.f32.mxu1 %vm532_vm5, %v4590_v59  ;;  %v4594_v60 = vld [vmem:[%s7646_s7 + $0xe0] sm:$0xff]  ;;  %v4595_v7 = vld [vmem:[%s7646_s7 + $0xe8] sm:$0xff]  ;;  %v1612_v41 = vmul.f32 %v1436_v33, %v5765_v40  ;;  %v1607_v59 = vmul.f32 %v1431_v22, %v5743_v2 }
 0x30c   :  { %v1443_v33 = vld [vmem:[%s7648_s8 + $0x3c0] sm:$0xff] }
 0x30d   :  { %v6072_v21 = vpop.f32.mrb[54].mxu1 }
 0x30e   :  { %2048 = vmatmul.mubr.f32.gmra.mrb[96].mxu0 %v1595_v8  ;;  %v6074_v18 = vpop.f32.mrb[55].mxu1  ;;  %3970 = vmatmul.mubr.msk.f32.gmra.mrb[160].mxu1 %vm532_vm5, %v4591_v20  ;;  %v1440_v8 = vld [vmem:[%s7648_s8 + $0x3a8] sm:$0xff]  ;;  %v4597_v20 = vld [vmem:[%s7646_s7 + $0xf8] sm:$0xff] }
 0x30f   :  { %2052 = vmatprep.mubr.f32.mxu0 %v1600_v25  ;;  %3972 = vmatprep.mubr.msk.f32.mxu1 %vm532_vm5, %v4592_v61  ;;  %v4596_v25 = vld [vmem:[%s7646_s7 + $0xf0] sm:$0xff]  ;;  %v1616_v2 = vmul.f32 %v1440_v8, %v5785_v14  ;;  %v1611_v61 = vmul.f32 %v1435_v43, %v5763_v23  ;;  %v1447_v8 = vld [vmem:[%s7648_s8 + $0x3e0] sm:$0xff] }
 0x311   :  { %v6092_v17 = vpop.f32.mrb[56].mxu1 }
 0x312   :  { %2053 = vmatmul.mubr.f32.gmra.mrb[98].mxu0 %v1599_v3  ;;  %v6094_v9 = vpop.f32.mrb[57].mxu1  ;;  %3973 = vmatmul.mubr.msk.f32.gmra.mrb[162].mxu1 %vm532_vm5, %v4593_v31  ;;  %v1444_v3 = vld [vmem:[%s7648_s8 + $0x3c8] sm:$0xff] }
 0x313   :  { %2057 = vmatprep.mubr.f32.mxu0 %v1604_v10  ;;  %3975 = vmatprep.mubr.msk.f32.mxu1 %vm532_vm5, %v4594_v60  ;;  %v4598_v10 = vld [vmem:[%s7646_s7 + $0x100] sm:$0xff]  ;;  %v4599_v31 = vld [vmem:[%s7646_s7 + $0x108] sm:$0xff]  ;;  %v1620_v23 = vmul.f32 %v1444_v3, %v5805_v42  ;;  %v1615_v60 = vmul.f32 %v1439_v53, %v5783_v27 }
 0x314   :  { %v1451_v3 = vld [vmem:[%s7648_s8 + $0x400] sm:$0xff] }
 0x315   :  { %v6112_v6 = vpop.f32.mrb[58].mxu1 }
 0x316   :  { %2058 = vmatmul.mubr.f32.gmra.mrb[100].mxu0 %v1603_v37  ;;  %v6114_v56 = vpop.f32.mrb[59].mxu1  ;;  %3976 = vmatmul.mubr.msk.f32.gmra.mrb[164].mxu1 %vm532_vm5, %v4595_v7  ;;  %v1448_v37 = vld [vmem:[%s7648_s8 + $0x3e8] sm:$0xff]  ;;  %v4601_v7 = vld [vmem:[%s7646_s7 + $0x118] sm:$0xff] }
 0x317   :  { %2062 = vmatprep.mubr.f32.mxu0 %v1608_v12  ;;  %3978 = vmatprep.mubr.msk.f32.mxu1 %vm532_vm5, %v4596_v25  ;;  %v4600_v12 = vld [vmem:[%s7646_s7 + $0x110] sm:$0xff]  ;;  %v1624_v27 = vmul.f32 %v1448_v37, %v5825_v15  ;;  %v1619_v25 = vmul.f32 %v1443_v33, %v5803_v34  ;;  %v1455_v37 = vld [vmem:[%s7648_s8 + $0x420] sm:$0xff] }
 0x319   :  { %v6132_v50 = vpop.f32.mrb[60].mxu1 }
 0x31a   :  { %2063 = vmatmul.mubr.f32.gmra.mrb[102].mxu0 %v1607_v59  ;;  %v6134_v40 = vpop.f32.mrb[61].mxu1  ;;  %3979 = vmatmul.mubr.msk.f32.gmra.mrb[166].mxu1 %vm532_vm5, %v4597_v20  ;;  %v1452_v59 = vld [vmem:[%s7648_s8 + $0x408] sm:$0xff] }
 0x31b   :  { %2067 = vmatprep.mubr.f32.mxu0 %v1612_v41  ;;  %3981 = vmatprep.mubr.msk.f32.mxu1 %vm532_vm5, %v4598_v10  ;;  %v4602_v41 = vld [vmem:[%s7646_s7 + $0x120] sm:$0xff]  ;;  %v4603_v20 = vld [vmem:[%s7646_s7 + $0x128] sm:$0xff]  ;;  %v1628_v34 = vmul.f32 %v1452_v59, %v5845_v11  ;;  %v1623_v10 = vmul.f32 %v1447_v8, %v5823_v32 }
 0x31c   :  { %v1459_v59 = vld [vmem:[%s7648_s8 + $0x440] sm:$0xff] }
 0x31d   :  { %v6152_v49 = vpop.f32.mrb[62].mxu1 }
 0x31e   :  { %2068 = vmatmul.mubr.f32.gmra.mrb[104].mxu0 %v1611_v61  ;;  %v6154_v14 = vpop.f32.mrb[63].mxu1  ;;  %3982 = vmatmul.mubr.msk.f32.gmra.mrb[168].mxu1 %vm532_vm5, %v4599_v31  ;;  %v1456_v61 = vld [vmem:[%s7648_s8 + $0x428] sm:$0xff]  ;;  %v4605_v31 = vld [vmem:[%s7646_s7 + $0x138] sm:$0xff] }
 0x31f   :  { %2072 = vmatprep.mubr.f32.mxu0 %v1616_v2  ;;  %3984 = vmatprep.mubr.msk.f32.mxu1 %vm532_vm5, %v4600_v12  ;;  %v4604_v2 = vld [vmem:[%s7646_s7 + $0x130] sm:$0xff]  ;;  %v1632_v32 = vmul.f32 %v1456_v61, %v5859_v63  ;;  %v1627_v12 = vmul.f32 %v1451_v3, %v5843_v46 }
 0x321   :  { %v6172_v22 = vpop.f32.mrb[64].mxu1 }
 0x322   :  { %2073 = vmatmul.mubr.f32.gmra.mrb[106].mxu0 %v1615_v60  ;;  %v6174_v42 = vpop.f32.mrb[65].mxu1  ;;  %3985 = vmatmul.mubr.msk.f32.gmra.mrb[170].mxu1 %vm532_vm5, %v4601_v7  ;;  %v1460_v60 = vld [vmem:[%s7648_s8 + $0x448] sm:$0xff] }
 0x323   :  { %2077 = vmatprep.mubr.f32.mxu0 %v1620_v23  ;;  %3987 = vmatprep.mubr.msk.f32.mxu1 %vm532_vm5, %v4602_v41  ;;  %v4606_v23 = vld [vmem:[%s7646_s7 + $0x140] sm:$0xff]  ;;  %v4607_v7 = vld [vmem:[%s7646_s7 + $0x148] sm:$0xff]  ;;  %v1636_v46 = vmul.f32 %v1460_v60, %v5876_v5  ;;  %v1631_v41 = vmul.f32 %v1455_v37, %v5857_v19 }
 0x324   :  { %v1471_v37 = vld [vmem:[%s7648_s8 + $0x4a0] sm:$0xff] }
 0x325   :  { %v6192_v43 = vpop.f32.mrb[66].mxu1 }
 0x326   :  { %2078 = vmatmul.mubr.f32.gmra.mrb[108].mxu0 %v1619_v25  ;;  %v6194_v15 = vpop.f32.mrb[67].mxu1  ;;  %3988 = vmatmul.mubr.msk.f32.gmra.mrb[172].mxu1 %vm532_vm5, %v4603_v20  ;;  %v1464_v25 = vld [vmem:[%s7648_s8 + $0x468] sm:$0xff]  ;;  %v4609_v20 = vld [vmem:[%s7646_s7 + $0x158] sm:$0xff] }
 0x327   :  { %2082 = vmatprep.mubr.f32.mxu0 %v1624_v27  ;;  %3990 = vmatprep.mubr.msk.f32.mxu1 %vm532_vm5, %v4604_v2  ;;  %v4608_v27 = vld [vmem:[%s7646_s7 + $0x150] sm:$0xff]  ;;  %v1640_v19 = vmul.f32 %v1464_v25, %v5890_v1  ;;  %v1468_v2 = vld [vmem:[%s7648_s8 + $0x488] sm:$0xff] }
 0x329   :  { %v6212_v53 = vpop.f32.mrb[68].mxu1 }
 0x32a   :  { %2083 = vmatmul.mubr.f32.gmra.mrb[110].mxu0 %v1623_v10  ;;  %v6214_v11 = vpop.f32.mrb[69].mxu1  ;;  %3991 = vmatmul.mubr.msk.f32.gmra.mrb[174].mxu1 %vm532_vm5, %v4605_v31  ;;  %v1463_v10 = vld [vmem:[%s7648_s8 + $0x460] sm:$0xff]  ;;  %v1644_v31 = vmul.f32 %v1468_v2, %v5904_v16 }
 0x32b   :  { %2087 = vmatprep.mubr.f32.mxu0 %v1628_v34  ;;  %3993 = vmatprep.mubr.msk.f32.mxu1 %vm532_vm5, %v4606_v23  ;;  %v1635_v34 = vmul.f32 %v1459_v59, %v5874_v28  ;;  %v1639_v1 = vmul.f32 %v1463_v10, %v5888_v30  ;;  %v1472_v28 = vld [vmem:[%s7648_s8 + $0x4a8] sm:$0xff] }
 0x32c   :  { %v1648_v60 = vmul.f32 %v1472_v28, %v5918_v26  ;;  %v1476_v30 = vld [vmem:[%s7648_s8 + $0x4c8] sm:$0xff]  ;;  %v1647_v26 = vmul.f32 %v1471_v37, %v5916_v45 }
 0x32d   :  { %v6232_v33 = vpop.f32.mrb[70].mxu1  ;;  %v1484_v45 = vld [vmem:[%s7648_s8 + $0x508] sm:$0xff] }
 0x32e   :  { %2088 = vmatmul.mubr.f32.gmra.mrb[112].mxu0 %v1627_v12  ;;  %v6234_v63 = vpop.f32.mrb[71].mxu1  ;;  %3994 = vmatmul.mubr.msk.f32.gmra.mrb[176].mxu1 %vm532_vm5, %v4607_v7  ;;  %v1660_v10 = vmul.f32 %v1484_v45, %v5960_v62 }
 0x32f   :  { %2092 = vmatprep.mubr.f32.mxu0 %v1632_v32  ;;  %3996 = vmatprep.mubr.msk.f32.mxu1 %vm532_vm5, %v4608_v27  ;;  %v1467_v32 = vld [vmem:[%s7648_s8 + $0x480] sm:$0xff]  ;;  %v1652_v27 = vmul.f32 %v1476_v30, %v5932_v36 }
 0x330   :  { %v1643_v16 = vmul.f32 %v1467_v32, %v5902_v39  ;;  %v1480_v39 = vld [vmem:[%s7648_s8 + $0x4e8] sm:$0xff] }
 0x331   :  { %v6252_v8 = vpop.f32.mrb[72].mxu1 }
 0x332   :  { %2093 = vmatmul.mubr.f32.gmra.mrb[114].mxu0 %v1631_v41  ;;  %v6254_v5 = vpop.f32.mrb[73].mxu1  ;;  %3997 = vmatmul.mubr.msk.f32.gmra.mrb[178].mxu1 %vm532_vm5, %v4609_v20  ;;  %v1475_v41 = vld [vmem:[%s7648_s8 + $0x4c0] sm:$0xff]  ;;  %v1656_v20 = vmul.f32 %v1480_v39, %v5946_v48 }
 0x333   :  { %2097 = vmatprep.mubr.f32.mxu0 %v1636_v46  ;;  %v1651_v36 = vmul.f32 %v1475_v41, %v5930_v24  ;;  %v1488_v24 = vld [vmem:[%s7648_s8 + $0x528] sm:$0xff] }
 0x334   :  { %v1664_v32 = vmul.f32 %v1488_v24, %v5974_v13 }
 0x335   :  { %v6268_v61 = vpop.f32.mrb[74].mxu1 }
 0x336   :  { %2098 = vmatmul.mubr.f32.gmra.mrb[116].mxu0 %v1635_v34  ;;  %v6270_v3 = vpop.f32.mrb[75].mxu1 }
 0x337   :  { %2102 = vmatprep.mubr.f32.mxu0 %v1640_v19  ;;  %v1479_v19 = vld [vmem:[%s7648_s8 + $0x4e0] sm:$0xff] }
 0x338   :  { %v1655_v48 = vmul.f32 %v1479_v19, %v5944_v35  ;;  %v1492_v35 = vld [vmem:[%s7648_s8 + $0x548] sm:$0xff] }
 0x339   :  { %v6280_v23 = vpop.f32.mrb[76].mxu1  ;;  %v1668_v37 = vmul.f32 %v1492_v35, %v5988_v29 }
 0x33a   :  { %2103 = vmatmul.mubr.f32.gmra.mrb[118].mxu0 %v1639_v1  ;;  %v6282_v12 = vpop.f32.mrb[77].mxu1 }
 0x33b   :  { %2107 = vmatprep.mubr.f32.mxu0 %v1644_v31  ;;  %v1483_v31 = vld [vmem:[%s7648_s8 + $0x500] sm:$0xff] }
 0x33c   :  { %v1659_v62 = vmul.f32 %v1483_v31, %v5958_v58  ;;  %v1496_v58 = vld [vmem:[%s7648_s8 + $0x568] sm:$0xff]  ;;  %v1334_v31 = vld [vmem:[%s7648_s8 + $0x58] sm:$0xff] }
 0x33d   :  { %v6292_v7 = vpop.f32.mrb[78].mxu1  ;;  %v1672_v41 = vmul.f32 %v1496_v58, %v6005_v47 }
 0x33e   :  { %2108 = vmatmul.mubr.f32.gmra.mrb[120].mxu0 %v1643_v16  ;;  %v6294_v46 = vpop.f32.mrb[79].mxu1 }
 0x33f   :  { %2112 = vmatprep.mubr.f32.mxu0 %v1648_v60  ;;  %v1487_v60 = vld [vmem:[%s7648_s8 + $0x520] sm:$0xff] }
 0x340   :  { %v1663_v13 = vmul.f32 %v1487_v60, %v5972_v54  ;;  %v1326_v54 = vld [vmem:[%s7648_s8 + $0x18] sm:$0xff]  ;;  %v1510_v60 = vmul.f32 %v1334_v31, %v6054_v4 }
 0x341   :  { %v6304_v25 = vpop.f32.mrb[80].mxu1  ;;  %v1502_v19 = vmul.f32 %v1326_v54, %v6020_v51 }
 0x342   :  { %2113 = vmatmul.mubr.f32.gmra.mrb[122].mxu0 %v1647_v26  ;;  %v6306_v59 = vpop.f32.mrb[81].mxu1 }
 0x343   :  { %2117 = vmatprep.mubr.f32.mxu0 %v1652_v27  ;;  %v1491_v27 = vld [vmem:[%s7648_s8 + $0x540] sm:$0xff] }
 0x344   :  { %v1667_v29 = vmul.f32 %v1491_v27, %v5986_v52  ;;  %v1330_v52 = vld [vmem:[%s7648_s8 + $0x38] sm:$0xff] }
 0x345   :  { %v6316_v34 = vpop.f32.mrb[82].mxu1  ;;  %v1506_v51 = vmul.f32 %v1330_v52, %v6036_v55 }
 0x346   :  { %2118 = vmatmul.mubr.f32.gmra.mrb[124].mxu0 %v1651_v36  ;;  %v6318_v2 = vpop.f32.mrb[83].mxu1 }
 0x347   :  { %2122 = vmatprep.mubr.f32.mxu0 %v1656_v20  ;;  %v1495_v20 = vld [vmem:[%s7648_s8 + $0x560] sm:$0xff] }
 0x348   :  { %v1671_v47 = vmul.f32 %v1495_v20, %v6003_v44 }
 0x349   :  { %v6328_v1 = vpop.f32.mrb[84].mxu1 }
 0x34a   :  { %2123 = vmatmul.mubr.f32.gmra.mrb[126].mxu0 %v1655_v48  ;;  %v6330_v28 = vpop.f32.mrb[85].mxu1 }
 0x34b   :  { %2127 = vmatprep.mubr.f32.mxu0 %v1660_v10  ;;  %v1325_v10 = vld [vmem:[%s7648_s8 + $0x10] sm:$0xff] }
 0x34c   :  { %v1501_v44 = vmul.f32 %v1325_v10, %v6018_v57  ;;  %v1338_v57 = vld [vmem:[%s7648_s8 + $0x78] sm:$0xff] }
 0x34d   :  { %v6340_v16 = vpop.f32.mrb[86].mxu1  ;;  %v1514_v27 = vmul.f32 %v1338_v57, %v6074_v18 }
 0x34e   :  { %2128 = vmatmul.mubr.f32.gmra.mrb[128].mxu0 %v1659_v62  ;;  %v6342_v30 = vpop.f32.mrb[87].mxu1 }
 0x34f   :  { %2132 = vmatprep.mubr.f32.mxu0 %v1664_v32  ;;  %v1329_v32 = vld [vmem:[%s7648_s8 + $0x30] sm:$0xff] }
 0x350   :  { %v1505_v55 = vmul.f32 %v1329_v32, %v6034_v38  ;;  %v1342_v38 = vld [vmem:[%s7648_s8 + $0x98] sm:$0xff] }
 0x351   :  { %v6352_v26 = vpop.f32.mrb[88].mxu1  ;;  %v1518_v20 = vmul.f32 %v1342_v38, %v6094_v9 }
 0x352   :  { %2133 = vmatmul.mubr.f32.gmra.mrb[130].mxu0 %v1663_v13  ;;  %v6354_v39 = vpop.f32.mrb[89].mxu1 }
 0x353   :  { %2137 = vmatprep.mubr.f32.mxu0 %v1668_v37  ;;  %v1333_v37 = vld [vmem:[%s7648_s8 + $0x50] sm:$0xff] }
 0x354   :  { %v1509_v4 = vmul.f32 %v1333_v37, %v6052_v0  ;;  %v1346_v0 = vld [vmem:[%s7648_s8 + $0xb8] sm:$0xff] }
 0x355   :  { %v6364_v36 = vpop.f32.mrb[90].mxu1  ;;  %v1522_v10 = vmul.f32 %v1346_v0, %v6114_v56 }
 0x356   :  { %2138 = vmatmul.mubr.f32.gmra.mrb[132].mxu0 %v1667_v29  ;;  %v6366_v45 = vpop.f32.mrb[91].mxu1 }
 0x357   :  { %2142 = vmatprep.mubr.f32.mxu0 %v1672_v41  ;;  %v1337_v41 = vld [vmem:[%s7648_s8 + $0x70] sm:$0xff] }
 0x358   :  { %v1513_v18 = vmul.f32 %v1337_v41, %v6072_v21  ;;  %v1350_v21 = vld [vmem:[%s7648_s8 + $0xd8] sm:$0xff] }
 0x359   :  { %v6376_v48 = vpop.f32.mrb[92].mxu1  ;;  %v1526_v32 = vmul.f32 %v1350_v21, %v6134_v40 }
 0x35a   :  { %2143 = vmatmul.mubr.f32.gmra.mrb[134].mxu0 %v1671_v47  ;;  %v6378_v24 = vpop.f32.mrb[93].mxu1 }
 0x35b   :  { %3644 = vmatprep.mubr.msk.f32.mxu0 %vm1730_vm6, %v1502_v19  ;;  %v1341_v19 = vld [vmem:[%s7648_s8 + $0x90] sm:$0xff] }
 0x35c   :  { %v1517_v9 = vmul.f32 %v1341_v19, %v6092_v17  ;;  %v1354_v17 = vld [vmem:[%s7648_s8 + $0xf8] sm:$0xff] }
 0x35d   :  { %v6389_v62 = vpop.f32.mrb[94].mxu1  ;;  %v1530_v37 = vmul.f32 %v1354_v17, %v6154_v14 }
 0x35e   :  { %2213 = vmatmul.mubr.f32.vlgmr.msra.gmra.mrb[48].mxu0 %v1501_v44  ;;  %v6391_v35 = vpop.f32.mrb[95].mxu1 }
 0x35f   :  { %3645 = vmatprep.mubr.msk.f32.mxu0 %vm1730_vm6, %v1506_v51  ;;  %v1345_v51 = vld [vmem:[%s7648_s8 + $0xb0] sm:$0xff] }
 0x360   :  { %v1521_v56 = vmul.f32 %v1345_v51, %v6112_v6  ;;  %v1358_v6 = vld [vmem:[%s7648_s8 + $0x118] sm:$0xff] }
 0x361   :  { %v6402_v13 = vpop.f32.mrb[96].mxu1  ;;  %v1534_v41 = vmul.f32 %v1358_v6, %v6174_v42 }
 0x362   :  { %2218 = vmatmul.mubr.f32.gmra.mrb[50].mxu0 %v1505_v55  ;;  %v6404_v58 = vpop.f32.mrb[97].mxu1 }
 0x363   :  { %3646 = vmatprep.mubr.msk.f32.mxu0 %vm1730_vm6, %v1510_v60  ;;  %v1349_v60 = vld [vmem:[%s7648_s8 + $0xd0] sm:$0xff] }
 0x364   :  { %v1525_v40 = vmul.f32 %v1349_v60, %v6132_v50  ;;  %v1362_v50 = vld [vmem:[%s7648_s8 + $0x138] sm:$0xff] }
 0x365   :  { %v6415_v29 = vpop.f32.mrb[98].mxu1  ;;  %v1538_v19 = vmul.f32 %v1362_v50, %v6194_v15 }
 0x366   :  { %2223 = vmatmul.mubr.f32.gmra.mrb[52].mxu0 %v1509_v4  ;;  %v6417_v54 = vpop.f32.mrb[99].mxu1 }
 0x367   :  { %3647 = vmatprep.mubr.msk.f32.mxu0 %vm1730_vm6, %v1514_v27  ;;  %v1353_v27 = vld [vmem:[%s7648_s8 + $0xf0] sm:$0xff] }
 0x368   :  { %v1529_v14 = vmul.f32 %v1353_v27, %v6152_v49  ;;  %v1366_v49 = vld [vmem:[%s7648_s8 + $0x158] sm:$0xff] }
 0x369   :  { %v6428_v47 = vpop.f32.mrb[100].mxu1  ;;  %v1542_v51 = vmul.f32 %v1366_v49, %v6214_v11 }
 0x36a   :  { %2228 = vmatmul.mubr.f32.gmra.mrb[54].mxu0 %v1513_v18  ;;  %v6430_v52 = vpop.f32.mrb[101].mxu1 }
 0x36b   :  { %3648 = vmatprep.mubr.msk.f32.mxu0 %vm1730_vm6, %v1518_v20  ;;  %v1357_v20 = vld [vmem:[%s7648_s8 + $0x110] sm:$0xff] }
 0x36c   :  { %v1533_v42 = vmul.f32 %v1357_v20, %v6172_v22  ;;  %v1370_v22 = vld [vmem:[%s7648_s8 + $0x178] sm:$0xff] }
 0x36d   :  { %v6441_v44 = vpop.f32.mrb[102].mxu1  ;;  %v1546_v60 = vmul.f32 %v1370_v22, %v6234_v63 }
 0x36e   :  { %2233 = vmatmul.mubr.f32.gmra.mrb[56].mxu0 %v1517_v9  ;;  %v6443_v31 = vpop.f32.mrb[103].mxu1 }
 0x36f   :  { %3649 = vmatprep.mubr.msk.f32.mxu0 %vm1730_vm6, %v1522_v10  ;;  %v1361_v10 = vld [vmem:[%s7648_s8 + $0x130] sm:$0xff] }
 0x370   :  { %v1537_v15 = vmul.f32 %v1361_v10, %v6192_v43  ;;  %v1374_v43 = vld [vmem:[%s7648_s8 + $0x198] sm:$0xff] }
 0x371   :  { %v6454_v55 = vpop.f32.mrb[104].mxu1  ;;  %v1550_v27 = vmul.f32 %v1374_v43, %v6254_v5 }
 0x372   :  { %2238 = vmatmul.mubr.f32.gmra.mrb[58].mxu0 %v1521_v56  ;;  %v6456_v57 = vpop.f32.mrb[105].mxu1 }
 0x373   :  { %3650 = vmatprep.mubr.msk.f32.mxu0 %vm1730_vm6, %v1526_v32  ;;  %v1365_v32 = vld [vmem:[%s7648_s8 + $0x150] sm:$0xff] }
 0x374   :  { %v1541_v11 = vmul.f32 %v1365_v32, %v6212_v53  ;;  %v1378_v53 = vld [vmem:[%s7648_s8 + $0x1b8] sm:$0xff] }
 0x375   :  { %v6467_v4 = vpop.f32.mrb[106].mxu1  ;;  %v1554_v20 = vmul.f32 %v1378_v53, %v6270_v3 }
 0x376   :  { %2243 = vmatmul.mubr.f32.gmra.mrb[60].mxu0 %v1525_v40  ;;  %v6469_v38 = vpop.f32.mrb[107].mxu1 }
 0x377   :  { %3651 = vmatprep.mubr.msk.f32.mxu0 %vm1730_vm6, %v1530_v37  ;;  %v1369_v37 = vld [vmem:[%s7648_s8 + $0x170] sm:$0xff] }
 0x378   :  { %v1545_v63 = vmul.f32 %v1369_v37, %v6232_v33  ;;  %v1382_v33 = vld [vmem:[%s7648_s8 + $0x1d8] sm:$0xff] }
 0x379   :  { %v6480_v18 = vpop.f32.mrb[108].mxu1  ;;  %v1558_v10 = vmul.f32 %v1382_v33, %v6282_v12 }
 0x37a   :  { %2248 = vmatmul.mubr.f32.gmra.mrb[62].mxu0 %v1529_v14  ;;  %v6482_v0 = vpop.f32.mrb[109].mxu1 }
 0x37b   :  { %3652 = vmatprep.mubr.msk.f32.mxu0 %vm1730_vm6, %v1534_v41  ;;  %v1373_v41 = vld [vmem:[%s7648_s8 + $0x190] sm:$0xff] }
 0x37c   :  { %v1549_v5 = vmul.f32 %v1373_v41, %v6252_v8  ;;  %v1386_v8 = vld [vmem:[%s7648_s8 + $0x1f8] sm:$0xff] }
 0x37d   :  { %v6493_v9 = vpop.f32.mrb[110].mxu1  ;;  %v1562_v32 = vmul.f32 %v1386_v8, %v6294_v46 }
 0x37e   :  { %2253 = vmatmul.mubr.f32.gmra.mrb[64].mxu0 %v1533_v42  ;;  %v6495_v21 = vpop.f32.mrb[111].mxu1 }
 0x37f   :  { %3653 = vmatprep.mubr.msk.f32.mxu0 %vm1730_vm6, %v1538_v19  ;;  %v1377_v19 = vld [vmem:[%s7648_s8 + $0x1b0] sm:$0xff] }
 0x380   :  { %v1553_v3 = vmul.f32 %v1377_v19, %v6268_v61  ;;  %v1390_v61 = vld [vmem:[%s7648_s8 + $0x218] sm:$0xff] }
 0x381   :  { %v6506_v56 = vpop.f32.mrb[112].mxu1  ;;  %v1566_v37 = vmul.f32 %v1390_v61, %v6306_v59 }
 0x382   :  { %2258 = vmatmul.mubr.f32.gmra.mrb[66].mxu0 %v1537_v15  ;;  %v6508_v17 = vpop.f32.mrb[113].mxu1 }
 0x383   :  { %3654 = vmatprep.mubr.msk.f32.mxu0 %vm1730_vm6, %v1542_v51  ;;  %v1381_v51 = vld [vmem:[%s7648_s8 + $0x1d0] sm:$0xff] }
 0x384   :  { %v1557_v12 = vmul.f32 %v1381_v51, %v6280_v23  ;;  %v1394_v23 = vld [vmem:[%s7648_s8 + $0x238] sm:$0xff] }
 0x385   :  { %v6519_v40 = vpop.f32.mrb[114].mxu1  ;;  %v1570_v41 = vmul.f32 %v1394_v23, %v6318_v2 }
 0x386   :  { %2263 = vmatmul.mubr.f32.gmra.mrb[68].mxu0 %v1541_v11  ;;  %v6521_v6 = vpop.f32.mrb[115].mxu1 }
 0x387   :  { %3655 = vmatprep.mubr.msk.f32.mxu0 %vm1730_vm6, %v1546_v60  ;;  %v1385_v60 = vld [vmem:[%s7648_s8 + $0x1f0] sm:$0xff] }
 0x388   :  { %v1561_v46 = vmul.f32 %v1385_v60, %v6292_v7  ;;  %v1398_v7 = vld [vmem:[%s7648_s8 + $0x258] sm:$0xff] }
 0x389   :  { %v6532_v14 = vpop.f32.mrb[116].mxu1  ;;  %v1574_v19 = vmul.f32 %v1398_v7, %v6330_v28 }
 0x38a   :  { %2268 = vmatmul.mubr.f32.gmra.mrb[70].mxu0 %v1545_v63  ;;  %v6534_v50 = vpop.f32.mrb[117].mxu1 }
 0x38b   :  { %3656 = vmatprep.mubr.msk.f32.mxu0 %vm1730_vm6, %v1550_v27  ;;  %v1389_v27 = vld [vmem:[%s7648_s8 + $0x210] sm:$0xff] }
 0x38c   :  { %v1565_v59 = vmul.f32 %v1389_v27, %v6304_v25  ;;  %v1402_v25 = vld [vmem:[%s7648_s8 + $0x278] sm:$0xff] }
 0x38d   :  { %v6545_v42 = vpop.f32.mrb[118].mxu1  ;;  %v1578_v51 = vmul.f32 %v1402_v25, %v6342_v30 }
 0x38e   :  { %2273 = vmatmul.mubr.f32.gmra.mrb[72].mxu0 %v1549_v5  ;;  %v6547_v49 = vpop.f32.mrb[119].mxu1 }
 0x38f   :  { %3657 = vmatprep.mubr.msk.f32.mxu0 %vm1730_vm6, %v1554_v20  ;;  %v1393_v20 = vld [vmem:[%s7648_s8 + $0x230] sm:$0xff] }
 0x390   :  { %v1569_v2 = vmul.f32 %v1393_v20, %v6316_v34  ;;  %v1406_v34 = vld [vmem:[%s7648_s8 + $0x298] sm:$0xff] }
 0x391   :  { %v6558_v15 = vpop.f32.mrb[120].mxu1  ;;  %v1582_v60 = vmul.f32 %v1406_v34, %v6354_v39 }
 0x392   :  { %2278 = vmatmul.mubr.f32.gmra.mrb[74].mxu0 %v1553_v3  ;;  %v6560_v22 = vpop.f32.mrb[121].mxu1 }
 0x393   :  { %3658 = vmatprep.mubr.msk.f32.mxu0 %vm1730_vm6, %v1558_v10  ;;  %v1397_v10 = vld [vmem:[%s7648_s8 + $0x250] sm:$0xff] }
 0x394   :  { %v1573_v28 = vmul.f32 %v1397_v10, %v6328_v1  ;;  %v1410_v1 = vld [vmem:[%s7648_s8 + $0x2b8] sm:$0xff] }
 0x395   :  { %v6571_v11 = vpop.f32.mrb[122].mxu1  ;;  %v1586_v27 = vmul.f32 %v1410_v1, %v6366_v45 }
 0x396   :  { %2283 = vmatmul.mubr.f32.gmra.mrb[76].mxu0 %v1557_v12  ;;  %v6573_v43 = vpop.f32.mrb[123].mxu1 }
 0x397   :  { %3659 = vmatprep.mubr.msk.f32.mxu0 %vm1730_vm6, %v1562_v32  ;;  %v1401_v32 = vld [vmem:[%s7648_s8 + $0x270] sm:$0xff] }
 0x398   :  { %v1577_v30 = vmul.f32 %v1401_v32, %v6340_v16  ;;  %v1414_v16 = vld [vmem:[%s7648_s8 + $0x2d8] sm:$0xff] }
 0x399   :  { %v6584_v63 = vpop.f32.mrb[124].mxu1  ;;  %v1590_v20 = vmul.f32 %v1414_v16, %v6378_v24 }
 0x39a   :  { %2288 = vmatmul.mubr.f32.gmra.mrb[78].mxu0 %v1561_v46  ;;  %v6586_v53 = vpop.f32.mrb[125].mxu1 }
 0x39b   :  { %3660 = vmatprep.mubr.msk.f32.mxu0 %vm1730_vm6, %v1566_v37  ;;  %v1405_v37 = vld [vmem:[%s7648_s8 + $0x290] sm:$0xff] }
 0x39c   :  { %v1581_v39 = vmul.f32 %v1405_v37, %v6352_v26  ;;  %v1418_v26 = vld [vmem:[%s7648_s8 + $0x2f8] sm:$0xff] }
 0x39d   :  { %v6597_v5 = vpop.f32.mrb[126].mxu1  ;;  %v1594_v10 = vmul.f32 %v1418_v26, %v6391_v35  ;;  %v1421_v35 = vld [vmem:[%s7648_s8 + $0x310] sm:$0xff] }
 0x39e   :  { %2293 = vmatmul.mubr.f32.gmra.mrb[80].mxu0 %v1565_v59  ;;  %v6599_v33 = vpop.f32.mrb[127].mxu1  ;;  %v1597_v1 = vmul.f32 %v1421_v35, %v6402_v13  ;;  %v1434_v13 = vld [vmem:[%s7648_s8 + $0x378] sm:$0xff] }
 0x39f   :  { %3661 = vmatprep.mubr.msk.f32.mxu0 %vm1730_vm6, %v1570_v41  ;;  %v1409_v41 = vld [vmem:[%s7648_s8 + $0x2b0] sm:$0xff] }
 0x3a0   :  { %v1585_v45 = vmul.f32 %v1409_v41, %v6364_v36  ;;  %v1422_v36 = vld [vmem:[%s7648_s8 + $0x318] sm:$0xff]  ;;  %v1610_v41 = vmul.f32 %v1434_v13, %v6443_v31  ;;  %v1437_v31 = vld [vmem:[%s7648_s8 + $0x390] sm:$0xff] }
 0x3a1   :  { %v6610_v3 = vpop.f32.mrb[128].mxu1  ;;  %v1598_v34 = vmul.f32 %v1422_v36, %v6404_v58  ;;  %v1425_v58 = vld [vmem:[%s7648_s8 + $0x330] sm:$0xff]  ;;  %v1613_v36 = vmul.f32 %v1437_v31, %v6454_v55  ;;  %v1450_v55 = vld [vmem:[%s7648_s8 + $0x3f8] sm:$0xff] }
 0x3a2   :  { %2298 = vmatmul.mubr.f32.gmra.mrb[82].mxu0 %v1569_v2  ;;  %v6612_v8 = vpop.f32.mrb[129].mxu1  ;;  %v1626_v35 = vmul.f32 %v1450_v55, %v6495_v21  ;;  %v1453_v21 = vld [vmem:[%s7648_s8 + $0x410] sm:$0xff] }
 0x3a3   :  { %3662 = vmatprep.mubr.msk.f32.mxu0 %vm1730_vm6, %v1574_v19  ;;  %v1413_v19 = vld [vmem:[%s7648_s8 + $0x2d0] sm:$0xff]  ;;  %v1629_v13 = vmul.f32 %v1453_v21, %v6506_v56  ;;  %v1466_v56 = vld [vmem:[%s7648_s8 + $0x478] sm:$0xff] }
 0x3a4   :  { %v1589_v24 = vmul.f32 %v1413_v19, %v6376_v48  ;;  %v1426_v48 = vld [vmem:[%s7648_s8 + $0x338] sm:$0xff] }
 0x3a5   :  { %v6623_v12 = vpop.f32.mrb[130].mxu1 }
 0x3a6   :  { %2303 = vmatmul.mubr.f32.gmra.mrb[84].mxu0 %v1573_v28  ;;  %v6625_v61 = vpop.f32.mrb[131].mxu1 }
 0x3a7   :  { %3663 = vmatprep.mubr.msk.f32.mxu0 %vm1730_vm6, %v1578_v51  ;;  %v1417_v51 = vld [vmem:[%s7648_s8 + $0x2f0] sm:$0xff] }
 0x3a8   :  { %v1593_v32 = vmul.f32 %v1417_v51, %v6389_v62  ;;  %v1430_v62 = vld [vmem:[%s7648_s8 + $0x358] sm:$0xff] }
 0x3a9   :  { %v6636_v46 = vpop.f32.mrb[132].mxu1 }
 0x3aa   :  { %2308 = vmatmul.mubr.f32.gmra.mrb[86].mxu0 %v1577_v30  ;;  %v6638_v23 = vpop.f32.mrb[133].mxu1  ;;  %v1602_v30 = vmul.f32 %v1426_v48, %v6417_v54  ;;  %v1429_v54 = vld [vmem:[%s7648_s8 + $0x350] sm:$0xff] }
 0x3ab   :  { %3664 = vmatprep.mubr.msk.f32.mxu0 %vm1730_vm6, %v1582_v60 }
 0x3ad   :  { %v6649_v59 = vpop.f32.mrb[134].mxu1 }
 0x3ae   :  { %2313 = vmatmul.mubr.f32.gmra.mrb[88].mxu0 %v1581_v39  ;;  %v6651_v7 = vpop.f32.mrb[135].mxu1  ;;  %v1601_v39 = vmul.f32 %v1425_v58, %v6415_v29  ;;  %v1438_v29 = vld [vmem:[%s7648_s8 + $0x398] sm:$0xff] }
 0x3af   :  { %3665 = vmatprep.mubr.msk.f32.mxu0 %vm1730_vm6, %v1586_v27  ;;  %v1606_v27 = vmul.f32 %v1430_v62, %v6430_v52  ;;  %v1433_v52 = vld [vmem:[%s7648_s8 + $0x370] sm:$0xff]  ;;  %v1614_v26 = vmul.f32 %v1438_v29, %v6456_v57 }
 0x3b0   :  { %v1609_v19 = vmul.f32 %v1433_v52, %v6441_v44  ;;  %v1446_v44 = vld [vmem:[%s7648_s8 + $0x3d8] sm:$0xff]  ;;  %v1441_v57 = vld [vmem:[%s7648_s8 + $0x3b0] sm:$0xff]  ;;  %v1642_v52 = vmul.f32 %v1466_v56, %v6547_v49 }
 0x3b1   :  { %v6662_v2 = vpop.f32.mrb[136].mxu1  ;;  %v1469_v49 = vld [vmem:[%s7648_s8 + $0x490] sm:$0xff] }
 0x3b2   :  { %2318 = vmatmul.mubr.f32.gmra.mrb[90].mxu0 %v1585_v45  ;;  %v6664_v25 = vpop.f32.mrb[137].mxu1 }
 0x3b3   :  { %3666 = vmatprep.mubr.msk.f32.mxu0 %vm1730_vm6, %v1590_v20  ;;  %v1605_v20 = vmul.f32 %v1429_v54, %v6428_v47  ;;  %v1442_v47 = vld [vmem:[%s7648_s8 + $0x3b8] sm:$0xff] }
 0x3b5   :  { %v6675_v28 = vpop.f32.mrb[138].mxu1 }
 0x3b6   :  { %2323 = vmatmul.mubr.f32.gmra.mrb[92].mxu0 %v1589_v24  ;;  %v6686_v60 = vpop.f32.mrb[139].mxu1  ;;  %v1618_v24 = vmul.f32 %v1442_v47, %v6469_v38  ;;  %v1445_v38 = vld [vmem:[%s7648_s8 + $0x3d0] sm:$0xff] }
 0x3b7   :  { %3667 = vmatprep.mubr.msk.f32.mxu0 %vm1730_vm6, %v1594_v10 }
 0x3b9   :  { %v6697_v37 = vpop.f32.mrb[140].mxu1 }
 0x3ba   :  { %2328 = vmatmul.mubr.f32.gmra.mrb[94].mxu0 %v1593_v32  ;;  %v6708_v16 = vpop.f32.mrb[141].mxu1  ;;  %v1617_v32 = vmul.f32 %v1441_v57, %v6467_v4  ;;  %v1454_v4 = vld [vmem:[%s7648_s8 + $0x418] sm:$0xff] }
 0x3bb   :  { %3668 = vmatprep.mubr.msk.f32.mxu0 %vm1730_vm6, %v1598_v34  ;;  %v1622_v34 = vmul.f32 %v1446_v44, %v6482_v0  ;;  %v1449_v0 = vld [vmem:[%s7648_s8 + $0x3f0] sm:$0xff]  ;;  %v1630_v62 = vmul.f32 %v1454_v4, %v6508_v17  ;;  %v1645_v44 = vmul.f32 %v1469_v49, %v6558_v15  ;;  %v1482_v15 = vld [vmem:[%s7648_s8 + $0x4f8] sm:$0xff] }
 0x3bc   :  { %v1625_v58 = vmul.f32 %v1449_v0, %v6493_v9  ;;  %v1462_v9 = vld [vmem:[%s7648_s8 + $0x458] sm:$0xff]  ;;  %v1457_v17 = vld [vmem:[%s7648_s8 + $0x430] sm:$0xff] }
 0x3bd   :  { %v6719_v45 = vpop.f32.mrb[142].mxu1 }
 0x3be   :  { %2333 = vmatmul.mubr.f32.gmra.mrb[96].mxu0 %v1597_v1  ;;  %v6730_v10 = vpop.f32.mrb[143].mxu1 }
 0x3bf   :  { %3669 = vmatprep.mubr.msk.f32.mxu0 %vm1730_vm6, %v1602_v30  ;;  %v1621_v30 = vmul.f32 %v1445_v38, %v6480_v18  ;;  %v1458_v18 = vld [vmem:[%s7648_s8 + $0x438] sm:$0xff]  ;;  %v1658_v38 = vmul.f32 %v1482_v15, %v6599_v33  ;;  %v1485_v33 = vld [vmem:[%s7648_s8 + $0x510] sm:$0xff] }
 0x3c1   :  { %v6741_v51 = vpop.f32.mrb[144].mxu1 }
 0x3c2   :  { %2338 = vmatmul.mubr.f32.gmra.mrb[98].mxu0 %v1601_v39  ;;  %v6752_v48 = vpop.f32.mrb[145].mxu1  ;;  %v1634_v39 = vmul.f32 %v1458_v18, %v6521_v6  ;;  %v1461_v6 = vld [vmem:[%s7648_s8 + $0x450] sm:$0xff]  ;;  %v1661_v18 = vmul.f32 %v1485_v33, %v6610_v3  ;;  %v1498_v3 = vld [vmem:[%s7648_s8 + $0x578] sm:$0xff] }
 0x3c3   :  { %3670 = vmatprep.mubr.msk.f32.mxu0 %vm1730_vm6, %v1606_v27 }
 0x3c5   :  { %v6763_v1 = vpop.f32.mrb[146].mxu1 }
 0x3c6   :  { %2343 = vmatmul.mubr.f32.gmra.mrb[100].mxu0 %v1605_v20  ;;  %v6774_v27 = vpop.f32.mrb[147].mxu1  ;;  %v1633_v20 = vmul.f32 %v1457_v17, %v6519_v40  ;;  %v1470_v40 = vld [vmem:[%s7648_s8 + $0x498] sm:$0xff]  ;;  %v1674_v17 = vmul.f32 %v1498_v3, %v6651_v7 }
 0x3c7   :  { %3671 = vmatprep.mubr.msk.f32.mxu0 %vm1730_vm6, %v1610_v41  ;;  %v1638_v41 = vmul.f32 %v1462_v9, %v6534_v50  ;;  %v1465_v50 = vld [vmem:[%s7648_s8 + $0x470] sm:$0xff]  ;;  %v1646_v47 = vmul.f32 %v1470_v40, %v6560_v22 }
 0x3c8   :  { %v1641_v31 = vmul.f32 %v1465_v50, %v6545_v42  ;;  %v1478_v42 = vld [vmem:[%s7648_s8 + $0x4d8] sm:$0xff]  ;;  %v1473_v22 = vld [vmem:[%s7648_s8 + $0x4b0] sm:$0xff] }
 0x3c9   :  { %v6785_v54 = vpop.f32.mrb[148].mxu1 }
 0x3ca   :  { %2348 = vmatmul.mubr.f32.gmra.mrb[102].mxu0 %v1609_v19  ;;  %v6796_v29 = vpop.f32.mrb[149].mxu1 }
 0x3cb   :  { %3672 = vmatprep.mubr.msk.f32.mxu0 %vm1730_vm6, %v1614_v26  ;;  %v1637_v26 = vmul.f32 %v1461_v6, %v6532_v14  ;;  %v1474_v14 = vld [vmem:[%s7648_s8 + $0x4b8] sm:$0xff] }
 0x3cd   :  { %v6807_v19 = vpop.f32.mrb[150].mxu1 }
 0x3ce   :  { %2353 = vmatmul.mubr.f32.gmra.mrb[104].mxu0 %v1613_v36  ;;  %v1650_v36 = vmul.f32 %v1474_v14, %v6573_v43  ;;  %v1477_v43 = vld [vmem:[%s7648_s8 + $0x4d0] sm:$0xff] }
 0x3cf   :  { %3673 = vmatprep.mubr.msk.f32.mxu0 %vm1730_vm6, %v1618_v24  ;;  %v6818_v24 = vpop.f32.mrb[151].mxu1 }
 0x3d1   :  { %v6829_v57 = vpop.f32.mrb[152].mxu1 }
 0x3d2   :  { %2358 = vmatmul.mubr.f32.gmra.mrb[106].mxu0 %v1617_v32  ;;  %v1649_v32 = vmul.f32 %v1473_v22, %v6571_v11  ;;  %v6840_v55 = vpop.f32.mrb[153].mxu1  ;;  %v1486_v11 = vld [vmem:[%s7648_s8 + $0x518] sm:$0xff] }
 0x3d3   :  { %3674 = vmatprep.mubr.msk.f32.mxu0 %vm1730_vm6, %v1622_v34  ;;  %v1654_v34 = vmul.f32 %v1478_v42, %v6586_v53  ;;  %v1481_v53 = vld [vmem:[%s7648_s8 + $0x4f0] sm:$0xff]  ;;  %v1662_v4 = vmul.f32 %v1486_v11, %v6612_v8  ;;  %v2983_v11 = vld [vmem:[%s7649_s10] sm:$0xff] }
 0x3d4   :  { %v1657_v0 = vmul.f32 %v1481_v53, %v6597_v5  ;;  %v1494_v5 = vld [vmem:[%s7648_s8 + $0x558] sm:$0xff]  ;;  %v1489_v8 = vld [vmem:[%s7648_s8 + $0x530] sm:$0xff] }
 0x3d6   :  { %2363 = vmatmul.mubr.f32.gmra.mrb[108].mxu0 %v1621_v30  ;;  %v6851_v30 = vpop.f32.mrb[154].mxu1 }
 0x3d7   :  { %3675 = vmatprep.mubr.msk.f32.mxu0 %vm1730_vm6, %v1626_v35  ;;  %v1653_v35 = vmul.f32 %v1477_v43, %v6584_v63  ;;  %v1490_v63 = vld [vmem:[%s7648_s8 + $0x538] sm:$0xff] }
 0x3da   :  { %2368 = vmatmul.mubr.f32.gmra.mrb[110].mxu0 %v1625_v58  ;;  %v1666_v58 = vmul.f32 %v1490_v63, %v6625_v61  ;;  %v1493_v61 = vld [vmem:[%s7648_s8 + $0x550] sm:$0xff] }
 0x3db   :  { %3676 = vmatprep.mubr.msk.f32.mxu0 %vm1730_vm6, %v1630_v62  ;;  %v6862_v62 = vpop.f32.mrb[155].mxu1 }
 0x3dc   :  { %v6873_v21 = vpop.f32.mrb[156].mxu1 }
 0x3dd   :  { %v6884_v9 = vpop.f32.mrb[157].mxu1 }
 0x3de   :  { %2373 = vmatmul.mubr.f32.gmra.mrb[112].mxu0 %v1629_v13  ;;  %v1665_v13 = vmul.f32 %v1489_v8, %v6623_v12  ;;  %v1497_v12 = vld [vmem:[%s7648_s8 + $0x570] sm:$0xff] }
 0x3df   :  { %3677 = vmatprep.mubr.msk.f32.mxu0 %vm1730_vm6, %v1634_v39  ;;  %v1670_v39 = vmul.f32 %v1494_v5, %v6638_v23  ;;  %v6892_v23 = vpop.f32.mrb[158].mxu1 }
 0x3e0   :  { %v6896_v56 = vpop.f32.mrb[159].mxu1 }
 0x3e1   :  { %v6898_v6 = vpop.f32.mrb[160].mxu1 }
 0x3e2   :  { %2378 = vmatmul.mubr.f32.gmra.mrb[114].mxu0 %v1633_v20  ;;  %v1673_v20 = vmul.f32 %v1497_v12, %v6649_v59 }
 0x3e3   :  { %3678 = vmatprep.mubr.msk.f32.mxu0 %vm1730_vm6, %v1638_v41  ;;  %v1669_v41 = vmul.f32 %v1493_v61, %v6636_v46  ;;  %v2987_v61 = vld [vmem:[%s7649_s10 + $0x20] sm:$0xff] }
 0x3e6   :  { %2383 = vmatmul.mubr.f32.gmra.mrb[116].mxu0 %v1637_v26 }
 0x3e7   :  { %3679 = vmatprep.mubr.msk.f32.mxu0 %vm1730_vm6, %v1642_v52  ;;  %v6900_v52 = vpop.f32.mrb[161].mxu1 }
 0x3e8   :  { %v6902_v7 = vpop.f32.mrb[162].mxu1 }
 0x3e9   :  { %v6904_v46 = vpop.f32.mrb[163].mxu1 }
 0x3ea   :  { %2388 = vmatmul.mubr.f32.gmra.mrb[118].mxu0 %v1641_v31  ;;  %v6906_v26 = vpop.f32.mrb[164].mxu1 }
 0x3eb   :  { %3680 = vmatprep.mubr.msk.f32.mxu0 %vm1730_vm6, %v1646_v47  ;;  %v6908_v40 = vpop.f32.mrb[165].mxu1 }
 0x3ed   :  { %v6910_v50 = vpop.f32.mrb[166].mxu1 }
 0x3ee   :  { %2393 = vmatmul.mubr.f32.gmra.mrb[120].mxu0 %v1645_v44  ;;  %v6912_v47 = vpop.f32.mrb[167].mxu1 }
 0x3ef   :  { %3681 = vmatprep.mubr.msk.f32.mxu0 %vm1730_vm6, %v1650_v36 }
 0x3f1   :  { %v6914_v59 = vpop.f32.mrb[168].mxu1 }
 0x3f2   :  { %2398 = vmatmul.mubr.f32.gmra.mrb[122].mxu0 %v1649_v32  ;;  %v6916_v14 = vpop.f32.mrb[169].mxu1 }
 0x3f3   :  { %3682 = vmatprep.mubr.msk.f32.mxu0 %vm1730_vm6, %v1654_v34 }
 0x3f5   :  { %v6926_v32 = vpop.f32.mrb[170].mxu1 }
 0x3f6   :  { %2403 = vmatmul.mubr.f32.gmra.mrb[124].mxu0 %v1653_v35 }
 0x3f7   :  { %3683 = vmatprep.mubr.msk.f32.mxu0 %vm1730_vm6, %v1658_v38  ;;  %v6930_v38 = vpop.f32.mrb[171].mxu1 }
 0x3f9   :  { %v6946_v33 = vpop.f32.mrb[172].mxu1 }
 0x3fa   :  { %2408 = vmatmul.mubr.f32.gmra.mrb[126].mxu0 %v1657_v0 }
 0x3fb   :  { %3684 = vmatprep.mubr.msk.f32.mxu0 %vm1730_vm6, %v1662_v4 }
 0x3fe   :  { %2413 = vmatmul.mubr.f32.gmra.mrb[128].mxu0 %v1661_v18  ;;  %v2986_v18 = vld [vmem:[%s7649_s10 + $0x18] sm:$0xff] }
 0x3ff   :  { %3685 = vmatprep.mubr.msk.f32.mxu0 %vm1730_vm6, %v1666_v58  ;;  %v2985_v58 = vld [vmem:[%s7649_s10 + $0x10] sm:$0xff] }
 0x400   :  { %v4298_v5 = vpack.c.bf16 %v2986_v18, %v2985_v58  ;;  %v2993_v18 = vld [vmem:[%s7649_s10 + $0x50] sm:$0xff] }
 0x402   :  { %2418 = vmatmul.mubr.f32.gmra.mrb[130].mxu0 %v1665_v13 }
 0x403   :  { %3686 = vmatprep.mubr.msk.f32.mxu0 %vm1730_vm6, %v1670_v39 }
 0x406   :  { %2423 = vmatmul.mubr.f32.gmra.mrb[132].mxu0 %v1669_v41 }
 0x407   :  { %3687 = vmatprep.mubr.msk.f32.mxu0 %vm1730_vm6, %v1674_v17  ;;  %v2988_v17 = vld [vmem:[%s7649_s10 + $0x28] sm:$0xff] }
 0x408   :  { %v4302_v41 = vpack.c.bf16 %v2988_v17, %v2987_v61 }
 0x40a   :  { %2428 = vmatmul.mubr.f32.gmra.mrb[134].mxu0 %v1673_v20 }
 0x431   :  { %v2214_v31 = vpop.f32.mrb[48].mxu0 }
 0x432   :  { %v6919_v49 = vadd.f32 %v6664_v25, %v2214_v31  ;;  %v2216_v36 = vpop.f32.mrb[49].mxu0 }
 0x433   :  { %v2989_v36 = vld [vmem:[%s7649_s10 + $0x30] sm:$0xff] }
 0x434   :  { %v2719_v44 = vsel %vm2718_vm7, %v6919_v49, -inf }
 0x435   :  { %v2219_v42 = vpop.f32.mrb[50].mxu0  ;;  %2720 = vmax.xlane.f32.xlu0 %v2719_v44  ;;  %v2990_v44 = vld [vmem:[%s7649_s10 + $0x38] sm:$0xff] }
 0x436   :  { %v6924_v22 = vadd.f32 %v6662_v2, %v2219_v42  ;;  %v2221_v34 = vpop.f32.mrb[51].mxu0  ;;  %v2984_v2 = vld [vmem:[%s7649_s10 + $0x8] sm:$0xff]  ;;  %v4306_v42 = vpack.c.bf16 %v2990_v44, %v2989_v36 }
 0x437   :  { %v4294_v53 = vpack.c.bf16 %v2984_v2, %v2983_v11  ;;  %v2991_v2 = vld [vmem:[%s7649_s10 + $0x40] sm:$0xff] }
 0x438   :  { %v2722_v15 = vsel %vm2718_vm7, %v6924_v22, -inf }
 0x439   :  { %v2224_v43 = vpop.f32.mrb[52].mxu0  ;;  %2723 = vmax.xlane.f32.xlu0 %v2722_v15  ;;  %4295 = vmatprep.subr.bf16.mxu1 %v4294_v53 }
 0x43a   :  { %v6933_v25 = vadd.f32 %v6686_v60, %v2224_v43  ;;  %v2226_v35 = vpop.f32.mrb[53].mxu0  ;;  %4297 = vmatpush3.bf16.msra.mxu1 %v4294_v53  ;;  %v2992_v53 = vld [vmem:[%s7649_s10 + $0x48] sm:$0xff] }
 0x43b   :  { %4299 = vmatprep.subr.bf16.mxu1 %v4298_v5 }
 0x43c   :  { %v2725_v4 = vsel %vm2718_vm7, %v6933_v25, -inf }
 0x43d   :  { %v2229_v0 = vpop.f32.mrb[54].mxu0  ;;  %2726 = vmax.xlane.f32.xlu1 %v2725_v4  ;;  %v4310_v4 = vpack.c.bf16 %v2992_v53, %v2991_v2 }
 0x43e   :  { %v6944_v63 = vadd.f32 %v6675_v28, %v2229_v0  ;;  %v2231_v60 = vpop.f32.mrb[55].mxu0  ;;  %v6956_v28 = vpop.f32.mrb[173].mxu1  ;;  %4301 = vmatpush3.bf16.msra.mxu1 %v4298_v5  ;;  %v2994_v5 = vld [vmem:[%s7649_s10 + $0x58] sm:$0xff] }
 0x43f   :  { %4303 = vmatprep.subr.bf16.mxu1 %v4302_v41  ;;  %v6980_v43 = vpop.f32.mrb[174].mxu1 }
 0x440   :  { %v2728_v8 = vsel %vm2718_vm7, %v6944_v63, -inf  ;;  %v6985_v11 = vpop.f32.mrb[175].mxu1 }
 0x441   :  { %v2234_v39 = vpop.f32.mrb[56].mxu0  ;;  %2729 = vmax.xlane.f32.xlu1 %v2728_v8  ;;  %v4314_v8 = vpack.c.bf16 %v2994_v5, %v2993_v18  ;;  %v7006_v61 = vpop.f32.mrb[176].mxu1 }
 0x442   :  { %v6959_v13 = vadd.f32 %v6708_v16, %v2234_v39  ;;  %v2236_v3 = vpop.f32.mrb[57].mxu0  ;;  %4305 = vmatpush3.bf16.msra.mxu1 %v4302_v41  ;;  %v7011_v41 = vpop.f32.mrb[177].mxu1 }
 0x443   :  { %4307 = vmatprep.subr.bf16.mxu1 %v4306_v42 }
 0x444   :  { %v2731_v12 = vsel %vm2718_vm7, %v6959_v13, -inf }
 0x445   :  { %v2239_v20 = vpop.f32.mrb[58].mxu0  ;;  %2732 = vmax.xlane.f32.xlu0 %v2731_v12 }
 0x446   :  { %v6970_v16 = vadd.f32 %v6697_v37, %v2239_v20  ;;  %v2241_v31 = vpop.f32.mrb[59].mxu0  ;;  %4309 = vmatpush3.bf16.msra.mxu1 %v4306_v42  ;;  %v2995_v20 = vld [vmem:[%s7649_s10 + $0x60] sm:$0xf] }
 0x447   :  { %4311 = vmatprep.subr.bf16.mxu1 %v4310_v4 }
 0x448   :  { %v2734_v34 = vsel %vm2718_vm7, %v6970_v16, -inf }
 0x449   :  { %v2244_v15 = vpop.f32.mrb[60].mxu0  ;;  %2735 = vmax.xlane.f32.xlu1 %v2734_v34  ;;  %v7025_v34 = vpop.f32.mrb[178].mxu1 }
 0x44a   :  { %v6983_v37 = vadd.f32 %v6730_v10, %v2244_v15  ;;  %v2246_v35 = vpop.f32.mrb[61].mxu0  ;;  %4313 = vmatpush3.bf16.msra.mxu1 %v4310_v4  ;;  %v7030_v2 = vpop.f32.mrb[179].mxu1 }
 0x44b   :  { %4315 = vmatprep.subr.bf16.mxu1 %v4314_v8 }
 0x44c   :  { %v2737_v0 = vsel %vm2718_vm7, %v6983_v37, -inf }
 0x44d   :  { %v2249_v60 = vpop.f32.mrb[62].mxu0  ;;  %2738 = vmax.xlane.f32.xlu0 %v2737_v0 }
 0x44e   :  { %v6996_v10 = vadd.f32 %v6719_v45, %v2249_v60  ;;  %v2251_v58 = vpop.f32.mrb[63].mxu0  ;;  %4317 = vmatpush3.bf16.msra.mxu1 %v4314_v8 }
 0x44f   :  { %4023 = vmatprep.subr.msk.mxu1 %vm87_vm0, %v2995_v20 }
 0x450   :  { %v2740_v39 = vsel %vm2718_vm7, %v6996_v10, -inf }
 0x451   :  { %v2254_v3 = vpop.f32.mrb[64].mxu0  ;;  %2741 = vmax.xlane.f32.xlu1 %v2740_v39 }
 0x452   :  { %v7009_v45 = vadd.f32 %v6752_v48, %v2254_v3  ;;  %v2256_v17 = vpop.f32.mrb[65].mxu0  ;;  %4024 = vmatpush3.msk.msra.mxu1 %vm87_vm0, %v2995_v20 }
 0x454   :  { %v2743_v12 = vsel %vm2718_vm7, %v7009_v45, -inf }
 0x455   :  { %v2259_v31 = vpop.f32.mrb[66].mxu0  ;;  %2744 = vmax.xlane.f32.xlu0 %v2743_v12 }
 0x456   :  { %v7020_v36 = vadd.f32 %v6741_v51, %v2259_v31  ;;  %v2261_v48 = vpop.f32.mrb[67].mxu0 }
 0x458   :  { %v2746_v44 = vsel %vm2718_vm7, %v7020_v36, -inf }
 0x459   :  { %v2264_v42 = vpop.f32.mrb[68].mxu0  ;;  %2747 = vmax.xlane.f32.xlu1 %v2746_v44 }
 0x45a   :  { %v7028_v15 = vadd.f32 %v6774_v27, %v2264_v42  ;;  %v2266_v35 = vpop.f32.mrb[69].mxu0 }
 0x45c   :  { %v2749_v51 = vsel %vm2718_vm7, %v7028_v15, -inf }
 0x45d   :  { %v2269_v53 = vpop.f32.mrb[70].mxu0  ;;  %2750 = vmax.xlane.f32.xlu0 %v2749_v51 }
 0x45e   :  { %v7035_v4 = vadd.f32 %v6763_v1, %v2269_v53  ;;  %v2271_v0 = vpop.f32.mrb[71].mxu0 }
 0x460   :  { %v2752_v60 = vsel %vm2718_vm7, %v7035_v4, -inf }
 0x461   :  { %v2274_v58 = vpop.f32.mrb[72].mxu0  ;;  %2753 = vmax.xlane.f32.xlu1 %v2752_v60 }
 0x462   :  { %v7040_v27 = vadd.f32 %v6796_v29, %v2274_v58  ;;  %v2276_v18 = vpop.f32.mrb[73].mxu0 }
 0x464   :  { %v2755_v5 = vsel %vm2718_vm7, %v7040_v27, -inf }
 0x465   :  { %v2279_v8 = vpop.f32.mrb[74].mxu0  ;;  %2756 = vmax.xlane.f32.xlu0 %v2755_v5 }
 0x466   :  { %v7045_v39 = vadd.f32 %v6785_v54, %v2279_v8  ;;  %v2281_v1 = vpop.f32.mrb[75].mxu0 }
 0x468   :  { %v2758_v3 = vsel %vm2718_vm7, %v7045_v39, -inf }
 0x469   :  { %v2284_v17 = vpop.f32.mrb[76].mxu0  ;;  %2759 = vmax.xlane.f32.xlu1 %v2758_v3 }
 0x46a   :  { %v7050_v12 = vadd.f32 %v6818_v24, %v2284_v17  ;;  %v2286_v29 = vpop.f32.mrb[77].mxu0 }
 0x46c   :  { %v2761_v20 = vsel %vm2718_vm7, %v7050_v12, -inf }
 0x46d   :  { %v2289_v31 = vpop.f32.mrb[78].mxu0  ;;  %2762 = vmax.xlane.f32.xlu0 %v2761_v20 }
 0x46e   :  { %v7055_v48 = vadd.f32 %v6807_v19, %v2289_v31  ;;  %v2291_v54 = vpop.f32.mrb[79].mxu0 }
 0x470   :  { %v2764_v44 = vsel %vm2718_vm7, %v7055_v48, -inf }
 0x471   :  { %v2294_v42 = vpop.f32.mrb[80].mxu0  ;;  %2765 = vmax.xlane.f32.xlu1 %v2764_v44 }
 0x472   :  { %v7060_v35 = vadd.f32 %v6840_v55, %v2294_v42  ;;  %v2296_v24 = vpop.f32.mrb[81].mxu0 }
 0x474   :  { %v2767_v51 = vsel %vm2718_vm7, %v7060_v35, -inf }
 0x475   :  { %v2299_v53 = vpop.f32.mrb[82].mxu0  ;;  %2768 = vmax.xlane.f32.xlu0 %v2767_v51 }
 0x476   :  { %v7065_v0 = vadd.f32 %v6829_v57, %v2299_v53  ;;  %v2301_v19 = vpop.f32.mrb[83].mxu0 }
 0x478   :  { %v2770_v60 = vsel %vm2718_vm7, %v7065_v0, -inf }
 0x479   :  { %v2304_v58 = vpop.f32.mrb[84].mxu0  ;;  %2771 = vmax.xlane.f32.xlu1 %v2770_v60 }
 0x47a   :  { %v7070_v18 = vadd.f32 %v6862_v62, %v2304_v58  ;;  %v2306_v55 = vpop.f32.mrb[85].mxu0 }
 0x47c   :  { %v2773_v5 = vsel %vm2718_vm7, %v7070_v18, -inf }
 0x47d   :  { %v2309_v8 = vpop.f32.mrb[86].mxu0  ;;  %2774 = vmax.xlane.f32.xlu0 %v2773_v5 }
 0x47e   :  { %v7075_v1 = vadd.f32 %v6851_v30, %v2309_v8  ;;  %v2311_v57 = vpop.f32.mrb[87].mxu0 }
 0x480   :  { %v2776_v3 = vsel %vm2718_vm7, %v7075_v1, -inf }
 0x481   :  { %v2314_v17 = vpop.f32.mrb[88].mxu0  ;;  %2777 = vmax.xlane.f32.xlu1 %v2776_v3 }
 0x482   :  { %v7080_v29 = vadd.f32 %v6884_v9, %v2314_v17  ;;  %v2316_v62 = vpop.f32.mrb[89].mxu0 }
 0x484   :  { %v2779_v20 = vsel %vm2718_vm7, %v7080_v29, -inf }
 0x485   :  { %v2319_v31 = vpop.f32.mrb[90].mxu0  ;;  %2780 = vmax.xlane.f32.xlu0 %v2779_v20 }
 0x486   :  { %v7085_v54 = vadd.f32 %v6873_v21, %v2319_v31  ;;  %v2321_v30 = vpop.f32.mrb[91].mxu0 }
 0x488   :  { %v2782_v44 = vsel %vm2718_vm7, %v7085_v54, -inf }
 0x489   :  { %v2324_v42 = vpop.f32.mrb[92].mxu0  ;;  %2783 = vmax.xlane.f32.xlu1 %v2782_v44 }
 0x48a   :  { %v7090_v24 = vadd.f32 %v6896_v56, %v2324_v42  ;;  %v2326_v9 = vpop.f32.mrb[93].mxu0 }
 0x48c   :  { %v2785_v51 = vsel %vm2718_vm7, %v7090_v24, -inf }
 0x48d   :  { %v2329_v53 = vpop.f32.mrb[94].mxu0  ;;  %2786 = vmax.xlane.f32.xlu0 %v2785_v51 }
 0x48e   :  { %v7095_v19 = vadd.f32 %v6892_v23, %v2329_v53  ;;  %v2331_v21 = vpop.f32.mrb[95].mxu0 }
 0x490   :  { %v2788_v60 = vsel %vm2718_vm7, %v7095_v19, -inf }
 0x491   :  { %v2334_v58 = vpop.f32.mrb[96].mxu0  ;;  %2789 = vmax.xlane.f32.xlu1 %v2788_v60 }
 0x492   :  { %v7100_v55 = vadd.f32 %v6900_v52, %v2334_v58  ;;  %v2336_v56 = vpop.f32.mrb[97].mxu0 }
 0x494   :  { %v2791_v5 = vsel %vm2718_vm7, %v7100_v55, -inf }
 0x495   :  { %v2339_v8 = vpop.f32.mrb[98].mxu0  ;;  %2792 = vmax.xlane.f32.xlu0 %v2791_v5 }
 0x496   :  { %v7105_v57 = vadd.f32 %v6898_v6, %v2339_v8  ;;  %v2341_v23 = vpop.f32.mrb[99].mxu0 }
 0x498   :  { %v2794_v3 = vsel %vm2718_vm7, %v7105_v57, -inf }
 0x499   :  { %v2344_v17 = vpop.f32.mrb[100].mxu0  ;;  %2795 = vmax.xlane.f32.xlu1 %v2794_v3 }
 0x49a   :  { %v7110_v62 = vadd.f32 %v6904_v46, %v2344_v17  ;;  %v2346_v52 = vpop.f32.mrb[101].mxu0 }
 0x49c   :  { %v2797_v20 = vsel %vm2718_vm7, %v7110_v62, -inf }
 0x49d   :  { %v2349_v31 = vpop.f32.mrb[102].mxu0  ;;  %2798 = vmax.xlane.f32.xlu0 %v2797_v20 }
 0x49e   :  { %v7115_v30 = vadd.f32 %v6902_v7, %v2349_v31  ;;  %v2351_v6 = vpop.f32.mrb[103].mxu0 }
 0x4a0   :  { %v2800_v44 = vsel %vm2718_vm7, %v7115_v30, -inf }
 0x4a1   :  { %v2354_v42 = vpop.f32.mrb[104].mxu0  ;;  %2801 = vmax.xlane.f32.xlu1 %v2800_v44 }
 0x4a2   :  { %v7120_v9 = vadd.f32 %v6908_v40, %v2354_v42  ;;  %v2356_v46 = vpop.f32.mrb[105].mxu0 }
 0x4a4   :  { %v2803_v51 = vsel %vm2718_vm7, %v7120_v9, -inf }
 0x4a5   :  { %v2359_v53 = vpop.f32.mrb[106].mxu0  ;;  %2804 = vmax.xlane.f32.xlu0 %v2803_v51 }
 0x4a6   :  { %v7125_v21 = vadd.f32 %v6906_v26, %v2359_v53  ;;  %v2361_v7 = vpop.f32.mrb[107].mxu0 }
 0x4a8   :  { %v2806_v60 = vsel %vm2718_vm7, %v7125_v21, -inf }
 0x4a9   :  { %v2364_v58 = vpop.f32.mrb[108].mxu0  ;;  %2807 = vmax.xlane.f32.xlu1 %v2806_v60 }
 0x4aa   :  { %v7130_v56 = vadd.f32 %v6912_v47, %v2364_v58  ;;  %v2366_v40 = vpop.f32.mrb[109].mxu0 }
 0x4ac   :  { %v2809_v5 = vsel %vm2718_vm7, %v7130_v56, -inf }
 0x4ad   :  { %v2369_v8 = vpop.f32.mrb[110].mxu0  ;;  %2810 = vmax.xlane.f32.xlu0 %v2809_v5 }
 0x4ae   :  { %v7135_v23 = vadd.f32 %v6910_v50, %v2369_v8  ;;  %v2371_v26 = vpop.f32.mrb[111].mxu0 }
 0x4b0   :  { %v2812_v3 = vsel %vm2718_vm7, %v7135_v23, -inf }
 0x4b1   :  { %v2374_v17 = vpop.f32.mrb[112].mxu0  ;;  %2813 = vmax.xlane.f32.xlu1 %v2812_v3 }
 0x4b2   :  { %v7140_v52 = vadd.f32 %v6916_v14, %v2374_v17  ;;  %v2376_v47 = vpop.f32.mrb[113].mxu0 }
 0x4b4   :  { %v2815_v20 = vsel %vm2718_vm7, %v7140_v52, -inf }
 0x4b5   :  { %v2379_v31 = vpop.f32.mrb[114].mxu0  ;;  %2816 = vmax.xlane.f32.xlu0 %v2815_v20 }
 0x4b6   :  { %v7145_v6 = vadd.f32 %v6914_v59, %v2379_v31  ;;  %v2381_v50 = vpop.f32.mrb[115].mxu0 }
 0x4b8   :  { %v2818_v44 = vsel %vm2718_vm7, %v7145_v6, -inf }
 0x4b9   :  { %v2384_v42 = vpop.f32.mrb[116].mxu0  ;;  %2819 = vmax.xlane.f32.xlu1 %v2818_v44 }
 0x4ba   :  { %v7150_v46 = vadd.f32 %v6930_v38, %v2384_v42  ;;  %v2386_v14 = vpop.f32.mrb[117].mxu0 }
 0x4bc   :  { %v2821_v51 = vsel %vm2718_vm7, %v7150_v46, -inf }
 0x4bd   :  { %v2389_v53 = vpop.f32.mrb[118].mxu0  ;;  %2822 = vmax.xlane.f32.xlu0 %v2821_v51 }
 0x4be   :  { %v7155_v7 = vadd.f32 %v6926_v32, %v2389_v53  ;;  %v2391_v59 = vpop.f32.mrb[119].mxu0 }
 0x4c0   :  { %v2824_v60 = vsel %vm2718_vm7, %v7155_v7, -inf }
 0x4c1   :  { %v2394_v58 = vpop.f32.mrb[120].mxu0  ;;  %2825 = vmax.xlane.f32.xlu1 %v2824_v60 }
 0x4c2   :  { %v7160_v40 = vadd.f32 %v6956_v28, %v2394_v58  ;;  %v2396_v38 = vpop.f32.mrb[121].mxu0  ;;  %v2721_v5 = vpop.xlane.xlu0 %2720 }
 0x4c3   :  { %v2851_v8 = vsub.f32 %v6919_v49, %v2721_v5 }
 0x4c4   :  { %v2827_v26 = vsel %vm2718_vm7, %v7160_v40, -inf }
 0x4c5   :  { %v2895_v3 = vmul.f32 1.442695, %v2851_v8  ;;  %v2399_v17 = vpop.f32.mrb[122].mxu0  ;;  %2828 = vmax.xlane.f32.xlu0 %v2827_v26 }
 0x4c6   :  { %v7166_v32 = vadd.f32 %v6946_v33, %v2399_v17  ;;  %v2401_v47 = vpop.f32.mrb[123].mxu0  ;;  %v2724_v20 = vpop.xlane.xlu0 %2723 }
 0x4c7   :  { %4412 = vpow2.f32 %v2895_v3  ;;  %v2852_v31 = vsub.f32 %v6924_v22, %v2724_v20 }
 0x4c8   :  { %v2830_v28 = vsel %vm2718_vm7, %v7166_v32, -inf }
 0x4c9   :  { %v2897_v50 = vmul.f32 1.442695, %v2852_v31  ;;  %v2404_v44 = vpop.f32.mrb[124].mxu0  ;;  %2831 = vmax.xlane.f32.xlu1 %v2830_v28 }
 0x4ca   :  { %v7172_v49 = vadd.f32 %v6985_v11, %v2404_v44  ;;  %v2406_v42 = vpop.f32.mrb[125].mxu0  ;;  %v2727_v14 = vpop.xlane.xlu1 %2726 }
 0x4cb   :  { %4414 = vpow2.f32 %v2897_v50  ;;  %v2853_v33 = vsub.f32 %v6933_v25, %v2727_v14 }
 0x4cc   :  { %v2833_v51 = vsel %vm2718_vm7, %v7172_v49, -inf }
 0x4cd   :  { %v2899_v53 = vmul.f32 1.442695, %v2853_v33  ;;  %v2409_v59 = vpop.f32.mrb[126].mxu0  ;;  %2834 = vmax.xlane.f32.xlu0 %v2833_v51 }
 0x4ce   :  { %v7178_v22 = vadd.f32 %v6980_v43, %v2409_v59  ;;  %v2411_v60 = vpop.f32.mrb[127].mxu0  ;;  %v2730_v58 = vpop.xlane.xlu1 %2729 }
 0x4cf   :  { %4416 = vpow2.f32 %v2899_v53  ;;  %v2854_v11 = vsub.f32 %v6944_v63, %v2730_v58 }
 0x4d0   :  { %v2836_v38 = vsel %vm2718_vm7, %v7178_v22, -inf }
 0x4d1   :  { %v7183_v5 = vpop.eup %4412  ;;  %v2901_v25 = vmul.f32 1.442695, %v2854_v11  ;;  %v2414_v8 = vpop.f32.mrb[128].mxu0  ;;  %2837 = vmax.xlane.f32.xlu1 %v2836_v38 }
 0x4d2   :  { %v7186_v26 = vadd.f32 %v7011_v41, %v2414_v8  ;;  %v2416_v3 = vpop.f32.mrb[129].mxu0  ;;  %4025 = vmatprep.mubr.msk.f32.mxu1 %vm2718_vm7, %v7183_v5  ;;  %v2733_v43 = vpop.xlane.xlu0 %2732 }
 0x4d3   :  { %4418 = vpow2.f32 %v2901_v25  ;;  %v2855_v17 = vsub.f32 %v6959_v13, %v2733_v43 }
 0x4d4   :  { %v2839_v63 = vsel %vm2718_vm7, %v7186_v26, -inf }
 0x4d5   :  { %v7193_v47 = vpop.eup %4414  ;;  %v2903_v20 = vmul.f32 1.442695, %v2855_v17  ;;  %v2419_v31 = vpop.f32.mrb[130].mxu0  ;;  %2840 = vmax.xlane.f32.xlu0 %v2839_v63 }
 0x4d6   :  { %v7196_v28 = vadd.f32 %v7006_v61, %v2419_v31  ;;  %v2421_v41 = vpop.f32.mrb[131].mxu0  ;;  %v2736_v50 = vpop.xlane.xlu1 %2735  ;;  %4026 = vmatmul.mubr.msk.f32.vlgmr.msra.gmra.mrb[180].mxu1 %vm2718_vm7, %v7193_v47 }
 0x4d7   :  { %4420 = vpow2.f32 %v2903_v20  ;;  %v2856_v44 = vsub.f32 %v6970_v16, %v2736_v50 }
 0x4d8   :  { %v2842_v13 = vsel %vm2718_vm7, %v7196_v28, -inf }
 0x4d9   :  { %v7203_v42 = vpop.eup %4416  ;;  %v2905_v14 = vmul.f32 1.442695, %v2856_v44  ;;  %v2424_v33 = vpop.f32.mrb[132].mxu0  ;;  %2843 = vmax.xlane.f32.xlu1 %v2842_v13 }
 0x4da   :  { %v7206_v51 = vadd.f32 %v7030_v2, %v2424_v33  ;;  %v2426_v61 = vpop.f32.mrb[133].mxu0  ;;  %4028 = vmatprep.mubr.msk.f32.mxu1 %vm2718_vm7, %v7203_v42  ;;  %v2739_v53 = vpop.xlane.xlu0 %2738 }
 0x4db   :  { %4422 = vpow2.f32 %v2905_v14  ;;  %v2857_v59 = vsub.f32 %v6983_v37, %v2739_v53 }
 0x4dc   :  { %v2845_v16 = vsel %vm2718_vm7, %v7206_v51, -inf }
 0x4dd   :  { %v7213_v60 = vpop.eup %4418  ;;  %v2907_v58 = vmul.f32 1.442695, %v2857_v59  ;;  %2846 = vmax.xlane.f32.xlu0 %v2845_v16  ;;  %v2429_v11 = vpop.f32.mrb[134].mxu0 }
 0x4de   :  { %v7216_v38 = vadd.f32 %v7025_v34, %v2429_v11  ;;  %v2742_v2 = vpop.xlane.xlu1 %2741  ;;  %v2431_v25 = vpop.f32.mrb[135].mxu0  ;;  %4029 = vmatmul.mubr.msk.f32.gmra.mrb[182].mxu1 %vm2718_vm7, %v7213_v60 }
 0x4df   :  { %4424 = vpow2.f32 %v2907_v58  ;;  %v2858_v8 = vsub.f32 %v6996_v10, %v2742_v2 }
 0x4e0   :  { %v2848_v37 = vsel %vm2718_vm7, %v7216_v38, -inf }
 0x4e1   :  { %v7223_v3 = vpop.eup %4420  ;;  %v2909_v43 = vmul.f32 1.442695, %v2858_v8  ;;  %2849 = vmax.xlane.f32.xlu1 %v2848_v37 }
 0x4e2   :  { %4031 = vmatprep.mubr.msk.f32.mxu1 %vm2718_vm7, %v7223_v3  ;;  %v2745_v34 = vpop.xlane.xlu0 %2744 }
 0x4e3   :  { %4426 = vpow2.f32 %v2909_v43  ;;  %v2859_v17 = vsub.f32 %v7009_v45, %v2745_v34 }
 0x4e5   :  { %v7228_v63 = vpop.eup %4422  ;;  %v2911_v20 = vmul.f32 1.442695, %v2859_v17 }
 0x4e6   :  { %v2748_v31 = vpop.xlane.xlu1 %2747  ;;  %4032 = vmatmul.mubr.msk.f32.gmra.mrb[184].mxu1 %vm2718_vm7, %v7228_v63 }
 0x4e7   :  { %4428 = vpow2.f32 %v2911_v20  ;;  %v2860_v10 = vsub.f32 %v7020_v36, %v2748_v31 }
 0x4e9   :  { %v7233_v41 = vpop.eup %4424  ;;  %v2913_v50 = vmul.f32 1.442695, %v2860_v10 }
 0x4ea   :  { %4034 = vmatprep.mubr.msk.f32.mxu1 %vm2718_vm7, %v7233_v41  ;;  %v2751_v44 = vpop.xlane.xlu0 %2750 }
 0x4eb   :  { %4430 = vpow2.f32 %v2913_v50  ;;  %v2861_v45 = vsub.f32 %v7028_v15, %v2751_v44 }
 0x4ed   :  { %v7238_v13 = vpop.eup %4426  ;;  %v2915_v14 = vmul.f32 1.442695, %v2861_v45 }
 0x4ee   :  { %v2754_v33 = vpop.xlane.xlu1 %2753  ;;  %4035 = vmatmul.mubr.msk.f32.gmra.mrb[186].mxu1 %vm2718_vm7, %v7238_v13 }
 0x4ef   :  { %4432 = vpow2.f32 %v2915_v14  ;;  %v2862_v36 = vsub.f32 %v7035_v4, %v2754_v33 }
 0x4f1   :  { %v7243_v61 = vpop.eup %4428  ;;  %v2917_v53 = vmul.f32 1.442695, %v2862_v36 }
 0x4f2   :  { %4037 = vmatprep.mubr.msk.f32.mxu1 %vm2718_vm7, %v7243_v61  ;;  %v2757_v59 = vpop.xlane.xlu0 %2756 }
 0x4f3   :  { %4434 = vpow2.f32 %v2917_v53  ;;  %v2863_v15 = vsub.f32 %v7040_v27, %v2757_v59 }
 0x4f5   :  { %v7248_v16 = vpop.eup %4430  ;;  %v2919_v58 = vmul.f32 1.442695, %v2863_v15 }
 0x4f6   :  { %v2760_v11 = vpop.xlane.xlu1 %2759  ;;  %4038 = vmatmul.mubr.msk.f32.gmra.mrb[188].mxu1 %vm2718_vm7, %v7248_v16 }
 0x4f7   :  { %4436 = vpow2.f32 %v2919_v58  ;;  %v2864_v4 = vsub.f32 %v7045_v39, %v2760_v11 }
 0x4f9   :  { %v7253_v2 = vpop.eup %4432  ;;  %v2921_v25 = vmul.f32 1.442695, %v2864_v4 }
 0x4fa   :  { %4040 = vmatprep.mubr.msk.f32.mxu1 %vm2718_vm7, %v7253_v2  ;;  %v2763_v8 = vpop.xlane.xlu0 %2762 }
 0x4fb   :  { %4438 = vpow2.f32 %v2921_v25  ;;  %v2865_v27 = vsub.f32 %v7050_v12, %v2763_v8 }
 0x4fd   :  { %v7258_v37 = vpop.eup %4434  ;;  %v2923_v43 = vmul.f32 1.442695, %v2865_v27 }
 0x4fe   :  { %v2766_v34 = vpop.xlane.xlu1 %2765  ;;  %4041 = vmatmul.mubr.msk.f32.gmra.mrb[190].mxu1 %vm2718_vm7, %v7258_v37 }
 0x4ff   :  { %4440 = vpow2.f32 %v2923_v43  ;;  %v2866_v39 = vsub.f32 %v7055_v48, %v2766_v34 }
 0x501   :  { %v7263_v17 = vpop.eup %4436  ;;  %v2925_v20 = vmul.f32 1.442695, %v2866_v39 }
 0x502   :  { %4043 = vmatprep.mubr.msk.f32.mxu1 %vm2718_vm7, %v7263_v17  ;;  %v2769_v31 = vpop.xlane.xlu0 %2768 }
 0x503   :  { %4442 = vpow2.f32 %v2925_v20  ;;  %v2867_v12 = vsub.f32 %v7060_v35, %v2769_v31 }
 0x505   :  { %v7268_v10 = vpop.eup %4438  ;;  %v2927_v50 = vmul.f32 1.442695, %v2867_v12 }
 0x506   :  { %v2772_v44 = vpop.xlane.xlu1 %2771  ;;  %4044 = vmatmul.mubr.msk.f32.gmra.mrb[192].mxu1 %vm2718_vm7, %v7268_v10 }
 0x507   :  { %4444 = vpow2.f32 %v2927_v50  ;;  %v2868_v48 = vsub.f32 %v7065_v0, %v2772_v44 }
 0x509   :  { %v7273_v45 = vpop.eup %4440  ;;  %v2929_v14 = vmul.f32 1.442695, %v2868_v48 }
 0x50a   :  { %4046 = vmatprep.mubr.msk.f32.mxu1 %vm2718_vm7, %v7273_v45  ;;  %v2775_v33 = vpop.xlane.xlu0 %2774 }
 0x50b   :  { %4446 = vpow2.f32 %v2929_v14  ;;  %v2869_v35 = vsub.f32 %v7070_v18, %v2775_v33 }
 0x50d   :  { %v7278_v36 = vpop.eup %4442  ;;  %v2931_v53 = vmul.f32 1.442695, %v2869_v35 }
 0x50e   :  { %v2778_v59 = vpop.xlane.xlu1 %2777  ;;  %4047 = vmatmul.mubr.msk.f32.gmra.mrb[194].mxu1 %vm2718_vm7, %v7278_v36 }
 0x50f   :  { %4448 = vpow2.f32 %v2931_v53  ;;  %v2870_v0 = vsub.f32 %v7075_v1, %v2778_v59 }
 0x511   :  { %v7283_v15 = vpop.eup %4444  ;;  %v2933_v58 = vmul.f32 1.442695, %v2870_v0 }
 0x512   :  { %4049 = vmatprep.mubr.msk.f32.mxu1 %vm2718_vm7, %v7283_v15  ;;  %v2781_v11 = vpop.xlane.xlu0 %2780 }
 0x513   :  { %4450 = vpow2.f32 %v2933_v58  ;;  %v2871_v18 = vsub.f32 %v7080_v29, %v2781_v11 }
 0x515   :  { %v7288_v4 = vpop.eup %4446  ;;  %v2935_v25 = vmul.f32 1.442695, %v2871_v18 }
 0x516   :  { %v2784_v8 = vpop.xlane.xlu1 %2783  ;;  %4050 = vmatmul.mubr.msk.f32.gmra.mrb[196].mxu1 %vm2718_vm7, %v7288_v4 }
 0x517   :  { %4452 = vpow2.f32 %v2935_v25  ;;  %v2872_v1 = vsub.f32 %v7085_v54, %v2784_v8 }
 0x519   :  { %v7293_v27 = vpop.eup %4448  ;;  %v2937_v43 = vmul.f32 1.442695, %v2872_v1 }
 0x51a   :  { %4052 = vmatprep.mubr.msk.f32.mxu1 %vm2718_vm7, %v7293_v27  ;;  %v2787_v34 = vpop.xlane.xlu0 %2786 }
 0x51b   :  { %4454 = vpow2.f32 %v2937_v43  ;;  %v2873_v29 = vsub.f32 %v7090_v24, %v2787_v34 }
 0x51d   :  { %v7298_v39 = vpop.eup %4450  ;;  %v2939_v20 = vmul.f32 1.442695, %v2873_v29 }
 0x51e   :  { %v2790_v31 = vpop.xlane.xlu1 %2789  ;;  %4053 = vmatmul.mubr.msk.f32.gmra.mrb[198].mxu1 %vm2718_vm7, %v7298_v39 }
 0x51f   :  { %4456 = vpow2.f32 %v2939_v20  ;;  %v2874_v54 = vsub.f32 %v7095_v19, %v2790_v31 }
 0x521   :  { %v7303_v12 = vpop.eup %4452  ;;  %v2941_v50 = vmul.f32 1.442695, %v2874_v54 }
 0x522   :  { %4055 = vmatprep.mubr.msk.f32.mxu1 %vm2718_vm7, %v7303_v12  ;;  %v2793_v44 = vpop.xlane.xlu0 %2792 }
 0x523   :  { %4458 = vpow2.f32 %v2941_v50  ;;  %v2875_v24 = vsub.f32 %v7100_v55, %v2793_v44 }
 0x525   :  { %v7308_v48 = vpop.eup %4454  ;;  %v2943_v14 = vmul.f32 1.442695, %v2875_v24 }
 0x526   :  { %v2796_v33 = vpop.xlane.xlu1 %2795  ;;  %4056 = vmatmul.mubr.msk.f32.gmra.mrb[200].mxu1 %vm2718_vm7, %v7308_v48 }
 0x527   :  { %4460 = vpow2.f32 %v2943_v14  ;;  %v2876_v19 = vsub.f32 %v7105_v57, %v2796_v33 }
 0x529   :  { %v7313_v35 = vpop.eup %4456  ;;  %v2945_v53 = vmul.f32 1.442695, %v2876_v19 }
 0x52a   :  { %4058 = vmatprep.mubr.msk.f32.mxu1 %vm2718_vm7, %v7313_v35  ;;  %v2799_v59 = vpop.xlane.xlu0 %2798 }
 0x52b   :  { %4462 = vpow2.f32 %v2945_v53  ;;  %v2877_v55 = vsub.f32 %v7110_v62, %v2799_v59 }
 0x52d   :  { %v7318_v0 = vpop.eup %4458  ;;  %v2947_v58 = vmul.f32 1.442695, %v2877_v55 }
 0x52e   :  { %v2802_v11 = vpop.xlane.xlu1 %2801  ;;  %4059 = vmatmul.mubr.msk.f32.gmra.mrb[202].mxu1 %vm2718_vm7, %v7318_v0 }
 0x52f   :  { %4464 = vpow2.f32 %v2947_v58  ;;  %v2878_v57 = vsub.f32 %v7115_v30, %v2802_v11 }
 0x531   :  { %v7323_v18 = vpop.eup %4460  ;;  %v2949_v25 = vmul.f32 1.442695, %v2878_v57 }
 0x532   :  { %4061 = vmatprep.mubr.msk.f32.mxu1 %vm2718_vm7, %v7323_v18  ;;  %v2805_v8 = vpop.xlane.xlu0 %2804 }
 0x533   :  { %4466 = vpow2.f32 %v2949_v25  ;;  %v2879_v62 = vsub.f32 %v7120_v9, %v2805_v8 }
 0x535   :  { %v7328_v1 = vpop.eup %4462  ;;  %v2951_v43 = vmul.f32 1.442695, %v2879_v62 }
 0x536   :  { %v2808_v34 = vpop.xlane.xlu1 %2807  ;;  %4062 = vmatmul.mubr.msk.f32.gmra.mrb[204].mxu1 %vm2718_vm7, %v7328_v1 }
 0x537   :  { %4468 = vpow2.f32 %v2951_v43  ;;  %v2880_v30 = vsub.f32 %v7125_v21, %v2808_v34 }
 0x539   :  { %v7333_v29 = vpop.eup %4464  ;;  %v2953_v20 = vmul.f32 1.442695, %v2880_v30 }
 0x53a   :  { %4064 = vmatprep.mubr.msk.f32.mxu1 %vm2718_vm7, %v7333_v29  ;;  %v2811_v31 = vpop.xlane.xlu0 %2810 }
 0x53b   :  { %4470 = vpow2.f32 %v2953_v20  ;;  %v2881_v9 = vsub.f32 %v7130_v56, %v2811_v31 }
 0x53d   :  { %v7338_v54 = vpop.eup %4466  ;;  %v2955_v50 = vmul.f32 1.442695, %v2881_v9 }
 0x53e   :  { %v2814_v44 = vpop.xlane.xlu1 %2813  ;;  %4065 = vmatmul.mubr.msk.f32.gmra.mrb[206].mxu1 %vm2718_vm7, %v7338_v54 }
 0x53f   :  { %4472 = vpow2.f32 %v2955_v50  ;;  %v2882_v21 = vsub.f32 %v7135_v23, %v2814_v44 }
 0x541   :  { %v7343_v24 = vpop.eup %4468  ;;  %v2957_v14 = vmul.f32 1.442695, %v2882_v21 }
 0x542   :  { %4067 = vmatprep.mubr.msk.f32.mxu1 %vm2718_vm7, %v7343_v24  ;;  %v2817_v33 = vpop.xlane.xlu0 %2816 }
 0x543   :  { %4474 = vpow2.f32 %v2957_v14  ;;  %v2883_v56 = vsub.f32 %v7140_v52, %v2817_v33 }
 0x545   :  { %v7348_v19 = vpop.eup %4470  ;;  %v2959_v53 = vmul.f32 1.442695, %v2883_v56 }
 0x546   :  { %v2820_v59 = vpop.xlane.xlu1 %2819  ;;  %4068 = vmatmul.mubr.msk.f32.gmra.mrb[208].mxu1 %vm2718_vm7, %v7348_v19 }
 0x547   :  { %4476 = vpow2.f32 %v2959_v53  ;;  %v2884_v23 = vsub.f32 %v7145_v6, %v2820_v59 }
 0x549   :  { %v7353_v55 = vpop.eup %4472  ;;  %v2961_v58 = vmul.f32 1.442695, %v2884_v23 }
 0x54a   :  { %4070 = vmatprep.mubr.msk.f32.mxu1 %vm2718_vm7, %v7353_v55  ;;  %v2823_v11 = vpop.xlane.xlu0 %2822 }
 0x54b   :  { %4478 = vpow2.f32 %v2961_v58  ;;  %v2885_v52 = vsub.f32 %v7150_v46, %v2823_v11 }
 0x54d   :  { %v7358_v57 = vpop.eup %4474  ;;  %v2963_v25 = vmul.f32 1.442695, %v2885_v52 }
 0x54e   :  { %v2826_v8 = vpop.xlane.xlu1 %2825  ;;  %4071 = vmatmul.mubr.msk.f32.gmra.mrb[210].mxu1 %vm2718_vm7, %v7358_v57 }
 0x54f   :  { %4480 = vpow2.f32 %v2963_v25  ;;  %v2886_v6 = vsub.f32 %v7155_v7, %v2826_v8 }
 0x551   :  { %v7363_v62 = vpop.eup %4476  ;;  %v2965_v43 = vmul.f32 1.442695, %v2886_v6 }
 0x552   :  { %4073 = vmatprep.mubr.msk.f32.mxu1 %vm2718_vm7, %v7363_v62  ;;  %v2829_v34 = vpop.xlane.xlu0 %2828 }
 0x553   :  { %4482 = vpow2.f32 %v2965_v43  ;;  %v2887_v46 = vsub.f32 %v7160_v40, %v2829_v34 }
 0x555   :  { %v7368_v30 = vpop.eup %4478  ;;  %v2967_v20 = vmul.f32 1.442695, %v2887_v46 }
 0x556   :  { %v2832_v31 = vpop.xlane.xlu1 %2831  ;;  %4074 = vmatmul.mubr.msk.f32.gmra.mrb[212].mxu1 %vm2718_vm7, %v7368_v30 }
 0x557   :  { %4484 = vpow2.f32 %v2967_v20  ;;  %v2888_v7 = vsub.f32 %v7166_v32, %v2832_v31 }
 0x559   :  { %v7373_v9 = vpop.eup %4480  ;;  %v2969_v50 = vmul.f32 1.442695, %v2888_v7 }
 0x55a   :  { %4076 = vmatprep.mubr.msk.f32.mxu1 %vm2718_vm7, %v7373_v9  ;;  %v2835_v44 = vpop.xlane.xlu0 %2834 }
 0x55b   :  { %4486 = vpow2.f32 %v2969_v50  ;;  %v2889_v40 = vsub.f32 %v7172_v49, %v2835_v44 }
 0x55d   :  { %v7378_v21 = vpop.eup %4482  ;;  %v2971_v14 = vmul.f32 1.442695, %v2889_v40 }
 0x55e   :  { %v2838_v33 = vpop.xlane.xlu1 %2837  ;;  %4077 = vmatmul.mubr.msk.f32.gmra.mrb[214].mxu1 %vm2718_vm7, %v7378_v21 }
 0x55f   :  { %4488 = vpow2.f32 %v2971_v14  ;;  %v2890_v32 = vsub.f32 %v7178_v22, %v2838_v33 }
 0x561   :  { %v7383_v56 = vpop.eup %4484  ;;  %v2973_v53 = vmul.f32 1.442695, %v2890_v32 }
 0x562   :  { %4079 = vmatprep.mubr.msk.f32.mxu1 %vm2718_vm7, %v7383_v56  ;;  %v2841_v59 = vpop.xlane.xlu0 %2840 }
 0x563   :  { %4490 = vpow2.f32 %v2973_v53  ;;  %v2891_v49 = vsub.f32 %v7186_v26, %v2841_v59 }
 0x565   :  { %v7388_v23 = vpop.eup %4486  ;;  %v2975_v58 = vmul.f32 1.442695, %v2891_v49 }
 0x566   :  { %v2844_v11 = vpop.xlane.xlu1 %2843  ;;  %4080 = vmatmul.mubr.msk.f32.gmra.mrb[216].mxu1 %vm2718_vm7, %v7388_v23 }
 0x567   :  { %4492 = vpow2.f32 %v2975_v58  ;;  %v2892_v22 = vsub.f32 %v7196_v28, %v2844_v11 }
 0x569   :  { %v7393_v52 = vpop.eup %4488  ;;  %v2977_v25 = vmul.f32 1.442695, %v2892_v22 }
 0x56a   :  { %4082 = vmatprep.mubr.msk.f32.mxu1 %vm2718_vm7, %v7393_v52  ;;  %v2847_v8 = vpop.xlane.xlu0 %2846 }
 0x56b   :  { %4494 = vpow2.f32 %v2977_v25  ;;  %v2893_v26 = vsub.f32 %v7206_v51, %v2847_v8 }
 0x56d   :  { %v7398_v6 = vpop.eup %4490  ;;  %v2979_v43 = vmul.f32 1.442695, %v2893_v26 }
 0x56e   :  { %4083 = vmatmul.mubr.msk.f32.gmra.mrb[218].mxu1 %vm2718_vm7, %v7398_v6  ;;  %v2850_v34 = vpop.xlane.xlu1 %2849 }
 0x56f   :  { %4496 = vpow2.f32 %v2979_v43  ;;  %v2894_v28 = vsub.f32 %v7216_v38, %v2850_v34 }
 0x571   :  { %v7403_v46 = vpop.eup %4492  ;;  %v2981_v20 = vmul.f32 1.442695, %v2894_v28 }
 0x572   :  { %4085 = vmatprep.mubr.msk.f32.mxu1 %vm2718_vm7, %v7403_v46 }
 0x573   :  { %4498 = vpow2.f32 %v2981_v20 }
 0x575   :  { %v7407_v31 = vpop.eup %4494 }
 0x576   :  { %4086 = vmatmul.mubr.msk.f32.gmra.mrb[220].mxu1 %vm2718_vm7, %v7407_v31 }
 0x579   :  { %v7411_v51 = vpop.eup %4496 }
 0x57a   :  { %4088 = vmatprep.mubr.msk.f32.mxu1 %vm2718_vm7, %v7411_v51 }
 0x57d   :  { %v7415_v7 = vpop.eup %4498 }
 0x57e   :  { %4089 = vmatmul.mubr.msk.f32.gmra.mrb[222].mxu1 %vm2718_vm7, %v7415_v7 }
 0x5a9   :  { %v4027_v38 = vpop.f32.mrb[180].mxu1 }
 0x5aa   :  { %4500 = vrcp.f32 %v4027_v38  ;;  %v3197_v50 = vpop.f32.mrb[181].mxu1 }
 0x5ab   :  { %4502 = vrcp.f32 %v3197_v50 }
 0x5b1   :  { %v4030_v44 = vpop.f32.mrb[182].mxu1 }
 0x5b2   :  { %4504 = vrcp.f32 %v4030_v44  ;;  %v3207_v40 = vpop.f32.mrb[183].mxu1 }
 0x5b3   :  { %4506 = vrcp.f32 %v3207_v40 }
 0x5b4   :  { %v4501_v14 = vpop.eup %4500 }
 0x5b5   :  { %v4503_v33 = vpop.eup %4502  ;;  %v3461_v32 = vmul.f32 %v4501_v14, %v7193_v47 }
 0x5b6   :  { %v3460_v53 = vmul.f32 %v4503_v33, %v7183_v5 }
 0x5b7   :  { %3505 = vst.msk [vmem:[%s7650_s11 + $0x8] sm:$0xff] %vm2718_vm7, %v3461_v32 }
 0x5b8   :  { %3504 = vst.msk [vmem:[%s7650_s11] sm:$0xff] %vm2718_vm7, %v3460_v53 }
 0x5b9   :  { %v4033_v59 = vpop.f32.mrb[184].mxu1 }
 0x5ba   :  { %4508 = vrcp.f32 %v4033_v59  ;;  %v3217_v49 = vpop.f32.mrb[185].mxu1 }
 0x5bb   :  { %4510 = vrcp.f32 %v3217_v49 }
 0x5bc   :  { %v4505_v58 = vpop.eup %4504 }
 0x5bd   :  { %v4507_v11 = vpop.eup %4506  ;;  %v3463_v47 = vmul.f32 %v4505_v58, %v7213_v60 }
 0x5be   :  { %v3462_v5 = vmul.f32 %v4507_v11, %v7203_v42 }
 0x5bf   :  { %3507 = vst.msk [vmem:[%s7650_s11 + $0x18] sm:$0xff] %vm2718_vm7, %v3463_v47 }
 0x5c0   :  { %3506 = vst.msk [vmem:[%s7650_s11 + $0x10] sm:$0xff] %vm2718_vm7, %v3462_v5 }
 0x5c1   :  { %v4036_v22 = vpop.f32.mrb[186].mxu1 }
 0x5c2   :  { %4512 = vrcp.f32 %v4036_v22  ;;  %v3227_v25 = vpop.f32.mrb[187].mxu1 }
 0x5c3   :  { %4514 = vrcp.f32 %v3227_v25 }
 0x5c4   :  { %v4509_v8 = vpop.eup %4508 }
 0x5c5   :  { %v4511_v26 = vpop.eup %4510  ;;  %v3465_v60 = vmul.f32 %v4509_v8, %v7228_v63 }
 0x5c6   :  { %v3464_v42 = vmul.f32 %v4511_v26, %v7223_v3 }
 0x5c7   :  { %3509 = vst.msk [vmem:[%s7650_s11 + $0x28] sm:$0xff] %vm2718_vm7, %v3465_v60 }
 0x5c8   :  { %3508 = vst.msk [vmem:[%s7650_s11 + $0x20] sm:$0xff] %vm2718_vm7, %v3464_v42 }
 0x5c9   :  { %v4039_v43 = vpop.f32.mrb[188].mxu1 }
 0x5ca   :  { %4516 = vrcp.f32 %v4039_v43  ;;  %v3237_v34 = vpop.f32.mrb[189].mxu1 }
 0x5cb   :  { %4518 = vrcp.f32 %v3237_v34 }
 0x5cc   :  { %v4513_v28 = vpop.eup %4512 }
 0x5cd   :  { %v4515_v20 = vpop.eup %4514  ;;  %v3467_v63 = vmul.f32 %v4513_v28, %v7238_v13 }
 0x5ce   :  { %v3466_v3 = vmul.f32 %v4515_v20, %v7233_v41 }
 0x5cf   :  { %3511 = vst.msk [vmem:[%s7650_s11 + $0x38] sm:$0xff] %vm2718_vm7, %v3467_v63 }
 0x5d0   :  { %3510 = vst.msk [vmem:[%s7650_s11 + $0x30] sm:$0xff] %vm2718_vm7, %v3466_v3 }
 0x5d1   :  { %v4042_v38 = vpop.f32.mrb[190].mxu1 }
 0x5d2   :  { %4520 = vrcp.f32 %v4042_v38  ;;  %v3247_v50 = vpop.f32.mrb[191].mxu1 }
 0x5d3   :  { %4522 = vrcp.f32 %v3247_v50 }
 0x5d4   :  { %v4517_v44 = vpop.eup %4516 }
 0x5d5   :  { %v4519_v40 = vpop.eup %4518  ;;  %v3469_v13 = vmul.f32 %v4517_v44, %v7248_v16 }
 0x5d6   :  { %v3468_v41 = vmul.f32 %v4519_v40, %v7243_v61 }
 0x5d7   :  { %3513 = vst.msk [vmem:[%s7650_s11 + $0x48] sm:$0xff] %vm2718_vm7, %v3469_v13 }
 0x5d8   :  { %3512 = vst.msk [vmem:[%s7650_s11 + $0x40] sm:$0xff] %vm2718_vm7, %v3468_v41 }
 0x5d9   :  { %v4045_v14 = vpop.f32.mrb[192].mxu1 }
 0x5da   :  { %4524 = vrcp.f32 %v4045_v14  ;;  %v3257_v33 = vpop.f32.mrb[193].mxu1 }
 0x5db   :  { %4526 = vrcp.f32 %v3257_v33 }
 0x5dc   :  { %v4521_v32 = vpop.eup %4520 }
 0x5dd   :  { %v4523_v53 = vpop.eup %4522  ;;  %v3471_v16 = vmul.f32 %v4521_v32, %v7258_v37 }
 0x5de   :  { %v3470_v61 = vmul.f32 %v4523_v53, %v7253_v2 }
 0x5df   :  { %3515 = vst.msk [vmem:[%s7650_s11 + $0x58] sm:$0xff] %vm2718_vm7, %v3471_v16 }
 0x5e0   :  { %3514 = vst.msk [vmem:[%s7650_s11 + $0x50] sm:$0xff] %vm2718_vm7, %v3470_v61 }
 0x5e1   :  { %v4048_v59 = vpop.f32.mrb[194].mxu1 }
 0x5e2   :  { %4528 = vrcp.f32 %v4048_v59  ;;  %v3267_v49 = vpop.f32.mrb[195].mxu1 }
 0x5e3   :  { %4530 = vrcp.f32 %v3267_v49 }
 0x5e4   :  { %v4525_v58 = vpop.eup %4524 }
 0x5e5   :  { %v4527_v11 = vpop.eup %4526  ;;  %v3473_v37 = vmul.f32 %v4525_v58, %v7268_v10 }
 0x5e6   :  { %v3472_v2 = vmul.f32 %v4527_v11, %v7263_v17 }
 0x5e7   :  { %3517 = vst.msk [vmem:[%s7650_s11 + $0x68] sm:$0xff] %vm2718_vm7, %v3473_v37 }
 0x5e8   :  { %3516 = vst.msk [vmem:[%s7650_s11 + $0x60] sm:$0xff] %vm2718_vm7, %v3472_v2 }
 0x5e9   :  { %v4051_v47 = vpop.f32.mrb[196].mxu1 }
 0x5ea   :  { %4532 = vrcp.f32 %v4051_v47  ;;  %v3277_v5 = vpop.f32.mrb[197].mxu1 }
 0x5eb   :  { %4534 = vrcp.f32 %v3277_v5 }
 0x5ec   :  { %v4529_v22 = vpop.eup %4528 }
 0x5ed   :  { %v4531_v25 = vpop.eup %4530  ;;  %v3475_v10 = vmul.f32 %v4529_v22, %v7278_v36 }
 0x5ee   :  { %v3474_v17 = vmul.f32 %v4531_v25, %v7273_v45 }
 0x5ef   :  { %3519 = vst.msk [vmem:[%s7650_s11 + $0x78] sm:$0xff] %vm2718_vm7, %v3475_v10 }
 0x5f0   :  { %3518 = vst.msk [vmem:[%s7650_s11 + $0x70] sm:$0xff] %vm2718_vm7, %v3474_v17 }
 0x5f1   :  { %v4054_v8 = vpop.f32.mrb[198].mxu1 }
 0x5f2   :  { %4536 = vrcp.f32 %v4054_v8  ;;  %v3287_v26 = vpop.f32.mrb[199].mxu1 }
 0x5f3   :  { %4538 = vrcp.f32 %v3287_v26 }
 0x5f4   :  { %v4533_v60 = vpop.eup %4532 }
 0x5f5   :  { %v4535_v42 = vpop.eup %4534  ;;  %v3477_v36 = vmul.f32 %v4533_v60, %v7288_v4 }
 0x5f6   :  { %v3476_v45 = vmul.f32 %v4535_v42, %v7283_v15 }
 0x5f7   :  { %3521 = vst.msk [vmem:[%s7650_s11 + $0x88] sm:$0xff] %vm2718_vm7, %v3477_v36 }
 0x5f8   :  { %3520 = vst.msk [vmem:[%s7650_s11 + $0x80] sm:$0xff] %vm2718_vm7, %v3476_v45 }
 0x5f9   :  { %v4057_v43 = vpop.f32.mrb[200].mxu1 }
 0x5fa   :  { %4540 = vrcp.f32 %v4057_v43  ;;  %v3297_v34 = vpop.f32.mrb[201].mxu1 }
 0x5fb   :  { %4542 = vrcp.f32 %v3297_v34 }
 0x5fc   :  { %v4537_v28 = vpop.eup %4536 }
 0x5fd   :  { %v4539_v20 = vpop.eup %4538  ;;  %v3479_v4 = vmul.f32 %v4537_v28, %v7298_v39 }
 0x5fe   :  { %v3478_v15 = vmul.f32 %v4539_v20, %v7293_v27 }
 0x5ff   :  { %3523 = vst.msk [vmem:[%s7650_s11 + $0x98] sm:$0xff] %vm2718_vm7, %v3479_v4 }
 0x600   :  { %3522 = vst.msk [vmem:[%s7650_s11 + $0x90] sm:$0xff] %vm2718_vm7, %v3478_v15 }
 0x601   :  { %v4060_v63 = vpop.f32.mrb[202].mxu1 }
 0x602   :  { %4544 = vrcp.f32 %v4060_v63  ;;  %v3307_v3 = vpop.f32.mrb[203].mxu1 }
 0x603   :  { %4546 = vrcp.f32 %v3307_v3 }
 0x604   :  { %v4541_v38 = vpop.eup %4540 }
 0x605   :  { %v4543_v50 = vpop.eup %4542  ;;  %v3481_v39 = vmul.f32 %v4541_v38, %v7308_v48 }
 0x606   :  { %v3480_v27 = vmul.f32 %v4543_v50, %v7303_v12 }
 0x607   :  { %3525 = vst.msk [vmem:[%s7650_s11 + $0xa8] sm:$0xff] %vm2718_vm7, %v3481_v39 }
 0x608   :  { %3524 = vst.msk [vmem:[%s7650_s11 + $0xa0] sm:$0xff] %vm2718_vm7, %v3480_v27 }
 0x609   :  { %v4063_v44 = vpop.f32.mrb[204].mxu1 }
 0x60a   :  { %4548 = vrcp.f32 %v4063_v44  ;;  %v3317_v40 = vpop.f32.mrb[205].mxu1 }
 0x60b   :  { %4550 = vrcp.f32 %v3317_v40 }
 0x60c   :  { %v4545_v13 = vpop.eup %4544 }
 0x60d   :  { %v4547_v41 = vpop.eup %4546  ;;  %v3483_v48 = vmul.f32 %v4545_v13, %v7318_v0 }
 0x60e   :  { %v3482_v12 = vmul.f32 %v4547_v41, %v7313_v35 }
 0x60f   :  { %3527 = vst.msk [vmem:[%s7650_s11 + $0xb8] sm:$0xff] %vm2718_vm7, %v3483_v48 }
 0x610   :  { %3526 = vst.msk [vmem:[%s7650_s11 + $0xb0] sm:$0xff] %vm2718_vm7, %v3482_v12 }
 0x611   :  { %v4066_v14 = vpop.f32.mrb[206].mxu1 }
 0x612   :  { %4552 = vrcp.f32 %v4066_v14  ;;  %v3327_v33 = vpop.f32.mrb[207].mxu1 }
 0x613   :  { %4554 = vrcp.f32 %v3327_v33 }
 0x614   :  { %v4549_v32 = vpop.eup %4548 }
 0x615   :  { %v4551_v53 = vpop.eup %4550  ;;  %v3485_v0 = vmul.f32 %v4549_v32, %v7328_v1 }
 0x616   :  { %v3484_v35 = vmul.f32 %v4551_v53, %v7323_v18 }
 0x617   :  { %3529 = vst.msk [vmem:[%s7650_s11 + $0xc8] sm:$0xff] %vm2718_vm7, %v3485_v0 }
 0x618   :  { %3528 = vst.msk [vmem:[%s7650_s11 + $0xc0] sm:$0xff] %vm2718_vm7, %v3484_v35 }
 0x619   :  { %v4069_v16 = vpop.f32.mrb[208].mxu1 }
 0x61a   :  { %4556 = vrcp.f32 %v4069_v16  ;;  %v3337_v61 = vpop.f32.mrb[209].mxu1 }
 0x61b   :  { %4558 = vrcp.f32 %v3337_v61 }
 0x61c   :  { %v4553_v59 = vpop.eup %4552 }
 0x61d   :  { %v4555_v49 = vpop.eup %4554  ;;  %v3487_v1 = vmul.f32 %v4553_v59, %v7338_v54 }
 0x61e   :  { %v3486_v18 = vmul.f32 %v4555_v49, %v7333_v29 }
 0x61f   :  { %3531 = vst.msk [vmem:[%s7650_s11 + $0xd8] sm:$0xff] %vm2718_vm7, %v3487_v1 }
 0x620   :  { %3530 = vst.msk [vmem:[%s7650_s11 + $0xd0] sm:$0xff] %vm2718_vm7, %v3486_v18 }
 0x621   :  { %v4072_v58 = vpop.f32.mrb[210].mxu1 }
 0x622   :  { %4560 = vrcp.f32 %v4072_v58  ;;  %v3347_v11 = vpop.f32.mrb[211].mxu1 }
 0x623   :  { %4562 = vrcp.f32 %v3347_v11 }
 0x624   :  { %v4557_v37 = vpop.eup %4556 }
 0x625   :  { %v4559_v2 = vpop.eup %4558  ;;  %v3489_v54 = vmul.f32 %v4557_v37, %v7348_v19 }
 0x626   :  { %v3488_v29 = vmul.f32 %v4559_v2, %v7343_v24 }
 0x627   :  { %3533 = vst.msk [vmem:[%s7650_s11 + $0xe8] sm:$0xff] %vm2718_vm7, %v3489_v54 }
 0x628   :  { %3532 = vst.msk [vmem:[%s7650_s11 + $0xe0] sm:$0xff] %vm2718_vm7, %v3488_v29 }
 0x629   :  { %v4075_v47 = vpop.f32.mrb[212].mxu1 }
 0x62a   :  { %4564 = vrcp.f32 %v4075_v47  ;;  %v3357_v5 = vpop.f32.mrb[213].mxu1 }
 0x62b   :  { %4566 = vrcp.f32 %v3357_v5 }
 0x62c   :  { %v4561_v22 = vpop.eup %4560 }
 0x62d   :  { %v4563_v25 = vpop.eup %4562  ;;  %v3491_v19 = vmul.f32 %v4561_v22, %v7358_v57 }
 0x62e   :  { %v3490_v24 = vmul.f32 %v4563_v25, %v7353_v55 }
 0x62f   :  { %3535 = vst.msk [vmem:[%s7650_s11 + $0xf8] sm:$0xff] %vm2718_vm7, %v3491_v19 }
 0x630   :  { %3534 = vst.msk [vmem:[%s7650_s11 + $0xf0] sm:$0xff] %vm2718_vm7, %v3490_v24 }
 0x631   :  { %v4078_v10 = vpop.f32.mrb[214].mxu1 }
 0x632   :  { %4568 = vrcp.f32 %v4078_v10  ;;  %v3367_v17 = vpop.f32.mrb[215].mxu1 }
 0x633   :  { %4570 = vrcp.f32 %v3367_v17 }
 0x634   :  { %v4565_v8 = vpop.eup %4564 }
 0x635   :  { %v4567_v26 = vpop.eup %4566  ;;  %v3493_v57 = vmul.f32 %v4565_v8, %v7368_v30 }
 0x636   :  { %v3492_v55 = vmul.f32 %v4567_v26, %v7363_v62 }
 0x637   :  { %3537 = vst.msk [vmem:[%s7650_s11 + $0x108] sm:$0xff] %vm2718_vm7, %v3493_v57 }
 0x638   :  { %3536 = vst.msk [vmem:[%s7650_s11 + $0x100] sm:$0xff] %vm2718_vm7, %v3492_v55 }
 0x639   :  { %v4081_v60 = vpop.f32.mrb[216].mxu1 }
 0x63a   :  { %4572 = vrcp.f32 %v4081_v60  ;;  %v3377_v42 = vpop.f32.mrb[217].mxu1 }
 0x63b   :  { %4574 = vrcp.f32 %v3377_v42 }
 0x63c   :  { %v4569_v36 = vpop.eup %4568 }
 0x63d   :  { %v4571_v45 = vpop.eup %4570  ;;  %v3495_v30 = vmul.f32 %v4569_v36, %v7378_v21 }
 0x63e   :  { %v3494_v62 = vmul.f32 %v4571_v45, %v7373_v9 }
 0x63f   :  { %3539 = vst.msk [vmem:[%s7650_s11 + $0x118] sm:$0xff] %vm2718_vm7, %v3495_v30 }
 0x640   :  { %3538 = vst.msk [vmem:[%s7650_s11 + $0x110] sm:$0xff] %vm2718_vm7, %v3494_v62 }
 0x641   :  { %v4084_v43 = vpop.f32.mrb[218].mxu1 }
 0x642   :  { %4576 = vrcp.f32 %v4084_v43  ;;  %v3387_v34 = vpop.f32.mrb[219].mxu1 }
 0x643   :  { %4578 = vrcp.f32 %v3387_v34 }
 0x644   :  { %v4573_v28 = vpop.eup %4572 }
 0x645   :  { %v4575_v20 = vpop.eup %4574  ;;  %v3497_v21 = vmul.f32 %v4573_v28, %v7388_v23 }
 0x646   :  { %v3496_v9 = vmul.f32 %v4575_v20, %v7383_v56 }
 0x647   :  { %3541 = vst.msk [vmem:[%s7650_s11 + $0x128] sm:$0xff] %vm2718_vm7, %v3497_v21 }
 0x648   :  { %3540 = vst.msk [vmem:[%s7650_s11 + $0x120] sm:$0xff] %vm2718_vm7, %v3496_v9 }
 0x649   :  { %v4087_v4 = vpop.f32.mrb[220].mxu1 }
 0x64a   :  { %4580 = vrcp.f32 %v4087_v4  ;;  %v3397_v15 = vpop.f32.mrb[221].mxu1 }
 0x64b   :  { %4582 = vrcp.f32 %v3397_v15 }
 0x64c   :  { %v4577_v63 = vpop.eup %4576 }
 0x64d   :  { %v4579_v3 = vpop.eup %4578  ;;  %v3499_v23 = vmul.f32 %v4577_v63, %v7398_v6 }
 0x64e   :  { %v3498_v56 = vmul.f32 %v4579_v3, %v7393_v52 }
 0x64f   :  { %3543 = vst.msk [vmem:[%s7650_s11 + $0x138] sm:$0xff] %vm2718_vm7, %v3499_v23 }
 0x650   :  { %3542 = vst.msk [vmem:[%s7650_s11 + $0x130] sm:$0xff] %vm2718_vm7, %v3498_v56 }
 0x651   :  { %v4090_v38 = vpop.f32.mrb[222].mxu1 }
 0x652   :  { %4584 = vrcp.f32 %v4090_v38  ;;  %v3407_v50 = vpop.f32.mrb[223].mxu1 }
 0x653   :  { %4586 = vrcp.f32 %v3407_v50 }
 0x654   :  { %v4581_v39 = vpop.eup %4580 }
 0x655   :  { %v4583_v27 = vpop.eup %4582  ;;  %v3501_v6 = vmul.f32 %v4581_v39, %v7407_v31 }
 0x656   :  { %v3500_v52 = vmul.f32 %v4583_v27, %v7403_v46 }
 0x657   :  { %3545 = vst.msk [vmem:[%s7650_s11 + $0x148] sm:$0xff] %vm2718_vm7, %v3501_v6 }
 0x658   :  { %3544 = vst.msk [vmem:[%s7650_s11 + $0x140] sm:$0xff] %vm2718_vm7, %v3500_v52 }
 0x65c   :  { %v4585_v44 = vpop.eup %4584 }
 0x65d   :  { %v4587_v40 = vpop.eup %4586  ;;  %v3503_v13 = vmul.f32 %v4585_v44, %v7415_v7 }
 0x65e   :  { %v3502_v41 = vmul.f32 %v4587_v40, %v7411_v51 }
 0x65f   :  { %3547 = vst.msk [vmem:[%s7650_s11 + $0x158] sm:$0xff] %vm2718_vm7, %v3503_v13 }
 0x660   :  { %3546 = vst.msk [vmem:[%s7650_s11 + $0x150] sm:$0xff] %vm2718_vm7, %v3502_v41 }

</bundles_post_ra>
